<compile_context>
chip_gen: v5e
topology: v5e:2x2
jax: 0.10.0
libtpu: 0.0.40
codegen_flags: <defaults>
</compile_context>

<pallas_src>
import math

import jax
import jax.numpy as jnp
from jax.experimental import pallas as pl
from jax.experimental.pallas import tpu as pltpu


def _round_up(v, m):
    return ((v + m - 1) // m) * m


def _num_tensorcores():
    """Best-effort TensorCores-per-chip (2 on v7x, 1 on v5e/v6e)."""
    try:
        d = jax.devices()[0]
        n = getattr(d, "num_cores", None)
        if n:
            return int(n)
        if "v7" in str(getattr(d, "device_kind", "")).lower():
            return 2
    except Exception:
        pass
    return 1


def _vmem_budget_bytes():
    """(explicit vmem_limit_bytes, per-tile VMEM budget) for this chip."""
    cap = 64 * 1024 * 1024
    try:
        info = pltpu.get_tpu_info()
        cap = int(getattr(info, "vmem_capacity_bytes", cap))
    except Exception:
        pass
    limit = int(min(cap // 2, 48 * 1024 * 1024))   # 32 MiB on v7x, 48 MiB on v5e/v6e
    budget = max(limit - 8 * 1024 * 1024, 4 * 1024 * 1024)
    return limit, budget


def _tile_vmem_bytes(tm, input_dim, output_dim, max_width):
    """Rough VMEM bytes for one batch tile (f32, sublane dim padded to 8)."""
    pad8 = lambda v: _round_up(v, 8)
    b = 2 * pad8(input_dim) * tm * 4        # double-buffered x^T tile
    b += 2 * pad8(output_dim) * tm * 4      # double-buffered out^T tile
    b += 3 * pad8(max_width) * tm * 4       # ~3 live (width, tm) intermediates
    return b


def _fourier_mlp_kernel(xT_ref, b2t_ref, phase_ref, *refs):
    """One batch tile, feature-major (batch on the lane axis).

    refs = (w0^T, b0, w1^T, b1, ..., w_last^T, b_last, out^T_ref)
    ReLU after every Linear except the last (output_fc).
    """
    *param_refs, outT_ref = refs

    xT = xT_ref[...]                                                   # (input_dim, TM)

    # Fourier features: [sin(z); cos(z)] == sin([z; z] + [0; pi/2]).
    # b2t already carries the 2*pi factor and the row duplication.
    z = jnp.dot(b2t_ref[...], xT, preferred_element_type=jnp.float32)  # (2F, TM)
    h = jnp.sin(z + phase_ref[...])

    n_layers = len(param_refs) // 2
    for i in range(n_layers):
        wT = param_refs[2 * i][...]                                    # (out_i, in_i)
        bT = param_refs[2 * i + 1][...]                                # (out_i, 1)
        h = jnp.dot(wT, h, preferred_element_type=jnp.float32) + bT
        if i < n_layers - 1:                                           # no ReLU on output_fc
            h = jnp.maximum(h, 0.0)

    outT_ref[...] = h.astype(outT_ref.dtype)


def fourier_mlp_forward(x, B, weights, biases, *, tile_m=8192):
    """x: (N, input_dim) f32.  weights[i]: (in_i, out_i).  biases[i]: (out_i,).

    Returns (out, out) with out: (N, output_dim), matching FourierMLP.forward.
    """
    N, input_dim = x.shape
    fourier_dim = B.shape[1]
    output_dim = weights[-1].shape[1]
    layer_widths = [w.shape[0] for w in weights]          # 2F, h1, ..., h_last

    # --- one-time parameter prep (hoistable; cheap relative to the kernel) ---
    # features^T = sin( [2*pi*B^T; 2*pi*B^T] @ x^T + [0; pi/2] )
    B2T = jnp.concatenate([B.T, B.T], axis=0) * (2.0 * math.pi)   # (2F, input_dim)
    phase = jnp.concatenate(
        [jnp.zeros((fourier_dim, 1), jnp.float32),
         jnp.full((fourier_dim, 1), 0.5 * math.pi, jnp.float32)], axis=0)
    # Feature-major weights: y^T = W^T @ h^T + b^T.
    params = []
    for w, b in zip(weights, biases):
        params.extend([w.T, b.reshape(-1, 1)])

    # --- batch tile selection from an explicit per-chip VMEM budget ----------
    vmem_limit, budget = _vmem_budget_bytes()
    tm = max(256, _round_up(min(tile_m, _round_up(N, 256)), 256))
    while tm > 256 and _tile_vmem_bytes(tm, input_dim, output_dim,
                                        max(layer_widths)) > budget:
        tm -= 256

    # Only on multi-TensorCore parts (v7x): keep >=2 / an even number of grid
    # steps so the "parallel" batch axis shards evenly across cores.
    if _num_tensorcores() >= 2:
        steps = pl.cdiv(N, tm)
        if steps == 1 and tm >= 512:
            tm = _round_up(pl.cdiv(tm, 2), 256)
        elif steps > 1 and steps % 2 == 1:
            cand = _round_up(pl.cdiv(N, steps + 1), 256)
            if cand >= 256 and pl.cdiv(N, cand) % 2 == 0:
                tm = cand

    grid = (pl.cdiv(N, tm),)          # ragged last block handled by Pallas

    def const_spec(shape):
        return pl.BlockSpec(shape, lambda i: (0, 0))

    in_specs = [
        pl.BlockSpec((input_dim, tm), lambda i: (0, i)),   # x^T tiled on lanes
        const_spec(B2T.shape),                             # resident params
        const_spec(phase.shape),
    ] + [const_spec(p.shape) for p in params]

    out_spec = pl.BlockSpec((output_dim, tm), lambda i: (0, i))   # lane-dense store

    outT = pl.pallas_call(
        _fourier_mlp_kernel,
        out_shape=jax.ShapeDtypeStruct((output_dim, N), x.dtype),
        grid_spec=pltpu.PrefetchScalarGridSpec(
            num_scalar_prefetch=0,
            grid=grid,
            in_specs=in_specs,
            out_specs=out_spec,
        ),
        compiler_params=pltpu.CompilerParams(
            dimension_semantics=("parallel",),
            vmem_limit_bytes=vmem_limit),
    )(x.T, B2T, phase, *params)

    out = outT.T                      # (N, output_dim)
    # PyTorch returns (x, x_temp) where x_temp is the same tensor.
    return out, out


def init_params(key, input_dim, fourier_dim, h_sizes, output_dim, scale):
    """Deterministic parameter init matching the module's shapes."""
    n_layers = 1 + (len(h_sizes) - 1) + 1
    keys = jax.random.split(key, 1 + 2 * n_layers)
    kit = iter(keys)

    # FourierLayer buffer: randn(in, out) * scale
    B = jax.random.normal(next(kit), (input_dim, fourier_dim), jnp.float32) * scale

    dims = [2 * fourier_dim] + list(h_sizes) + [output_dim]
    weights, biases = [], []
    for d_in, d_out in zip(dims[:-1], dims[1:]):
        bound = 1.0 / math.sqrt(d_in)   # PyTorch nn.Linear default init range
        w = jax.random.uniform(next(kit), (d_in, d_out), jnp.float32, -bound, bound)
        b = jax.random.uniform(next(kit), (d_out,), jnp.float32, -bound, bound)
        weights.append(w)
        biases.append(b)
    return B, weights, biases


def reference_forward(x, B, weights, biases):
    """Pure-JAX reference of the PyTorch forward, for verification."""
    x_proj = jnp.matmul(2.0 * math.pi * x, B)
    h = jnp.concatenate([jnp.sin(x_proj), jnp.cos(x_proj)], axis=-1)
    n = len(weights)
    for i in range(n):
        h = jnp.matmul(h, weights[i]) + biases[i]
        if i < n - 1:
            h = jnp.maximum(h, 0.0)
    return h, h


if __name__ == "__main__":
    # Small shapes consistent with the module.
    input_dim = 4
    fourier_dim = 32
    h_sizes = [32, 32]
    output_dim = 6
    scale = 1.0

    key = jax.random.PRNGKey(0)
    kx, kp = jax.random.split(key)
    B, weights, biases = init_params(kp, input_dim, fourier_dim,
                                     h_sizes, output_dim, scale)

    # Exercise a full tile, a ragged block, and a tiny batch.
    for batch in (128, 100, 2):
        x = jax.random.normal(jax.random.fold_in(kx, batch),
                              (batch, input_dim), jnp.float32)

        out, out_temp = fourier_mlp_forward(x, B, weights, biases)
        out = jax.block_until_ready(out)

        ref, _ = reference_forward(x, B, weights, biases)
        assert out.shape == (batch, output_dim)
        assert jnp.allclose(out, ref, atol=1e-5, rtol=1e-5), \
            f"mismatch vs reference at batch={batch}"
        assert out_temp is out  # (x, x_temp) are the same tensor

    print("KERNEL_OK")
</pallas_src>

<mosaic_0001>
module attributes {stable_mosaic.version = 11 : i64} {
  func.func @_fourier_mlp_kernel(%arg0: i32, %arg1: memref<4x256xf32, #tpu.memory_space<vmem>>, %arg2: memref<64x4xf32, #tpu.memory_space<vmem>>, %arg3: memref<64x1xf32, #tpu.memory_space<vmem>>, %arg4: memref<32x64xf32, #tpu.memory_space<vmem>>, %arg5: memref<32x1xf32, #tpu.memory_space<vmem>>, %arg6: memref<32x32xf32, #tpu.memory_space<vmem>>, %arg7: memref<32x1xf32, #tpu.memory_space<vmem>>, %arg8: memref<6x32xf32, #tpu.memory_space<vmem>>, %arg9: memref<6x1xf32, #tpu.memory_space<vmem>>, %arg10: memref<6x256xf32, #tpu.memory_space<vmem>>) attributes {dimension_semantics = [#tpu.dimension_semantics<parallel>], iteration_bounds = array<i64: 1>, scalar_prefetch = 0 : i64, scratch_operands = 0 : i64, tpu.core_type = #tpu.core_type<tc>, window_params = [{transform_indices = @transform_0, window_bounds = array<i64: 4, 256>}, {pipeline_mode = #tpu.pipeline_mode<synchronous>, transform_indices = @transform_1, window_bounds = array<i64: 64, 4>}, {pipeline_mode = #tpu.pipeline_mode<synchronous>, transform_indices = @transform_2, window_bounds = array<i64: 64, 1>}, {pipeline_mode = #tpu.pipeline_mode<synchronous>, transform_indices = @transform_3, window_bounds = array<i64: 32, 64>}, {pipeline_mode = #tpu.pipeline_mode<synchronous>, transform_indices = @transform_4, window_bounds = array<i64: 32, 1>}, {pipeline_mode = #tpu.pipeline_mode<synchronous>, transform_indices = @transform_5, window_bounds = array<i64: 32, 32>}, {pipeline_mode = #tpu.pipeline_mode<synchronous>, transform_indices = @transform_6, window_bounds = array<i64: 32, 1>}, {pipeline_mode = #tpu.pipeline_mode<synchronous>, transform_indices = @transform_7, window_bounds = array<i64: 6, 32>}, {pipeline_mode = #tpu.pipeline_mode<synchronous>, transform_indices = @transform_8, window_bounds = array<i64: 6, 1>}, {transform_indices = @transform_9, window_bounds = array<i64: 6, 256>}]} {
    %c0 = arith.constant 0 : index
    %c0_0 = arith.constant 0 : index
    %0 = vector.load %arg1[%c0, %c0_0] : memref<4x256xf32, #tpu.memory_space<vmem>>, vector<4x256xf32>
    %c0_1 = arith.constant 0 : index
    %c0_2 = arith.constant 0 : index
    %1 = vector.load %arg2[%c0_1, %c0_2] : memref<64x4xf32, #tpu.memory_space<vmem>>, vector<64x4xf32>
    %cst = arith.constant dense<0.000000e+00> : vector<64x256xf32>
    %2 = tpu.matmul %1, %0, %cst {dimension_numbers = #tpu.dot_dimension_numbers<[1], [0], [0], [1], [0, 0, 1, 1], [], []>} : vector<64x4xf32>, vector<4x256xf32>, vector<64x256xf32> -> vector<64x256xf32>
    %c0_3 = arith.constant 0 : index
    %c0_4 = arith.constant 0 : index
    %3 = vector.load %arg3[%c0_3, %c0_4] : memref<64x1xf32, #tpu.memory_space<vmem>>, vector<64x1xf32>
    %4 = vector.broadcast %3 : vector<64x1xf32> to vector<64x256xf32>
    %5 = arith.addf %2, %4 : vector<64x256xf32>
    %6 = math.sin %5 : vector<64x256xf32>
    %c0_5 = arith.constant 0 : index
    %c0_6 = arith.constant 0 : index
    %7 = vector.load %arg4[%c0_5, %c0_6] : memref<32x64xf32, #tpu.memory_space<vmem>>, vector<32x64xf32>
    %c0_7 = arith.constant 0 : index
    %c0_8 = arith.constant 0 : index
    %8 = vector.load %arg5[%c0_7, %c0_8] : memref<32x1xf32, #tpu.memory_space<vmem>>, vector<32x1xf32>
    %cst_9 = arith.constant dense<0.000000e+00> : vector<32x256xf32>
    %9 = tpu.matmul %7, %6, %cst_9 {dimension_numbers = #tpu.dot_dimension_numbers<[1], [0], [0], [1], [0, 0, 1, 1], [], []>} : vector<32x64xf32>, vector<64x256xf32>, vector<32x256xf32> -> vector<32x256xf32>
    %10 = vector.broadcast %8 : vector<32x1xf32> to vector<32x256xf32>
    %11 = arith.addf %9, %10 : vector<32x256xf32>
    %cst_10 = arith.constant 0.000000e+00 : f32
    %12 = vector.broadcast %cst_10 : f32 to vector<32x256xf32>
    %13 = arith.maximumf %11, %12 : vector<32x256xf32>
    %c0_11 = arith.constant 0 : index
    %c0_12 = arith.constant 0 : index
    %14 = vector.load %arg6[%c0_11, %c0_12] : memref<32x32xf32, #tpu.memory_space<vmem>>, vector<32x32xf32>
    %c0_13 = arith.constant 0 : index
    %c0_14 = arith.constant 0 : index
    %15 = vector.load %arg7[%c0_13, %c0_14] : memref<32x1xf32, #tpu.memory_space<vmem>>, vector<32x1xf32>
    %cst_15 = arith.constant dense<0.000000e+00> : vector<32x256xf32>
    %16 = tpu.matmul %14, %13, %cst_15 {dimension_numbers = #tpu.dot_dimension_numbers<[1], [0], [0], [1], [0, 0, 1, 1], [], []>} : vector<32x32xf32>, vector<32x256xf32>, vector<32x256xf32> -> vector<32x256xf32>
    %17 = vector.broadcast %15 : vector<32x1xf32> to vector<32x256xf32>
    %18 = arith.addf %16, %17 : vector<32x256xf32>
    %cst_16 = arith.constant 0.000000e+00 : f32
    %19 = vector.broadcast %cst_16 : f32 to vector<32x256xf32>
    %20 = arith.maximumf %18, %19 : vector<32x256xf32>
    %c0_17 = arith.constant 0 : index
    %c0_18 = arith.constant 0 : index
    %21 = vector.load %arg8[%c0_17, %c0_18] : memref<6x32xf32, #tpu.memory_space<vmem>>, vector<6x32xf32>
    %c0_19 = arith.constant 0 : index
    %c0_20 = arith.constant 0 : index
    %22 = vector.load %arg9[%c0_19, %c0_20] : memref<6x1xf32, #tpu.memory_space<vmem>>, vector<6x1xf32>
    %cst_21 = arith.constant dense<0.000000e+00> : vector<6x256xf32>
    %23 = tpu.matmul %21, %20, %cst_21 {dimension_numbers = #tpu.dot_dimension_numbers<[1], [0], [0], [1], [0, 0, 1, 1], [], []>} : vector<6x32xf32>, vector<32x256xf32>, vector<6x256xf32> -> vector<6x256xf32>
    %24 = vector.broadcast %22 : vector<6x1xf32> to vector<6x256xf32>
    %25 = arith.addf %23, %24 : vector<6x256xf32>
    %c0_22 = arith.constant 0 : index
    %c0_23 = arith.constant 0 : index
    %26 = vector.load %arg10[%c0_22, %c0_23] : memref<6x256xf32, #tpu.memory_space<vmem>>, vector<6x256xf32>
    tpu.vector_store %arg10[%c0_22, %c0_23], %25 {strides = array<i32>} : memref<6x256xf32, #tpu.memory_space<vmem>>, vector<6x256xf32>,
    return
  }
  func.func @transform_0(%arg0: i32) -> (i32, i32) {
    %c0_i32 = arith.constant 0 : i32
    %c0_i32_0 = arith.constant 0 : i32
    return %c0_i32, %arg0 : i32, i32
  }
  func.func @transform_1(%arg0: i32) -> (i32, i32) {
    %c0_i32 = arith.constant 0 : i32
    %c0_i32_0 = arith.constant 0 : i32
    %c0_i32_1 = arith.constant 0 : i32
    return %c0_i32, %c0_i32_0 : i32, i32
  }
  func.func @transform_2(%arg0: i32) -> (i32, i32) {
    %c0_i32 = arith.constant 0 : i32
    %c0_i32_0 = arith.constant 0 : i32
    %c0_i32_1 = arith.constant 0 : i32
    return %c0_i32, %c0_i32_0 : i32, i32
  }
  func.func @transform_3(%arg0: i32) -> (i32, i32) {
    %c0_i32 = arith.constant 0 : i32
    %c0_i32_0 = arith.constant 0 : i32
    %c0_i32_1 = arith.constant 0 : i32
    return %c0_i32, %c0_i32_0 : i32, i32
  }
  func.func @transform_4(%arg0: i32) -> (i32, i32) {
    %c0_i32 = arith.constant 0 : i32
    %c0_i32_0 = arith.constant 0 : i32
    %c0_i32_1 = arith.constant 0 : i32
    return %c0_i32, %c0_i32_0 : i32, i32
  }
  func.func @transform_5(%arg0: i32) -> (i32, i32) {
    %c0_i32 = arith.constant 0 : i32
    %c0_i32_0 = arith.constant 0 : i32
    %c0_i32_1 = arith.constant 0 : i32
    return %c0_i32, %c0_i32_0 : i32, i32
  }
  func.func @transform_6(%arg0: i32) -> (i32, i32) {
    %c0_i32 = arith.constant 0 : i32
    %c0_i32_0 = arith.constant 0 : i32
    %c0_i32_1 = arith.constant 0 : i32
    return %c0_i32, %c0_i32_0 : i32, i32
  }
  func.func @transform_7(%arg0: i32) -> (i32, i32) {
    %c0_i32 = arith.constant 0 : i32
    %c0_i32_0 = arith.constant 0 : i32
    %c0_i32_1 = arith.constant 0 : i32
    return %c0_i32, %c0_i32_0 : i32, i32
  }
  func.func @transform_8(%arg0: i32) -> (i32, i32) {
    %c0_i32 = arith.constant 0 : i32
    %c0_i32_0 = arith.constant 0 : i32
    %c0_i32_1 = arith.constant 0 : i32
    return %c0_i32, %c0_i32_0 : i32, i32
  }
  func.func @transform_9(%arg0: i32) -> (i32, i32) {
    %c0_i32 = arith.constant 0 : i32
    %c0_i32_0 = arith.constant 0 : i32
    return %c0_i32, %arg0 : i32, i32
  }
}

</mosaic_0001>

<bundles_post_ra>
// kernel: tpu_custom_call.1
= control target key start
LH: loop header
LB: loop body
LE: loop exit
PB: predicated region body
PF: predicated region fallthrough
CT: control target
= control target key end

     0   :  { %s5752_s0 = inlined_call_operand.vmem [shape: f32[4,128], index: 0, kind: input, shape index: {}]   ;;  %s5753_s1 = inlined_call_operand.vmem [shape: f32[64,4], index: 1, kind: input, shape index: {}]   ;;  %s5754_s2 = inlined_call_operand.vmem [shape: f32[64,1], index: 2, kind: input, shape index: {}]   ;;  %s5755_s3 = inlined_call_operand.vmem [shape: f32[32,64], index: 3, kind: input, shape index: {}]   ;;  %s5756_s4 = inlined_call_operand.vmem [shape: f32[32,1], index: 4, kind: input, shape index: {}]   ;;  %s5757_s5 = inlined_call_operand.vmem [shape: f32[32,32], index: 5, kind: input, shape index: {}]   ;;  %s5758_s6 = inlined_call_operand.vmem [shape: f32[32,1], index: 6, kind: input, shape index: {}]   ;;  %s5759_s7 = inlined_call_operand.vmem [shape: f32[6,32], index: 7, kind: input, shape index: {}]   ;;  %s5760_s8 = inlined_call_operand.vmem [shape: f32[6,1], index: 8, kind: input, shape index: {}]   ;;  %s5761_s9 = inlined_call_operand.hbm [shape: f32[6,128], index: 9, kind: output, shape index: {}]  }
   0x1   :  { %v47_v0 = vld [vmem:[%s5754_s2 + $0x28] sm:$0xff] }
   0x2   :  { %14 = vsyncpa [#allocation3], 0  ;;  %v33_v1 = vld [vmem:[%s5752_s0] sm:$0xff]  ;;  %v5762_v2 = vmov 0   ;;  %v49_v3 = vld [vmem:[%s5754_s2 + $0x38] sm:$0xff]  ;;  %vm119_vm0 = vcmask 1043456  }
   0x3   :  { %3061 = vset.pattern.permute.xlu1 %v5762_v2  ;;  %91 = vst [vmem:[#allocation1] ss:$2 sm:$0xff] %v33_v1  ;;  %3060 = vset.pattern.permute.xlu0 %v5762_v2  ;;  %v34_v4 = vld [vmem:[%s5753_s1] sm:$0xff]  ;;  %vm94_vm1 = vcmask 31744   ;;  %v48_v6 = vld [vmem:[%s5754_s2 + $0x30] sm:$0xff]  ;;  %v35_v9 = vld [vmem:[%s5753_s1 + $0x8] sm:$0xff] }
   0x4   :  { %77 = vperm.xlu1 %3061, %v47_v0   ;;  %87 = vperm.xlu0 %3060, %v49_v3   ;;  %v46_v5 = vld [vmem:[%s5754_s2 + $0x20] sm:$0xff]  ;;  %v43_v11 = vld [vmem:[%s5754_s2 + $0x8] sm:$0xff]  ;;  %v45_v12 = vld [vmem:[%s5754_s2 + $0x18] sm:$0xff] }
   0x5   :  { %3062 = vset.pattern.permute.xlu2 %v5762_v2  ;;  %v42_v10 = vld [vmem:[%s5754_s2] sm:$0xff]  ;;  %v36_v13 = vld [vmem:[%s5753_s1 + $0x10] sm:$0xff]  ;;  %v2691_v15 = vld [vmem:[%s5756_s4 + $0x8] sm:$0xff] }
   0x6   :  { %67 = vperm.xlu2 %3062, %v45_v12   ;;  %v2692_v14 = vld [vmem:[%s5756_s4 + $0x10] sm:$0xff]  ;;  %v37_v17 = vld [vmem:[%s5753_s1 + $0x18] sm:$0xff]  ;;  %v38_v21 = vld [vmem:[%s5753_s1 + $0x20] sm:$0xff] }
   0x7   :  { %v44_v16 = vld [vmem:[%s5754_s2 + $0x10] sm:$0xff]  ;;  %v2800_v18 = vld [vmem:[%s5758_s6 + $0x18] sm:$0xff]  ;;  %v2797_v22 = vld [vmem:[%s5758_s6] sm:$0xff] }
   0x8   :  { %v2799_v19 = vld [vmem:[%s5758_s6 + $0x10] sm:$0xff]  ;;  %v2693_v20 = vld [vmem:[%s5756_s4 + $0x18] sm:$0xff]  ;;  %v2901_v23 = vld [vmem:[%s5760_s8] sm:$0x3f] }
   0x9   :  { %v2690_v24 = vld [vmem:[%s5756_s4] sm:$0xff]  ;;  %v39_v25 = vld [vmem:[%s5753_s1 + $0x28] sm:$0xff]  ;;  %v40_v27 = vld [vmem:[%s5753_s1 + $0x30] sm:$0xff] }
   0xa   :  { %v92_v7 = vld.sshfl [vmem:[#allocation1] sm:$0xff pattern:$0x75316420]  ;;  %v93_v8 = vld.sshfl [vmem:[#allocation1 + $0x8] sm:$0xff pattern:$0x75316420] }
   0xb   :  { %2968 = vmatpush.msk.msra.mxu0 %vm119_vm0, %v92_v7  ;;  %2977 = vmatpush.msk.msra.mxu1 %vm119_vm0, %v93_v8  ;;  %v2798_v26 = vld [vmem:[%s5758_s6 + $0x8] sm:$0xff]  ;;  %v41_v28 = vld [vmem:[%s5753_s1 + $0x38] sm:$0xff] }
   0xc   :  { %2969 = vmatmul.msk.f32.vlgmr.msra.gmra.mxu0 %vm94_vm1, %v34_v4  ;;  %2978 = vmatmul.msk.f32.vlgmr.msra.gmra.mxu1 %vm94_vm1, %v34_v4 }
   0xd   :  { %72 = vperm.xlu1 %3061, %v46_v5   ;;  %82 = vperm.xlu0 %3060, %v48_v6  }
   0xe   :  { %62 = vperm.xlu2 %3062, %v44_v16  }
  0x14   :  { %2970 = vmatmul.msk.f32.gmra.mxu0 %vm94_vm1, %v35_v9  ;;  %2979 = vmatmul.msk.f32.gmra.mxu1 %vm94_vm1, %v35_v9 }
  0x15   :  { %52 = vperm.xlu1 %3061, %v42_v10   ;;  %57 = vperm.xlu0 %3060, %v43_v11  }
  0x16   :  { %2711 = vperm.xlu2 %3062, %v2693_v20  }
  0x1c   :  { %2971 = vmatmul.msk.f32.gmra.mxu0 %vm94_vm1, %v36_v13  ;;  %2980 = vmatmul.msk.f32.gmra.mxu1 %vm94_vm1, %v36_v13 }
  0x1d   :  { %2706 = vperm.xlu0 %3060, %v2692_v14   ;;  %2701 = vperm.xlu1 %3061, %v2691_v15  }
  0x1e   :  { %2696 = vperm.xlu2 %3062, %v2690_v24  }
  0x24   :  { %2972 = vmatmul.msk.f32.gmra.mxu0 %vm94_vm1, %v37_v17  ;;  %2981 = vmatmul.msk.f32.gmra.mxu1 %vm94_vm1, %v37_v17 }
  0x25   :  { %2818 = vperm.xlu0 %3060, %v2800_v18   ;;  %2813 = vperm.xlu1 %3061, %v2799_v19  }
  0x26   :  { %2808 = vperm.xlu2 %3062, %v2798_v26  }
  0x2c   :  { %2973 = vmatmul.msk.f32.gmra.mxu0 %vm94_vm1, %v38_v21  ;;  %2982 = vmatmul.msk.f32.gmra.mxu1 %vm94_vm1, %v38_v21 }
  0x2d   :  { %2803 = vperm.xlu0 %3060, %v2797_v22   ;;  %2904 = vperm.xlu1 %3061, %v2901_v23  }
  0x34   :  { %2974 = vmatmul.msk.f32.gmra.mxu0 %vm94_vm1, %v39_v25  ;;  %2983 = vmatmul.msk.f32.gmra.mxu1 %vm94_vm1, %v39_v25 }
  0x3c   :  { %2975 = vmatmul.msk.f32.gmra.mxu0 %vm94_vm1, %v40_v27  ;;  %2984 = vmatmul.msk.f32.gmra.mxu1 %vm94_vm1, %v40_v27 }
  0x44   :  { %2976 = vmatmul.msk.f32.gmra.mxu0 %vm94_vm1, %v41_v28  ;;  %2985 = vmatmul.msk.f32.gmra.mxu1 %vm94_vm1, %v41_v28  ;;  %v5768_v28 = vmov 2102212464  }
  0x60   :  { %v68_v41 = vpop.permute.xlu2 %67 }
  0x68   :  { %v63_v57 = vpop.permute.xlu2 %62 }
  0x76   :  { %v3244_v29 = vpop.permute.xlu1 %77  ;;  %v3246_v30 = vpop.permute.xlu0 %87 }
  0x7f   :  { %v3248_v31 = vpop.permute.xlu1 %72  ;;  %v3250_v34 = vpop.permute.xlu0 %82 }
  0x87   :  { %v53_v35 = vpop.permute.xlu1 %52  ;;  %v58_v42 = vpop.permute.xlu0 %57 }
  0x89   :  { %v141_v32 = vpop.f32.mrf.mxu0  ;;  %v182_v33 = vpop.f32.mrf.mxu1 }
  0x8a   :  { %v3252_v38 = vadd.f32 %v141_v32, %v53_v35  ;;  %v3255_v40 = vadd.f32 %v182_v33, %v53_v35 }
  0x8c   :  { %5867 = vst [vmem:[#allocation5_spill] sm:$0xff] %v3252_v38  ;;  %v209_v39 = vand.u32 2139095040, %v3252_v38  ;;  %v364_v46 = vand.u32 2139095040, %v3255_v40 }
  0x8d   :  { %5868 = vst [vmem:[#allocation6_spill] sm:$0xff] %v3255_v40 }
  0x8e   :  { %v210_v45 = vshrl.u32 %v209_v39, 23  ;;  %v365_v50 = vshrl.u32 %v364_v46, 23 }
  0x90   :  { %v2986_v49 = vadd.s32 4294967169, %v210_v45  ;;  %v2989_v56 = vadd.s32 4294967169, %v365_v50 }
  0x91   :  { %v144_v36 = vpop.f32.mrf.mxu0  ;;  %v185_v37 = vpop.f32.mrf.mxu1 }
  0x92   :  { %v3258_v47 = vadd.f32 %v144_v36, %v58_v42  ;;  %v3260_v48 = vadd.f32 %v185_v37, %v58_v42  ;;  %v216_v55 = vadd.s32 1, %v2986_v49  ;;  %v371_v61 = vadd.s32 1, %v2989_v56 }
  0x94   :  { %5869 = vst [vmem:[#allocation7_spill] sm:$0xff] %v3258_v47  ;;  %v519_v51 = vand.u32 2139095040, %v3258_v47  ;;  %v674_v52 = vand.u32 2139095040, %v3260_v48  ;;  %vm217_vm2 = vcmp.gt.s32.totalorder %v216_v55, 0  ;;  %vm372_vm3 = vcmp.gt.s32.totalorder %v371_v61, 0 }
  0x95   :  { %5870 = vst [vmem:[#allocation8_spill] sm:$0xff] %v3260_v48  ;;  %v218_v4 = vsel %vm217_vm2, %v216_v55, 0  ;;  %v373_v14 = vsel %vm372_vm3, %v371_v61, 0  ;;  %v5764_v55 = vmov 1326507024  }
  0x96   :  { %v520_v58 = vshrl.u32 %v519_v51, 23  ;;  %v675_v59 = vshrl.u32 %v674_v52, 23  ;;  %v3276_v12 = vand.u32 31, %v218_v4  ;;  %v3281_v20 = vand.u32 31, %v373_v14 }
  0x97   :  { %v3283_v21 = vshrl.u32 %v218_v4, 5  ;;  %v3293_v33 = vshrl.u32 %v373_v14, 5 }
  0x98   :  { %v2992_v0 = vadd.s32 4294967169, %v520_v58  ;;  %v2995_v3 = vadd.s32 4294967169, %v675_v59  ;;  %5875 = vst [vmem:[#allocation13_spill] sm:$0xff] %v3276_v12  ;;  %v3279_v19 = vsub.s32 32, %v3276_v12  ;;  %v232_v32 = vshll.u32 %v5768_v28, %v3276_v12 }
  0x99   :  { %v147_v43 = vpop.f32.mrf.mxu0  ;;  %v188_v44 = vpop.f32.mrf.mxu1  ;;  %5877 = vst [vmem:[#allocation15_spill] sm:$0xff] %v3281_v20 }
  0x9a   :  { %v3264_v60 = vadd.f32 %v147_v43, %v63_v57  ;;  %v3266_v62 = vadd.f32 %v188_v44, %v63_v57  ;;  %v526_v10 = vadd.s32 1, %v2992_v0  ;;  %v681_v13 = vadd.s32 1, %v2995_v3  ;;  %5876 = vst [vmem:[#allocation14_spill] sm:$0xff] %v3279_v19 }
  0x9b   :  { %5878 = vst [vmem:[#allocation16_spill] sm:$0xff] %v3283_v21  ;;  %v3306_v44 = vshll.u32 %v5768_v28, %v3281_v20  ;;  %v3320_v56 = vshrl.u32 %v5764_v55, %v3279_v19 }
  0x9c   :  { %5871 = vst [vmem:[#allocation9_spill] sm:$0xff] %v3264_v60  ;;  %v829_v5 = vand.u32 2139095040, %v3264_v60  ;;  %v984_v8 = vand.u32 2139095040, %v3266_v62  ;;  %vm527_vm4 = vcmp.gt.s32.totalorder %v526_v10, 0  ;;  %vm682_vm5 = vcmp.gt.s32.totalorder %v681_v13, 0 }
  0x9d   :  { %5872 = vst [vmem:[#allocation10_spill] sm:$0xff] %v3266_v62  ;;  %v528_v24 = vsel %vm527_vm4, %v526_v10, 0  ;;  %v683_v35 = vsel %vm682_vm5, %v681_v13, 0 }
  0x9e   :  { %v830_v15 = vshrl.u32 %v829_v5, 23  ;;  %v985_v16 = vshrl.u32 %v984_v8, 23  ;;  %5881 = vst [vmem:[#allocation19_spill] sm:$0xff] %v3293_v33  ;;  %v3312_v46 = vand.u32 31, %v528_v24  ;;  %v3315_v51 = vand.u32 31, %v683_v35 }
  0x9f   :  { %5884 = vst [vmem:[#allocation22_spill] sm:$0xff] %v3306_v44  ;;  %v3338_v4 = vshrl.u32 %v528_v24, 5 }
  0xa0   :  { %v2998_v22 = vadd.s32 4294967169, %v830_v15  ;;  %v3001_v25 = vadd.s32 4294967169, %v985_v16  ;;  %5886 = vst [vmem:[#allocation24_spill] sm:$0xff] %v3312_v46  ;;  %v3341_v5 = vsub.s32 32, %v3312_v46  ;;  %v3360_v14 = vshll.u32 %v5768_v28, %v3315_v51 }
  0xa1   :  { %v150_v53 = vpop.f32.mrf.mxu0  ;;  %v191_v54 = vpop.f32.mrf.mxu1  ;;  %5887 = vst [vmem:[#allocation25_spill] sm:$0xff] %v3315_v51 }
  0xa2   :  { %v3268_v63 = vadd.f32 %v150_v53, %v68_v41  ;;  %v3270_v1 = vadd.f32 %v191_v54, %v68_v41  ;;  %v5766_v41 = vmov 920167782   ;;  %v836_v49 = vadd.s32 1, %v2998_v22  ;;  %5888 = vst [vmem:[#allocation26_spill] sm:$0xff] %v3320_v56 }
  0xa3   :  { %v233_v42 = vshrl.u32 %v5766_v41, %v3279_v19  ;;  %v3299_v43 = vshll.u32 %v5766_v41, %v3276_v12  ;;  %v3310_v45 = vshll.u32 %v5766_v41, %v3281_v20  ;;  %v991_v52 = vadd.s32 1, %v3001_v25  ;;  %5894 = vst [vmem:[#allocation32_spill] sm:$0xff] %v3338_v4 }
  0xa4   :  { %5873 = vst [vmem:[#allocation11_spill] sm:$0xff] %v3268_v63  ;;  %v1139_v9 = vand.u32 2139095040, %v3268_v63  ;;  %v1294_v11 = vand.u32 2139095040, %v3270_v1  ;;  %vm837_vm6 = vcmp.gt.s32.totalorder %v836_v49, 0  ;;  %v3356_v13 = vshll.u32 %v5766_v41, %v3312_v46 }
  0xa5   :  { %5874 = vst [vmem:[#allocation12_spill] sm:$0xff] %v3270_v1  ;;  %v3328_v61 = vor.u32 %v233_v42, %v232_v32  ;;  %vm992_vm7 = vcmp.gt.s32.totalorder %v991_v52, 0  ;;  %v3364_v15 = vshll.u32 %v5766_v41, %v3315_v51  ;;  %v838_v16 = vsel %vm837_vm6, %v836_v49, 0 }
  0xa6   :  { %v1140_v17 = vshrl.u32 %v1139_v9, 23  ;;  %v1295_v18 = vshrl.u32 %v1294_v11, 23  ;;  %5882 = vst [vmem:[#allocation20_spill] sm:$0xff] %v3299_v43  ;;  %v3350_v9 = vshll.u32 %v5768_v28, %v3312_v46  ;;  %v3372_v32 = vshrl.u32 %v5764_v55, %v3341_v5 }
  0xa7   :  { %5885 = vst [vmem:[#allocation23_spill] sm:$0xff] %v3310_v45  ;;  %v3380_v42 = vand.u32 31, %v838_v16  ;;  %v5921_v19 = vmov 1326507024  }
  0xa8   :  { %v3004_v26 = vadd.s32 4294967169, %v1140_v17  ;;  %v3007_v36 = vadd.s32 4294967169, %v1295_v18  ;;  %5891 = vst [vmem:[#allocation29_spill] sm:$0xff] %v3328_v61  ;;  %v3368_v17 = vshrl.u32 %v5766_v41, %v3341_v5  ;;  %v993_v18 = vsel %vm992_vm7, %v991_v52, 0 }
  0xa9   :  { %v153_v6 = vpop.f32.mrf.mxu0  ;;  %v194_v7 = vpop.f32.mrf.mxu1  ;;  %5895 = vst [vmem:[#allocation33_spill] sm:$0xff] %v3341_v5  ;;  %v3382_v52 = vand.u32 31, %v993_v18  ;;  %v3399_v28 = vsub.s32 32, %v3380_v42 }
  0xaa   :  { %v3286_v23 = vadd.f32 %v153_v6, %v3248_v31  ;;  %v3289_v27 = vadd.f32 %v194_v7, %v3248_v31  ;;  %v3302_v31 = vsub.s32 32, %v3281_v20  ;;  %v1146_v53 = vadd.s32 1, %v3004_v26  ;;  %5898 = vst [vmem:[#allocation36_spill] sm:$0xff] %v3350_v9 }
  0xab   :  { %v1301_v57 = vadd.s32 1, %v3007_v36  ;;  %v3343_v6 = vshrl.u32 %v683_v35, 5  ;;  %v3346_v7 = vsub.s32 32, %v3315_v51  ;;  %5899 = vst [vmem:[#allocation37_spill] sm:$0xff] %v3356_v13 }
  0xac   :  { %5879 = vst [vmem:[#allocation17_spill] sm:$0xff] %v3286_v23  ;;  %v1449_v50 = vand.u32 2139095040, %v3286_v23  ;;  %v1604_v54 = vand.u32 2139095040, %v3289_v27  ;;  %v3332_v0 = vshrl.u32 %v5766_v41, %v3302_v31  ;;  %v3336_v3 = vshrl.u32 %v5764_v55, %v3302_v31 }
  0xad   :  { %5880 = vst [vmem:[#allocation18_spill] sm:$0xff] %v3289_v27  ;;  %vm1147_vm8 = vcmp.gt.s32.totalorder %v1146_v53, 0  ;;  %vm1302_vm9 = vcmp.gt.s32.totalorder %v1301_v57, 0  ;;  %v3376_v35 = vshrl.u32 %v5766_v41, %v3346_v7  ;;  %v3394_v41 = vshrl.u32 %v993_v18, 5 }
  0xae   :  { %5883 = vst [vmem:[#allocation21_spill] sm:$0xff] %v3302_v31  ;;  %v1605_v8 = vshrl.u32 %v1604_v54, 23  ;;  %v1148_v22 = vsel %vm1147_vm8, %v1146_v53, 0  ;;  %v1303_v36 = vsel %vm1302_vm9, %v1301_v57, 0  ;;  %v3410_v18 = vsub.s32 32, %v3382_v52 }
  0xaf   :  { %5892 = vst [vmem:[#allocation30_spill] sm:$0xff] %v3332_v0  ;;  %v3384_v53 = vand.u32 31, %v1148_v22  ;;  %v3392_v2 = vand.u32 31, %v1303_v36  ;;  %v3430_v12 = vshrl.u32 %v1148_v22, 5  ;;  %v5849_v27 = vmov 2131351028  }
  0xb0   :  { %5893 = vst [vmem:[#allocation31_spill] sm:$0xff] %v3336_v3 }
  0xb1   :  { %v156_v37 = vpop.f32.mrf.mxu0  ;;  %v197_v39 = vpop.f32.mrf.mxu1  ;;  %5896 = vst [vmem:[#allocation34_spill] sm:$0xff] %v3343_v6  ;;  %v3416_v20 = vsub.s32 32, %v3392_v2 }
  0xb2   :  { %v3323_v58 = vadd.f32 %v156_v37, %v3244_v29  ;;  %v3326_v59 = vadd.f32 %v197_v39, %v3244_v29  ;;  %v1450_v29 = vshrl.u32 %v1449_v50, 23  ;;  %5897 = vst [vmem:[#allocation35_spill] sm:$0xff] %v3346_v7  ;;  %v3013_v37 = vadd.s32 4294967169, %v1605_v8 }
  0xb3   :  { %5900 = vst [vmem:[#allocation38_spill] sm:$0xff] %v3360_v14  ;;  %v3378_v39 = vshrl.u32 %v838_v16, 5 }
  0xb4   :  { %5889 = vst [vmem:[#allocation27_spill] sm:$0xff] %v3323_v58  ;;  %v1759_v10 = vand.u32 2139095040, %v3323_v58  ;;  %v1914_v11 = vand.u32 2139095040, %v3326_v59  ;;  %v3010_v24 = vadd.s32 4294967169, %v1450_v29  ;;  %v1611_v16 = vadd.s32 1, %v3013_v37 }
  0xb5   :  { %5890 = vst [vmem:[#allocation28_spill] sm:$0xff] %v3326_v59  ;;  %v3413_v37 = vsub.s32 32, %v3384_v53  ;;  %v5951_v58 = vmov 2131351028  }
  0xb6   :  { %5901 = vst [vmem:[#allocation39_spill] sm:$0xff] %v3364_v15  ;;  %v1760_v49 = vshrl.u32 %v1759_v10, 23  ;;  %v1915_v50 = vshrl.u32 %v1914_v11, 23  ;;  %v1456_v57 = vadd.s32 1, %v3010_v24  ;;  %v5914_v24 = vmov 920167782  }
  0xb7   :  { %5902 = vst [vmem:[#allocation40_spill] sm:$0xff] %v3368_v17  ;;  %vm1612_vm13 = vcmp.gt.s32.totalorder %v1611_v16, 0  ;;  %v3424_v33 = vshrl.u32 %v5914_v24, %v3399_v28  ;;  %v3438_v44 = vshrl.u32 %v5921_v19, %v3413_v37  ;;  %v1318_v56 = vshrl.u32 %v5914_v24, %v3416_v20 }
  0xb8   :  { %5903 = vst [vmem:[#allocation41_spill] sm:$0xff] %v3372_v32  ;;  %v3016_v8 = vadd.s32 4294967169, %v1760_v49  ;;  %v3019_v55 = vadd.s32 4294967169, %v1915_v50  ;;  %v3407_v49 = vshll.u32 %v5914_v24, %v3380_v42  ;;  %vm1457_vm10 = vcmp.gt.s32.totalorder %v1456_v57, 0 }
  0xb9   :  { %v159_v25 = vpop.f32.mrf.mxu0  ;;  %v200_v26 = vpop.f32.mrf.mxu1  ;;  %5904 = vst [vmem:[#allocation42_spill] sm:$0xff] %v3376_v35  ;;  %v1613_v22 = vsel %vm1612_vm13, %v1611_v16, 0 }
  0xba   :  { %5905 = vst [vmem:[#allocation43_spill] sm:$0xff] %v3378_v39  ;;  %v3387_v54 = vadd.f32 %v159_v25, %v3250_v34  ;;  %v3390_v29 = vadd.f32 %v200_v26, %v3250_v34  ;;  %v5912_v25 = vmov 2102212464   ;;  %v1766_v34 = vadd.s32 1, %v3016_v8 }
  0xbb   :  { %5906 = vst [vmem:[#allocation44_spill] sm:$0xff] %v3380_v42  ;;  %v3403_v31 = vshll.u32 %v5912_v25, %v3380_v42  ;;  %v1921_v26 = vadd.s32 1, %v3019_v55  ;;  %v3420_v55 = vshll.u32 %v5912_v25, %v3382_v52  ;;  %v1162_v61 = vshll.u32 %v5912_v25, %v3384_v53 }
  0xbc   :  { %5907 = vst [vmem:[#allocation45_spill] sm:$0xff] %v3382_v52  ;;  %v2069_v10 = vand.u32 2139095040, %v3387_v54  ;;  %v2224_v11 = vand.u32 2139095040, %v3390_v29  ;;  %vm1767_vm11 = vcmp.gt.s32.totalorder %v1766_v34, 0  ;;  %v3476_v35 = vand.u32 31, %v1613_v22 }
  0xbd   :  { %5908 = vst [vmem:[#allocation46_spill] sm:$0xff] %v3384_v53  ;;  %vm1922_vm12 = vcmp.gt.s32.totalorder %v1921_v26, 0  ;;  %v1768_v38 = vsel %vm1767_vm11, %v1766_v34, 0  ;;  %v3488_v47 = vshrl.u32 %v1613_v22, 5 }
  0xbe   :  { %5909 = vst [vmem:[#allocation47_spill] sm:$0xff] %v3392_v2  ;;  %v2070_v50 = vshrl.u32 %v2069_v10, 23  ;;  %v2225_v40 = vshrl.u32 %v2224_v11, 23  ;;  %v3428_v10 = vshrl.u32 %v5921_v19, %v3399_v28  ;;  %v1458_v11 = vsel %vm1457_vm10, %v1456_v57, 0 }
  0xbf   :  { %5910 = vst [vmem:[#allocation48_spill] sm:$0xff] %v3394_v41  ;;  %v1923_v0 = vsel %vm1922_vm12, %v1921_v26, 0  ;;  %v3442_v34 = vand.u32 31, %v1768_v38  ;;  %v3452_v57 = vshll.u32 %v5914_v24, %v3384_v53  ;;  %v1317_v26 = vshll.u32 %v5912_v25, %v3392_v2 }
  0xc0   :  { %5911 = vst [vmem:[#allocation49_spill] sm:$0xff] %v3399_v28  ;;  %v3022_v8 = vadd.s32 4294967169, %v2070_v50  ;;  %v1163_v50 = vshrl.u32 %v5914_v24, %v3413_v37  ;;  %v3025_v21 = vadd.s32 4294967169, %v2225_v40  ;;  %v3456_v6 = vand.u32 31, %v1458_v11 }
  0xc1   :  { %5913 = vst [vmem:[#allocation50_spill] sm:$0xff] %v3403_v31  ;;  %v162_v3 = vpop.f32.mrf.mxu0  ;;  %v203_v45 = vpop.f32.mrf.mxu1  ;;  %v3458_v16 = vand.u32 31, %v1923_v0  ;;  %v3462_v40 = vshrl.u32 %v1303_v36, 5  ;;  %v3474_v15 = vor.u32 %v1318_v56, %v1317_v26  ;;  %v3483_v5 = vshrl.u32 %v1458_v11, 5 }
  0xc2   :  { %5915 = vst [vmem:[#allocation51_spill] sm:$0xff] %v3407_v49  ;;  %v2076_v43 = vadd.s32 1, %v3022_v8  ;;  %v3445_v51 = vadd.f32 %v162_v3, %v3246_v30  ;;  %v3448_v48 = vadd.f32 %v203_v45, %v3246_v30  ;;  %v3460_v8 = vor.u32 %v1163_v50, %v1162_v61 }
  0xc3   :  { %5916 = vst [vmem:[#allocation52_spill] sm:$0xff] %v3410_v18  ;;  %v3466_v3 = vshll.u32 %v5914_v24, %v3392_v2  ;;  %v3470_v30 = vshrl.u32 %v5921_v19, %v3416_v20  ;;  %v3479_v61 = vsub.s32 32, %v3442_v34  ;;  %v2231_v36 = vadd.s32 1, %v3025_v21 }
  0xc4   :  { %5917 = vst [vmem:[#allocation53_spill] sm:$0xff] %v3413_v37  ;;  %vm2077_vm14 = vcmp.gt.s32.totalorder %v2076_v43, 0  ;;  %v2379_v50 = vand.u32 2139095040, %v3445_v51  ;;  %v2534_v14 = vand.u32 2139095040, %v3448_v48  ;;  %v3486_v46 = vsub.s32 32, %v3456_v6 }
  0xc5   :  { %5918 = vst [vmem:[#allocation54_spill] sm:$0xff] %v3416_v20  ;;  %v3491_v56 = vsub.s32 32, %v3458_v16  ;;  %v3495_v26 = vshll.u32 %v5912_v25, %v3456_v6  ;;  %v3499_v21 = vshll.u32 %v5914_v24, %v3456_v6  ;;  %v3501_v45 = vshrl.u32 %v1768_v38, 5 }
  0xc6   :  { %5919 = vst [vmem:[#allocation55_spill] sm:$0xff] %v3420_v55  ;;  %v2078_v11 = vsel %vm2077_vm14, %v2076_v43, 0  ;;  %v3504_v7 = vsub.s32 32, %v3476_v35  ;;  %v3508_v22 = vshll.u32 %v5914_v24, %v3476_v35  ;;  %v1782_v32 = vshll.u32 %v5912_v25, %v3442_v34 }
  0xc7   :  { %5920 = vst [vmem:[#allocation56_spill] sm:$0xff] %v3424_v33  ;;  %v3512_v13 = vshrl.u32 %v1923_v0, 5  ;;  %v1783_v17 = vshrl.u32 %v5914_v24, %v3479_v61  ;;  %vm2232_vm15 = vcmp.gt.s32.totalorder %v2231_v36, 0  ;;  %v2380_v9 = vshrl.u32 %v2379_v50, 23 }
  0xc8   :  { %5922 = vst [vmem:[#allocation57_spill] sm:$0xff] %v3428_v10  ;;  %v2535_v38 = vshrl.u32 %v2534_v14, 23  ;;  %v3518_v43 = vshll.u32 %v5914_v24, %v3442_v34  ;;  %v3522_v4 = vshrl.u32 %v5921_v19, %v3479_v61  ;;  %v1938_v62 = vshrl.u32 %v5914_v24, %v3491_v56 }
  0xc9   :  { %5923 = vst [vmem:[#allocation58_spill] sm:$0xff] %v3430_v12  ;;  %v3526_v41 = vand.u32 31, %v2078_v11  ;;  %vm1791_vm0 = vcmp.lt.s32.totalorder %v3501_v45, 4  ;;  %v3028_v0 = vadd.s32 4294967169, %v2380_v9  ;;  %v5818_v50 = vand.u32 2147483647, %v3445_v51 }
  0xca   :  { %5924 = vst [vmem:[#allocation59_spill] sm:$0xff] %v3438_v44  ;;  %v3031_v55 = vadd.s32 4294967169, %v2535_v38  ;;  %v1937_v14 = vshll.u32 %v5912_v25, %v3458_v16  ;;  %v3534_v28 = vshll.u32 %v5914_v24, %v3458_v16  ;;  %v3538_v42 = vshrl.u32 %v5921_v19, %v3491_v56 }
  0xcb   :  { %5925 = vst [vmem:[#allocation60_spill] sm:$0xff] %v3442_v34  ;;  %v2233_v60 = vsel %vm2232_vm15, %v2231_v36, 0  ;;  %v3540_v52 = vor.u32 %v1783_v17, %v1782_v32  ;;  %v2386_v18 = vadd.s32 1, %v3028_v0  ;;  %v2383_v9 = vand.u32 8388607, %v5818_v50 }
  0xcc   :  { %5926 = vst [vmem:[#allocation61_spill] sm:$0xff] %v3452_v57  ;;  %v2541_v10 = vadd.s32 1, %v3031_v55  ;;  %v3546_v49 = vor.u32 %v1938_v62, %v1937_v14  ;;  %v3548_v39 = vshrl.u32 %v2078_v11, 5  ;;  %v3551_v20 = vsub.s32 32, %v3526_v41 }
  0xcd   :  { %5927 = vst [vmem:[#allocation62_spill] sm:$0xff] %v3456_v6  ;;  %v3553_v2 = vand.u32 31, %v2233_v60  ;;  %vm2387_vm1 = vcmp.gt.s32.totalorder %v2386_v18, 0  ;;  %v2384_v0 = vor.u32 8388608, %v2383_v9  ;;  %v3558_v38 = vshrl.u32 %v2233_v60, 5 }
  0xce   :  { %5928 = vst [vmem:[#allocation63_spill] sm:$0xff] %v3458_v16  ;;  %vm2542_vm2 = vcmp.gt.s32.totalorder %v2541_v10, 0  ;;  %v2388_v55 = vsel %vm2387_vm1, %v2386_v18, 0  ;;  %v3567_v50 = vsel %vm1791_vm0, %v3540_v52, 920167782  ;;  %v3571_v17 = vshll.u32 %v5912_v25, %v3526_v41 }
  0xcf   :  { %5929 = vst [vmem:[#allocation64_spill] sm:$0xff] %v3460_v8  ;;  %v2543_v36 = vsel %vm2542_vm2, %v2541_v10, 0  ;;  %v3560_v62 = vshrl.u32 %v2388_v55, 5  ;;  %v2390_v11 = vand.u32 31, %v2388_v55  ;;  %v3575_v18 = vshrl.u32 %v5914_v24, %v3551_v20 }
  0xd0   :  { %5930 = vst [vmem:[#allocation65_spill] sm:$0xff] %v3462_v40  ;;  %v3562_v14 = vand.u32 31, %v2543_v36  ;;  %v3579_v60 = vshll.u32 %v5914_v24, %v3526_v41  ;;  %v3583_v10 = vshrl.u32 %v5921_v19, %v3551_v20  ;;  %v3586_v9 = vsub.s32 32, %v3553_v2 }
  0xd1   :  { %5931 = vst [vmem:[#allocation66_spill] sm:$0xff] %v3466_v3  ;;  %v2391_v55 = vsub.s32 32, %v2390_v11  ;;  %v5947_v32 = vand.u32 2147483647, %v3448_v48  ;;  %v2402_v33 = vshll.u32 %v5912_v25, %v2390_v11  ;;  %v3593_v31 = vshrl.u32 %v2543_v36, 5 }
  0xd2   :  { %5932 = vst [vmem:[#allocation67_spill] sm:$0xff] %v3470_v30  ;;  %v3598_v40 = vshll.u32 %v2384_v0, 8  ;;  %v2405_v53 = vshll.u32 %v5914_v24, %v2390_v11  ;;  %vm2411_vm3 = vcmp.lt.s32.totalorder %v3560_v62, 4  ;;  %v5844_v57 = vmov 683565275  }
  0xd3   :  { %5933 = vst [vmem:[#allocation68_spill] sm:$0xff] %v3474_v15  ;;  %v3590_v1 = vand.u32 8388607, %v5947_v32  ;;  %v3596_v15 = vsub.s32 32, %v3562_v14  ;;  %v2403_v37 = vshrl.u32 %v5914_v24, %v2391_v55  ;;  %v2406_v63 = vshrl.u32 %v5921_v19, %v2391_v55 }
  0xd4   :  { %5934 = vst [vmem:[#allocation69_spill] sm:$0xff] %v3476_v35  ;;  %v2393_v44 = vshll.u32 %v5844_v57, %v2390_v11  ;;  %v5846_v8 = vmov 2475754826   ;;  %v2399_v6 = vshll.u32 %v5849_v27, %v2390_v11  ;;  %v2400_v23 = vshrl.u32 %v5912_v25, %v2391_v55 }
  0xd5   :  { %5935 = vst [vmem:[#allocation70_spill] sm:$0xff] %v3479_v61  ;;  %v2558_v32 = vshrl.u32 %v5914_v24, %v3596_v15  ;;  %v2561_v36 = vshrl.u32 %v5921_v19, %v3596_v15  ;;  %v2394_v0 = vshrl.u32 %v5846_v8, %v2391_v55  ;;  %v2404_v30 = vor.u32 %v2403_v37, %v2402_v33 }
  0xd6   :  { %5936 = vst [vmem:[#allocation71_spill] sm:$0xff] %v3483_v5  ;;  %v2407_v3 = vor.u32 %v2406_v63, %v2405_v53  ;;  %v2396_v12 = vshll.u32 %v5846_v8, %v2390_v11  ;;  %v2560_v63 = vshll.u32 %v5914_v24, %v3562_v14  ;;  %vm2566_vm4 = vcmp.lt.s32.totalorder %v3593_v31, 4 }
  0xd7   :  { %5937 = vst [vmem:[#allocation72_spill] sm:$0xff] %v3486_v46  ;;  %v2395_v35 = vor.u32 %v2394_v0, %v2393_v44  ;;  %v2417_v57 = vsel %vm2411_vm3, %v2404_v30, 920167782  ;;  %v5948_v37 = vmov 683565275   ;;  %vm2408_vm5 = vcmp.lt.s32.totalorder %v3560_v62, 1 }
  0xd8   :  { %5938 = vst [vmem:[#allocation73_spill] sm:$0xff] %v3488_v47  ;;  %v2397_v47 = vshrl.u32 %v5849_v27, %v2391_v55  ;;  %v2421_v33 = vsel %vm2411_vm3, %v2407_v3, 1326507024  ;;  %v2392_v8 = vshrl.u32 %v5948_v37, %v2391_v55  ;;  %v2562_v11 = vor.u32 %v2561_v36, %v2560_v63 }
  0xd9   :  { %5939 = vst [vmem:[#allocation74_spill] sm:$0xff] %v3491_v56  ;;  %vm2410_vm6 = vcmp.lt.s32.totalorder %v3560_v62, 3  ;;  %vm2409_vm7 = vcmp.lt.s32.totalorder %v3560_v62, 2  ;;  %v2425_v55 = vand.u32 65535, %v3598_v40  ;;  %v3647_v27 = vshll.u32 %v5912_v25, %v3553_v2 }
  0xda   :  { %5940 = vst [vmem:[#allocation75_spill] sm:$0xff] %v3495_v26  ;;  %v2398_v53 = vor.u32 %v2397_v47, %v2396_v12  ;;  %v2548_v5 = vshll.u32 %v5948_v37, %v3562_v14  ;;  %vm2101_vm12 = vcmp.lt.s32.totalorder %v3548_v39, 4  ;;  %vm2563_vm13 = vcmp.lt.s32.totalorder %v3593_v31, 1 }
  0xdb   :  { %5941 = vst [vmem:[#allocation76_spill] sm:$0xff] %v3499_v21  ;;  %vm2565_vm14 = vcmp.lt.s32.totalorder %v3593_v31, 3  ;;  %vm2564_vm15 = vcmp.lt.s32.totalorder %v3593_v31, 2  ;;  %v3705_v62 = vor.u32 %v3575_v18, %v3571_v17 }
  0xdc   :  { %5942 = vst [vmem:[#allocation77_spill] sm:$0xff] %v3504_v7  ;;  %v2401_v7 = vor.u32 %v2400_v23, %v2399_v6  ;;  %v2416_v0 = vsel %vm2408_vm5, %v2395_v35, %v2398_v53  ;;  %v2422_v23 = vsel %vm2410_vm6, %v2404_v30, %v2421_v33  ;;  %v2539_v33 = vor.u32 8388608, %v3590_v1 }
  0xdd   :  { %5943 = vst [vmem:[#allocation78_spill] sm:$0xff] %v3508_v22  ;;  %v2557_v22 = vshll.u32 %v5912_v25, %v3562_v14 }
  0xde   :  { %5944 = vst [vmem:[#allocation79_spill] sm:$0xff] %v3534_v28  ;;  %v2418_v47 = vsel %vm2410_vm6, %v2401_v7, %v2417_v57  ;;  %v2420_v12 = vsel %vm2408_vm5, %v2398_v53, %v2401_v7  ;;  %v2413_v6 = vsel %vm2411_vm3, %v2401_v7, 2102212464 }
  0xdf   :  { %5945 = vst [vmem:[#allocation80_spill] sm:$0xff] %v3540_v52  ;;  %v3625_v44 = vor.u32 %v2558_v32, %v2557_v22  ;;  %v2419_v3 = vsel %vm2409_vm7, %v2416_v0, %v2418_v47  ;;  %v2423_v22 = vsel %vm2409_vm7, %v2420_v12, %v2422_v23  ;;  %v2426_v32 = vshrl.u32 %v3598_v40, 16 }
  0xe0   :  { %5946 = vst [vmem:[#allocation81_spill] sm:$0xff] %v3567_v50  ;;  %v2427_v57 = vand.u32 65535, %v2423_v22  ;;  %v2428_v36 = vshrl.u32 %v2423_v22, 16  ;;  %v2449_v63 = vand.u32 65535, %v2419_v3  ;;  %v2450_v30 = vshrl.u32 %v2419_v3, 16 }
  0xe1   :  { %v2572_v7 = vsel %vm2566_vm4, %v3625_v44, 920167782  ;;  %v2576_v0 = vsel %vm2566_vm4, %v2562_v11, 1326507024  ;;  %v2412_v47 = vsel %vm2408_vm5, %v2392_v8, %v2395_v35  ;;  %v2414_v22 = vsel %vm2410_vm6, %v2398_v53, %v2413_v6 }
  0xe2   :  { %v2430_v12 = vmul.u32 %v2428_v36, %v2425_v55  ;;  %v2431_v23 = vmul.u32 %v2427_v57, %v2426_v32  ;;  %v2452_v21 = vmul.u32 %v2450_v30, %v2425_v55  ;;  %v2453_v26 = vmul.u32 %v2449_v63, %v2426_v32 }
  0xe3   :  { %v2429_v16 = vmul.u32 %v2427_v57, %v2425_v55  ;;  %v2432_v3 = vmul.u32 %v2428_v36, %v2426_v32  ;;  %v2451_v1 = vmul.u32 %v2449_v63, %v2425_v55  ;;  %v2454_v11 = vmul.u32 %v2450_v30, %v2426_v32 }
  0xe4   :  { %v2433_v56 = vshll.u32 %v2430_v12, 16  ;;  %v2434_v59 = vshrl.u32 %v2430_v12, 16  ;;  %v2435_v46 = vshll.u32 %v2431_v23, 16  ;;  %v2455_v50 = vshll.u32 %v2452_v21, 16 }
  0xe5   :  { %v2457_v8 = vshll.u32 %v2453_v26, 16  ;;  %v5949_v52 = vmov 2475754826   ;;  %v5950_v53 = vmov 0   ;;  %v2552_v57 = vshrl.u32 %v5951_v58, %v3596_v15 }
  0xe6   :  { %vm2437_vm8 = vc.u32 %v2429_v16, %v2433_v56  ;;  %v2439_v35 = vadd.s32 %v2433_v56, %v2429_v16  ;;  %v2549_v34 = vshrl.u32 %v5949_v52, %v3596_v15  ;;  %vm2459_vm9 = vc.u32 %v2451_v1, %v2455_v50 }
  0xe7   :  { %v2438_v6 = vsel %vm2437_vm8, 1, %v5950_v53  ;;  %v2461_v61 = vadd.s32 %v2455_v50, %v2451_v1  ;;  %v2460_v55 = vsel %vm2459_vm9, 1, %v5950_v53  ;;  %v2551_v32 = vshll.u32 %v5949_v52, %v3562_v14 }
  0xe8   :  { %v2440_v36 = vadd.s32 %v2438_v6, %v2432_v3  ;;  %vm2441_vm10 = vc.u32 %v2439_v35, %v2435_v46  ;;  %v2462_v56 = vadd.s32 %v2460_v55, %v2454_v11  ;;  %v3670_v63 = vor.u32 %v2549_v34, %v2548_v5 }
  0xe9   :  { %v2442_v16 = vsel %vm2441_vm10, 1, %v5950_v53  ;;  %vm2463_vm11 = vc.u32 %v2461_v61, %v2457_v8  ;;  %v2436_v30 = vshrl.u32 %v2431_v23, 16  ;;  %v3673_v1 = vor.u32 %v2552_v57, %v2551_v32 }
  0xea   :  { %v2444_v12 = vadd.s32 %v2442_v16, %v2440_v36  ;;  %v2464_v50 = vsel %vm2463_vm11, 1, %v5950_v53  ;;  %v2456_v28 = vshrl.u32 %v2452_v21, 16  ;;  %v2554_v46 = vshll.u32 %v5951_v58, %v3562_v14 }
  0xeb   :  { %v2466_v3 = vadd.s32 %v2464_v50, %v2462_v56  ;;  %v2555_v35 = vshrl.u32 %v5912_v25, %v3596_v15  ;;  %v2458_v6 = vshrl.u32 %v2453_v26, 16  ;;  %v2571_v21 = vsel %vm2563_vm13, %v3670_v63, %v3673_v1 }
  0xec   :  { %v2445_v11 = vadd.s32 %v2444_v12, %v2434_v59  ;;  %v3686_v23 = vshll.u32 %v2539_v33, 8  ;;  %v2415_v14 = vsel %vm2409_vm7, %v2412_v47, %v2414_v22  ;;  %v3692_v59 = vadd.s32 %v2461_v61, %v2457_v8 }
  0xed   :  { %v2467_v5 = vadd.s32 %v2466_v3, %v2456_v28  ;;  %v2556_v34 = vor.u32 %v2555_v35, %v2554_v46  ;;  %v2577_v26 = vsel %vm2565_vm14, %v3625_v44, %v2576_v0  ;;  %v2097_v61 = vor.u32 %v3583_v10, %v3579_v60 }
  0xee   :  { %v3690_v57 = vadd.s32 %v2445_v11, %v2436_v30  ;;  %v2469_v0 = vmul.u32 %v3598_v40, %v2415_v14  ;;  %v2580_v22 = vand.u32 65535, %v3686_v23  ;;  %v2581_v17 = vshrl.u32 %v3686_v23, 16 }
  0xef   :  { %v2468_v28 = vadd.s32 %v2467_v5, %v2458_v6  ;;  %v2573_v36 = vsel %vm2565_vm14, %v2556_v34, %v2572_v7  ;;  %v2575_v33 = vsel %vm2563_vm13, %v3673_v1, %v2556_v34  ;;  %v3720_v60 = vshrl.u32 %v5914_v24, %v3586_v9 }
  0xf0   :  { %vm2471_vm1 = vc.u32 %v3690_v57, %v3692_v59  ;;  %v2574_v44 = vsel %vm2564_vm15, %v2571_v21, %v2573_v36  ;;  %v2578_v47 = vsel %vm2564_vm15, %v2575_v33, %v2577_v26  ;;  %v3724_v10 = vshll.u32 %v5914_v24, %v3553_v2 }
  0xf1   :  { %v2472_v7 = vadd.s32 1, %v2468_v28  ;;  %v2582_v18 = vand.u32 65535, %v2578_v47  ;;  %v2583_v8 = vshrl.u32 %v2578_v47, 16  ;;  %v2604_v55 = vand.u32 65535, %v2574_v44 }
  0xf2   :  { %v2605_v32 = vshrl.u32 %v2574_v44, 16  ;;  %v3728_v16 = vshrl.u32 %v5921_v19, %v3586_v9  ;;  %v3733_v50 = vsel %vm2101_vm12, %v3705_v62, 920167782  ;;  %v3737_v3 = vsel %vm2101_vm12, %v2097_v61, 1326507024 }
  0xf3   :  { %v2473_v40 = vsel %vm2471_vm1, %v2472_v7, %v2468_v28  ;;  %v2585_v30 = vmul.u32 %v2583_v8, %v2580_v22  ;;  %v2586_v12 = vmul.u32 %v2582_v18, %v2581_v17  ;;  %v2608_v35 = vmul.u32 %v2604_v55, %v2581_v17 }
  0xf4   :  { %v2474_v56 = vadd.s32 %v2473_v40, %v2469_v0  ;;  %v2607_v46 = vmul.u32 %v2605_v32, %v2580_v22  ;;  %v2584_v6 = vmul.u32 %v2582_v18, %v2580_v22  ;;  %v2568_v14 = vsel %vm2566_vm4, %v2556_v34, 2102212464 }
  0xf5   :  { %v2588_v5 = vshll.u32 %v2585_v30, 16  ;;  %v2587_v26 = vmul.u32 %v2583_v8, %v2581_v17  ;;  %v2606_v28 = vmul.u32 %v2604_v55, %v2580_v22  ;;  %v2590_v44 = vshll.u32 %v2586_v12, 16 }
  0xf6   :  { %v2475_v11 = vadd.s32 536870912, %v2474_v56  ;;  %v2610_v36 = vshll.u32 %v2607_v46, 16  ;;  %v2612_v7 = vshll.u32 %v2608_v35, 16  ;;  %v2609_v21 = vmul.u32 %v2605_v32, %v2581_v17 }
  0xf7   :  { %vm2592_vm2 = vc.u32 %v2584_v6, %v2588_v5  ;;  %v2594_v0 = vadd.s32 %v2588_v5, %v2584_v6  ;;  %v2547_v34 = vshrl.u32 %v5948_v37, %v3596_v15  ;;  %v2569_v17 = vsel %vm2565_vm14, %v3673_v1, %v2568_v14 }
  0xf8   :  { %v3742_v33 = vshrl.u32 %v2475_v11, 30  ;;  %v2593_v61 = vsel %vm2592_vm2, 1, %v5950_v53  ;;  %vm2614_vm3 = vc.u32 %v2606_v28, %v2610_v36  ;;  %v2616_v47 = vadd.s32 %v2610_v36, %v2606_v28 }
  0xf9   :  { %v2595_v40 = vadd.s32 %v2593_v61, %v2587_v26  ;;  %vm2596_vm5 = vc.u32 %v2594_v0, %v2590_v44  ;;  %v2615_v8 = vsel %vm2614_vm3, 1, %v5950_v53  ;;  %v2589_v11 = vshrl.u32 %v2585_v30, 16 }
  0xfa   :  { %v2477_v18 = vshll.u32 %v3742_v33, 30  ;;  %v2597_v22 = vsel %vm2596_vm5, 1, %v5950_v53  ;;  %vm2618_vm4 = vc.u32 %v2616_v47, %v2612_v7  ;;  %v2617_v5 = vadd.s32 %v2615_v8, %v2609_v21 }
  0xfb   :  { %v2599_v6 = vadd.s32 %v2597_v22, %v2595_v40  ;;  %v2567_v28 = vsel %vm2563_vm13, %v2547_v34, %v3670_v63  ;;  %v2619_v15 = vsel %vm2618_vm4, 1, %v5950_v53  ;;  %v5952_v32 = vand.u32 2147483647, %v3387_v54 }
  0xfc   :  { %v3750_v55 = vsub.s32 %v2474_v56, %v2477_v18  ;;  %v2591_v30 = vshrl.u32 %v2586_v12, 16  ;;  %vm2378_vm7 = vcmp.lt.s32.totalorder %v3445_v51, 0  ;;  %v2611_v21 = vshrl.u32 %v2607_v46, 16 }
  0xfd   :  { %v2073_v26 = vand.u32 8388607, %v5952_v32  ;;  %v2600_v36 = vadd.s32 %v2599_v6, %v2589_v11  ;;  %v2621_v44 = vadd.s32 %v2619_v15, %v2617_v5  ;;  %v2084_v63 = vshrl.u32 %v5949_v52, %v3551_v20 }
  0xfe   :  { %vm2479_vm6 = vcmp.lt.s32.totalorder %v3750_v55, 0  ;;  %v2480_v56 = vsub.s32 0, %v3750_v55  ;;  %v2087_v1 = vshrl.u32 %v5951_v58, %v3551_v20  ;;  %v2083_v61 = vshll.u32 %v5948_v37, %v3526_v41 }
  0xff   :  { %v3769_v0 = vadd.s32 %v2600_v36, %v2591_v30  ;;  %v2086_v12 = vshll.u32 %v5949_v52, %v3526_v41  ;;  %v2570_v46 = vsel %vm2564_vm15, %v2567_v28, %v2569_v17  ;;  %v2613_v40 = vshrl.u32 %v2608_v35, 16 }
 0x100   :  { %v2481_v14 = vsel %vm2479_vm6, %v2480_v56, %v3750_v55  ;;  %v2622_v34 = vadd.s32 %v2621_v44, %v2611_v21  ;;  %v3777_v22 = vadd.s32 %v2616_v47, %v2612_v7  ;;  %v2074_v8 = vor.u32 8388608, %v2073_v26 }
 0x101   :  { %v2482_v18 = vclz %v2481_v14  ;;  %v3779_v11 = vor.u32 %v2084_v63, %v2083_v61  ;;  %v3781_v6 = vor.u32 %v2087_v1, %v2086_v12  ;;  %v2089_v32 = vshll.u32 %v5951_v58, %v3526_v41 }
 0x102   :  { %v2623_v15 = vadd.s32 %v2622_v34, %v2613_v40  ;;  %v2090_v56 = vshrl.u32 %v5912_v25, %v3551_v20  ;;  %v2470_v31 = vadd.s32 %v3692_v59, %v3690_v57  ;;  %v2500_v35 = vsub.s32 4, %v3742_v33 }
 0x103   :  { %v3029_v5 = vadd.s32 4294967294, %v2482_v18  ;;  %v2624_v7 = vmul.u32 %v3686_v23, %v2570_v46  ;;  %vm2626_vm8 = vc.u32 %v3769_v0, %v3777_v22  ;;  %vm2098_vm10 = vcmp.lt.s32.totalorder %v3548_v39, 1 }
 0x104   :  { %v2627_v47 = vadd.s32 1, %v2623_v15  ;;  %v2091_v28 = vor.u32 %v2090_v56, %v2089_v32  ;;  %vm2100_vm11 = vcmp.lt.s32.totalorder %v3548_v39, 3  ;;  %v2106_v41 = vsel %vm2098_vm10, %v3779_v11, %v3781_v6 }
 0x105   :  { %vm3030_vm9 = vcmp.lt.s32.totalorder %v3029_v5, 0  ;;  %v3799_v57 = vshll.u32 %v2074_v8, 8  ;;  %v2112_v30 = vsel %vm2100_vm11, %v3705_v62, %v3737_v3  ;;  %v2501_v36 = vsel %vm2378_vm7, %v2500_v35, %v3742_v33 }
 0x106   :  { %v2485_v17 = vsel %vm3030_vm9, 0, %v3029_v5  ;;  %v2628_v26 = vsel %vm2626_vm8, %v2627_v47, %v2623_v15  ;;  %v2108_v44 = vsel %vm2100_vm11, %v2091_v28, %v3733_v50  ;;  %v2110_v63 = vsel %vm2098_vm10, %v3781_v6, %v2091_v28 }
 0x107   :  { %v2486_v59 = vsub.s32 32, %v2485_v17  ;;  %v2490_v23 = vsub.s32 4294967266, %v2485_v17  ;;  %v2629_v21 = vadd.s32 %v2628_v26, %v2624_v7  ;;  %v2487_v1 = vshll.u32 %v3750_v55, %v2485_v17 }
 0x108   :  { %vm2099_vm13 = vcmp.lt.s32.totalorder %v3548_v39, 2  ;;  %v2115_v50 = vand.u32 65535, %v3799_v57  ;;  %vm2256_vm14 = vcmp.lt.s32.totalorder %v3558_v38, 4  ;;  %v3826_v40 = vor.u32 %v3720_v60, %v3647_v27 }
 0x109   :  { %v2488_v14 = vshrl.u32 %v2470_v31, %v2486_v59  ;;  %v2491_v61 = vadd.s32 127, %v2490_v23  ;;  %v2630_v62 = vadd.s32 536870912, %v2629_v21  ;;  %v3818_v3 = vsel %vm2099_vm13, %v2106_v41, %v2108_v44 }
 0x10a   :  { %v2113_v33 = vsel %vm2099_vm13, %v2110_v63, %v2112_v30  ;;  %v5953_v34 = vand.u32 2147483647, %v3445_v51  ;;  %v2116_v15 = vshrl.u32 %v3799_v57, 16  ;;  %v2252_v32 = vor.u32 %v3728_v16, %v3724_v10 }
 0x10b   :  { %v2489_v12 = vor.u32 %v2488_v14, %v2487_v1  ;;  %v2492_v18 = vshll.u32 %v2491_v61, 23  ;;  %v2117_v46 = vand.u32 65535, %v2113_v33  ;;  %v2118_v55 = vshrl.u32 %v2113_v33, 16 }
 0x10c   :  { %vm3830_vm15 = vcmp.le.f32.partialorder %v5953_v34, 0.7853982  ;;  %v3834_v5 = vshrl.u32 %v2630_v62, 30  ;;  %v2082_v60 = vshrl.u32 %v5948_v37, %v3551_v20  ;;  %v2140_v47 = vshrl.u32 %v3818_v3, 16 }
 0x10d   :  { %v2493_v56 = vor.u32 4788187, %v2492_v18  ;;  %v2503_v31 = vsel %vm3830_vm15, 0, %v2501_v36  ;;  %v2120_v35 = vmul.u32 %v2118_v55, %v2115_v50  ;;  %v3844_v7 = vmul.u32 %v2117_v46, %v2116_v15 }
 0x10e   :  { %v2632_v27 = vshll.u32 %v3834_v5, 30  ;;  %v2496_v41 = vcvt.s32.f32 %v2489_v12  ;;  %v2119_v59 = vmul.u32 %v2117_v46, %v2115_v50  ;;  %v2520_v26 = vadd.s32 3, %v2503_v31 }
 0x10f   :  { %v2494_v17 = vand.u32 2147483647, %v2493_v56  ;;  %v2123_v23 = vshll.u32 %v2120_v35, 16  ;;  %v2103_v16 = vsel %vm2101_vm12, %v2091_v28, 2102212464  ;;  %v2122_v30 = vmul.u32 %v2118_v55, %v2116_v15 }
 0x110   :  { %v3847_v10 = vsub.s32 %v2629_v21, %v2632_v27  ;;  %v2125_v44 = vshll.u32 %v3844_v7, 16  ;;  %v2139_v14 = vand.u32 65535, %v3818_v3  ;;  %v2142_v62 = vmul.u32 %v2140_v47, %v2115_v50 }
 0x111   :  { %v2497_v36 = vmul.f32 %v2496_v41, %v2494_v17  ;;  %vm2127_vm1 = vc.u32 %v2119_v59, %v2123_v23  ;;  %v2129_v20 = vadd.s32 %v2123_v23, %v2119_v59  ;;  %v3859_v28 = vsel %vm2256_vm14, %v3826_v40, 920167782 }
 0x112   :  { %vm2634_vm2 = vcmp.lt.s32.totalorder %v3847_v10, 0  ;;  %v2635_v63 = vsub.s32 0, %v3847_v10  ;;  %v2128_v1 = vsel %vm2127_vm1, 1, %v5950_v53  ;;  %v3863_v33 = vsel %vm2256_vm14, %v2252_v32, 1326507024 }
 0x113   :  { %v2498_v61 = vxor.u32 2147483648, %v2497_v36  ;;  %v2130_v21 = vadd.s32 %v2128_v1, %v2122_v30  ;;  %vm2131_vm3 = vc.u32 %v2129_v20, %v2125_v44  ;;  %v2102_v55 = vsel %vm2098_vm10, %v2082_v60, %v3779_v11 }
 0x114   :  { %v2636_v12 = vsel %vm2634_vm2, %v2635_v63, %v3847_v10  ;;  %v2132_v18 = vsel %vm2131_vm3, 1, %v5950_v53  ;;  %v2104_v34 = vsel %vm2100_vm11, %v3781_v6, %v2103_v16  ;;  %v3880_v56 = vand.u32 3, %v2520_v26 }
 0x115   :  { %v2499_v3 = vsel %vm2378_vm7, %v2498_v61, %v2497_v36  ;;  %v2637_v46 = vclz %v2636_v12  ;;  %v2625_v31 = vadd.s32 %v3777_v22, %v3769_v0  ;;  %v2143_v27 = vmul.u32 %v2139_v14, %v2116_v15 }
 0x116   :  { %v3878_v32 = vsel %vm3830_vm15, %v3445_v51, %v2499_v3  ;;  %v2134_v11 = vadd.s32 %v2132_v18, %v2130_v21  ;;  %v2145_v60 = vshll.u32 %v2142_v62, 16  ;;  %v2655_v59 = vsub.s32 4, %v3834_v5 }
 0x117   :  { %v2504_v17 = vmul.f32 %v3878_v32, %v3878_v32  ;;  %v3032_v41 = vadd.s32 4294967294, %v2637_v46  ;;  %v3889_v6 = vsel %vm2099_vm13, %v2102_v55, %v2104_v34  ;;  %v2124_v8 = vshrl.u32 %v2120_v35, 16 }
 0x118   :  { %v2141_v23 = vmul.u32 %v2139_v14, %v2115_v50  ;;  %vm2533_vm12 = vcmp.lt.s32.totalorder %v3448_v48, 0  ;;  %v2144_v0 = vmul.u32 %v2140_v47, %v2116_v15  ;;  %v2147_v30 = vshll.u32 %v2143_v27, 16 }
 0x119   :  { %v2505_v26 = vmul.f32 -0.001358992, %v2504_v17  ;;  %v2512_v16 = vmul.f32 -0.00019511016, %v2504_v17  ;;  %vm3033_vm5 = vcmp.lt.s32.totalorder %v3032_v41, 0  ;;  %v2135_v1 = vadd.s32 %v2134_v11, %v2124_v8 }
 0x11a   :  { %v2640_v22 = vsel %vm3033_vm5, 0, %v3032_v41  ;;  %vm2149_vm4 = vc.u32 %v2141_v23, %v2145_v60  ;;  %v2151_v36 = vadd.s32 %v2145_v60, %v2141_v23  ;;  %v2126_v39 = vshrl.u32 %v3844_v7, 16 }
 0x11b   :  { %v2506_v44 = vadd.f32 0.041655596, %v2505_v26  ;;  %v2513_v20 = vadd.f32 0.008332121, %v2512_v16  ;;  %v2641_v63 = vsub.s32 32, %v2640_v22  ;;  %v2645_v61 = vsub.s32 4294967266, %v2640_v22 }
 0x11c   :  { %v2150_v35 = vsel %vm2149_vm4, 1, %v5950_v53  ;;  %vm2153_vm6 = vc.u32 %v2151_v36, %v2147_v30  ;;  %v5956_v21 = vand.u32 2147483647, %v3448_v48  ;;  %v2642_v18 = vshll.u32 %v3847_v10, %v2640_v22 }
 0x11d   :  { %v2507_v50 = vmul.f32 %v2506_v44, %v2504_v17  ;;  %v2514_v14 = vmul.f32 %v2513_v20, %v2504_v17  ;;  %v2643_v47 = vshrl.u32 %v2625_v31, %v2641_v63  ;;  %v2152_v12 = vadd.s32 %v2150_v35, %v2144_v0 }
 0x11e   :  { %vm3896_vm7 = vcmp.le.f32.partialorder %v5956_v21, 0.7853982  ;;  %v2646_v3 = vadd.s32 127, %v2645_v61  ;;  %v2146_v46 = vshrl.u32 %v2142_v62, 16  ;;  %v2154_v55 = vsel %vm2153_vm6, 1, %v5950_v53 }
 0x11f   :  { %v2508_v7 = vadd.f32 -0.4999988, %v2507_v50  ;;  %v2515_v34 = vadd.f32 -0.16666654, %v2514_v14  ;;  %v3902_v41 = vadd.s32 %v2135_v1, %v2126_v39  ;;  %v2156_v11 = vadd.s32 %v2154_v55, %v2152_v12 }
 0x120   :  { %vm2523_vm8 = vcmp.eq.s32.totalorder %v3880_v56, 0  ;;  %v2644_v60 = vor.u32 %v2643_v47, %v2642_v18  ;;  %v2647_v8 = vshll.u32 %v2646_v3, 23  ;;  %v2148_v23 = vshrl.u32 %v2143_v27, 16 }
 0x121   :  { %v2221_v26 = vand.u32 2147483647, %v3390_v29  ;;  %v2509_v31 = vmul.f32 %v2508_v7, %v2504_v17  ;;  %v2516_v16 = vmul.f32 %v2515_v34, %v2504_v17  ;;  %vm2522_vm9 = vcmp.lt.s32.totalorder %v3880_v56, 2 }
 0x122   :  { %v3907_v10 = vadd.s32 %v2151_v36, %v2147_v30  ;;  %v2157_v62 = vadd.s32 %v2156_v11, %v2146_v46  ;;  %vm2526_vm10 = vcmp.eq.s32.totalorder %v3880_v56, 2  ;;  %v2648_v0 = vor.u32 4788187, %v2647_v8 }
 0x123   :  { %v2656_v22 = vsel %vm2533_vm12, %v2655_v59, %v3834_v5  ;;  %v2159_v44 = vmul.u32 %v3799_v57, %v3889_v6  ;;  %v2510_v27 = vadd.f32 1.0, %v2509_v31  ;;  %v2517_v20 = vadd.f32 1.0, %v2516_v16 }
 0x124   :  { %v2158_v63 = vadd.s32 %v2157_v62, %v2148_v23  ;;  %vm2161_vm11 = vc.u32 %v3902_v41, %v3907_v10  ;;  %v2649_v17 = vand.u32 2147483647, %v2648_v0  ;;  %v2651_v30 = vcvt.s32.f32 %v2644_v60 }
 0x125   :  { %v2228_v36 = vand.u32 8388607, %v2221_v26  ;;  %v2239_v1 = vshrl.u32 %v5949_v52, %v3586_v9  ;;  %v2518_v61 = vmul.f32 %v2517_v20, %v3878_v32  ;;  %v2527_v5 = vxor.u32 2147483648, %v2510_v27 }
 0x126   :  { %v2162_v59 = vadd.s32 1, %v2158_v63  ;;  %v2242_v57 = vshrl.u32 %v5951_v58, %v3586_v9  ;;  %vm1946_vm13 = vcmp.lt.s32.totalorder %v3512_v13, 4  ;;  %v2652_v6 = vmul.f32 %v2651_v30, %v2649_v17  ;;  %v5960_v30 = vld [vmem:[#allocation79_spill] sm:$0xff] }
 0x127   :  { %v2658_v39 = vsel %vm3896_vm7, 0, %v2656_v22  ;;  %v2238_v35 = vshll.u32 %v5948_v37, %v3553_v2  ;;  %v2245_v50 = vshrl.u32 %v5912_v25, %v3586_v9  ;;  %v2524_v14 = vxor.u32 2147483648, %v2518_v61 }
 0x128   :  { %v2163_v21 = vsel %vm2161_vm11, %v2162_v59, %v2158_v63  ;;  %v2241_v32 = vshll.u32 %v5949_v52, %v3553_v2  ;;  %v2244_v47 = vshll.u32 %v5951_v58, %v3553_v2  ;;  %v2653_v12 = vxor.u32 2147483648, %v2652_v6 }
 0x129   :  { %v2164_v18 = vadd.s32 %v2163_v21, %v2159_v44  ;;  %v2229_v3 = vor.u32 8388608, %v2228_v36  ;;  %v2240_v46 = vor.u32 %v2239_v1, %v2238_v35  ;;  %v2525_v55 = vsel %vm2523_vm8, %v2510_v27, %v2524_v14 }
 0x12a   :  { %v2528_v7 = vsel %vm2526_vm10, %v2527_v5, %v2518_v61  ;;  %v2243_v34 = vor.u32 %v2242_v57, %v2241_v32  ;;  %v2246_v11 = vor.u32 %v2245_v50, %v2244_v47  ;;  %vm2519_vm15 = vweird.f32 %v3445_v51 }
 0x12b   :  { %v2529_v60 = vsel %vm2522_vm9, %v2525_v55, %v2528_v7  ;;  %v2654_v2 = vsel %vm2533_vm12, %v2653_v12, %v2652_v6  ;;  %v2165_v8 = vadd.s32 536870912, %v2164_v18  ;;  %v2675_v16 = vadd.s32 3, %v2658_v39 }
 0x12c   :  { %v2530_v23 = vsel %vm2519_vm15, nan, %v2529_v60  ;;  %v3947_v31 = vsel %vm3896_vm7, %v3448_v48, %v2654_v2  ;;  %vm2255_vm1 = vcmp.lt.s32.totalorder %v3558_v38, 3  ;;  %vm2253_vm2 = vcmp.lt.s32.totalorder %v3558_v38, 1 }
 0x12d   :  { %2735 = vmatpush.msra.mxu2 %v2530_v23  ;;  %v2659_v51 = vmul.f32 %v3947_v31, %v3947_v31  ;;  %v3952_v62 = vshrl.u32 %v2165_v8, 30  ;;  %v2267_v56 = vsel %vm2255_vm1, %v3826_v40, %v3863_v33  ;;  %vm2254_vm3 = vcmp.lt.s32.totalorder %v3558_v38, 2 }
 0x12e   :  { %v2261_v15 = vsel %vm2253_vm2, %v2240_v46, %v2243_v34  ;;  %v2265_v0 = vsel %vm2253_vm2, %v2243_v34, %v2246_v11  ;;  %v3964_v22 = vshll.u32 %v2229_v3, 8  ;;  %v2263_v63 = vsel %vm2255_vm1, %v2246_v11, %v3859_v28 }
 0x12f   :  { %v2660_v44 = vmul.f32 -0.001358992, %v2659_v51  ;;  %v2667_v27 = vmul.f32 -0.00019511016, %v2659_v51  ;;  %v2167_v20 = vshll.u32 %v3952_v62, 30  ;;  %v5959_v40 = vor.u32 %v3522_v4, %v3518_v43 }
 0x130   :  { %v3980_v17 = vsel %vm1946_vm13, %v3546_v49, 920167782  ;;  %v5961_v36 = vor.u32 %v3538_v42, %v5960_v30  ;;  %v2268_v28 = vsel %vm2254_vm3, %v2265_v0, %v2267_v56  ;;  %v3991_v61 = vand.u32 3, %v2675_v16 }
 0x131   :  { %v3975_v33 = vsel %vm1791_vm0, %v5959_v40, 1326507024  ;;  %v2661_v4 = vadd.f32 0.041655596, %v2660_v44  ;;  %v2668_v43 = vadd.f32 0.008332121, %v2667_v27  ;;  %v3993_v5 = vsub.s32 %v2164_v18, %v2167_v20 }
 0x132   :  { %v3987_v1 = vsel %vm1946_vm13, %v5961_v36, 1326507024  ;;  %v2264_v59 = vsel %vm2254_vm3, %v2261_v15, %v2263_v63  ;;  %v2270_v57 = vand.u32 65535, %v3964_v22  ;;  %v2272_v6 = vand.u32 65535, %v2268_v28 }
 0x133   :  { %v2273_v42 = vshrl.u32 %v2268_v28, 16  ;;  %v2662_v39 = vmul.f32 %v2661_v4, %v2659_v51  ;;  %v2669_v35 = vmul.f32 %v2668_v43, %v2659_v51  ;;  %vm2169_vm12 = vcmp.lt.s32.totalorder %v3993_v5, 0 }
 0x134   :  { %v2170_v50 = vsub.s32 0, %v3993_v5  ;;  %v2160_v14 = vadd.s32 %v3907_v10, %v3902_v41  ;;  %v2237_v21 = vshrl.u32 %v5948_v37, %v3586_v9  ;;  %v2271_v32 = vshrl.u32 %v3964_v22, 16 }
 0x135   :  { %v2275_v47 = vmul.u32 %v2273_v42, %v2270_v57  ;;  %v2663_v12 = vadd.f32 -0.4999988, %v2662_v39  ;;  %v2670_v18 = vadd.f32 -0.16666654, %v2669_v35  ;;  %v2258_v55 = vsel %vm2256_vm14, %v2246_v11, 2102212464 }
 0x136   :  { %v2171_v3 = vsel %vm2169_vm12, %v2170_v50, %v3993_v5  ;;  %vm2678_vm5 = vcmp.eq.s32.totalorder %v3991_v61, 0  ;;  %vm2681_vm4 = vcmp.eq.s32.totalorder %v3991_v61, 2  ;;  %v4010_v60 = vmul.u32 %v2272_v6, %v2271_v32 }
 0x137   :  { %v2172_v7 = vclz %v2171_v3  ;;  %v2278_v41 = vshll.u32 %v2275_v47, 16  ;;  %v2295_v10 = vshrl.u32 %v2264_v59, 16  ;;  %v2664_v9 = vmul.f32 %v2663_v12, %v2659_v51 }
 0x138   :  { %v2671_v2 = vmul.f32 %v2670_v18, %v2659_v51  ;;  %vm2677_vm6 = vcmp.lt.s32.totalorder %v3991_v61, 2  ;;  %v2257_v8 = vsel %vm2253_vm2, %v2237_v21, %v2240_v46  ;;  %v2274_v23 = vmul.u32 %v2272_v6, %v2270_v57 }
 0x139   :  { %vm2674_vm7 = vweird.f32 %v3448_v48  ;;  %v3023_v11 = vadd.s32 4294967294, %v2172_v7  ;;  %v2259_v16 = vsel %vm2255_vm1, %v2243_v34, %v2258_v55  ;;  %v2277_v56 = vmul.u32 %v2273_v42, %v2271_v32 }
 0x13a   :  { %v2294_v15 = vand.u32 65535, %v2264_v59  ;;  %v2665_v0 = vadd.f32 1.0, %v2664_v9  ;;  %v2672_v44 = vadd.f32 1.0, %v2671_v2  ;;  %vm2282_vm14 = vc.u32 %v2274_v23, %v2278_v41 }
 0x13b   :  { %v2284_v27 = vadd.s32 %v2278_v41, %v2274_v23  ;;  %vm3024_vm8 = vcmp.lt.s32.totalorder %v3023_v11, 0  ;;  %v2280_v51 = vshll.u32 %v4010_v60, 16  ;;  %v2283_v20 = vsel %vm2282_vm14, 1, %v5950_v53 }
 0x13c   :  { %v2297_v63 = vmul.u32 %v2295_v10, %v2270_v57  ;;  %v2673_v46 = vmul.f32 %v2672_v44, %v3947_v31  ;;  %v2682_v40 = vxor.u32 2147483648, %v2665_v0  ;;  %v2175_v30 = vsel %vm3024_vm8, 0, %v3023_v11  ;;  %v5965_v11 = vld [vmem:[#allocation27_spill] sm:$0xff] }
 0x13d   :  { %v2285_v36 = vadd.s32 %v2283_v20, %v2277_v56  ;;  %v2176_v28 = vsub.s32 32, %v2175_v30  ;;  %v2180_v4 = vsub.s32 4294967266, %v2175_v30  ;;  %vm2286_vm9 = vc.u32 %v2284_v27, %v2280_v51 }
 0x13e   :  { %v2298_v34 = vmul.u32 %v2294_v15, %v2271_v32  ;;  %v2679_v43 = vxor.u32 2147483648, %v2673_v46  ;;  %v2177_v59 = vshll.u32 %v3993_v5, %v2175_v30  ;;  %v2287_v6 = vsel %vm2286_vm9, 1, %v5950_v53 }
 0x13f   :  { %v2296_v42 = vmul.u32 %v2294_v15, %v2270_v57  ;;  %v2178_v39 = vshrl.u32 %v2160_v14, %v2176_v28  ;;  %v2181_v35 = vadd.s32 127, %v2180_v4  ;;  %v2289_v50 = vadd.s32 %v2287_v6, %v2285_v36  ;;  %v5967_v28 = vld [vmem:[#allocation60_spill] sm:$0xff] }
 0x140   :  { %v2300_v21 = vshll.u32 %v2297_v63, 16  ;;  %v2680_v31 = vsel %vm2678_vm5, %v2665_v0, %v2679_v43  ;;  %v2683_v12 = vsel %vm2681_vm4, %v2682_v40, %v2673_v46  ;;  %v2279_v18 = vshrl.u32 %v2275_v47, 16  ;;  %v5966_v40 = vld [vmem:[#allocation70_spill] sm:$0xff] }
 0x141   :  { %v2299_v3 = vmul.u32 %v2295_v10, %v2271_v32  ;;  %v2684_v55 = vsel %vm2677_vm6, %v2680_v31, %v2683_v12  ;;  %v2179_v7 = vor.u32 %v2178_v39, %v2177_v59  ;;  %v2182_v5 = vshll.u32 %v2181_v35, 23 }
 0x142   :  { %v2302_v41 = vshll.u32 %v2298_v34, 16  ;;  %v2685_v57 = vsel %vm2674_vm7, nan, %v2684_v55  ;;  %v2290_v14 = vadd.s32 %v2289_v50, %v2279_v18  ;;  %vm2304_vm10 = vc.u32 %v2296_v42, %v2300_v21 }
 0x143   :  { %v2306_v9 = vadd.s32 %v2300_v21, %v2296_v42  ;;  %2764 = vmatpush.msra.mxu3 %v2685_v57  ;;  %v5962_v2 = vand.u32 2147483647, %v3387_v54  ;;  %vm2068_vm15 = vcmp.lt.s32.totalorder %v3387_v54, 0  ;;  %v2183_v61 = vor.u32 4788187, %v2182_v5 }
 0x144   :  { %v2260_v32 = vsel %vm2254_vm3, %v2257_v8, %v2259_v16  ;;  %v2305_v47 = vsel %vm2304_vm10, 1, %v5950_v53  ;;  %v2281_v48 = vshrl.u32 %v4010_v60, 16  ;;  %v1756_v56 = vand.u32 2147483647, %v5965_v11 }
 0x145   :  { %vm4033_vm11 = vcmp.le.f32.partialorder %v5962_v2, 0.7853982  ;;  %v2307_v10 = vadd.s32 %v2305_v47, %v2299_v3  ;;  %vm2308_vm1 = vc.u32 %v2306_v9, %v2302_v41  ;;  %v2184_v15 = vand.u32 2147483647, %v2183_v61  ;;  %v5968_v3 = vld [vmem:[#allocation80_spill] sm:$0xff]  ;;  %v5969_v47 = vld [vmem:[#allocation81_spill] sm:$0xff] }
 0x146   :  { %v2186_v0 = vcvt.s32.f32 %v2179_v7  ;;  %v2190_v44 = vsub.s32 4, %v3952_v62  ;;  %v2309_v27 = vsel %vm2308_vm1, 1, %v5950_v53  ;;  %v4045_v51 = vadd.s32 %v2290_v14, %v2281_v48 }
 0x147   :  { %v2301_v20 = vshrl.u32 %v2297_v63, 16  ;;  %v2303_v46 = vshrl.u32 %v2298_v34, 16  ;;  %v2311_v38 = vadd.s32 %v2309_v27, %v2307_v10  ;;  %v4047_v16 = vadd.s32 %v2306_v9, %v2302_v41 }
 0x148   :  { %v2187_v8 = vmul.f32 %v2186_v0, %v2184_v15  ;;  %v1763_v60 = vand.u32 8388607, %v1756_v56  ;;  %v1774_v30 = vshrl.u32 %v5949_v52, %v5966_v40  ;;  %v1773_v4 = vshll.u32 %v5948_v37, %v5967_v28  ;;  %v5970_v0 = vld [vmem:[#allocation72_spill] sm:$0xff] }
 0x149   :  { %v2312_v36 = vadd.s32 %v2311_v38, %v2301_v20  ;;  %v1776_v43 = vshll.u32 %v5949_v52, %v5967_v28  ;;  %v1777_v63 = vshrl.u32 %v5951_v58, %v5966_v40  ;;  %v2191_v59 = vsel %vm2068_vm15, %v2190_v44, %v3952_v62 }
 0x14a   :  { %v2188_v34 = vxor.u32 2147483648, %v2187_v8  ;;  %v1779_v6 = vshll.u32 %v5951_v58, %v5967_v28  ;;  %v1780_v42 = vshrl.u32 %v5912_v25, %v5966_v40  ;;  %vm2316_vm2 = vc.u32 %v4045_v51, %v4047_v16 }
 0x14b   :  { %v2313_v39 = vadd.s32 %v2312_v36, %v2303_v46  ;;  %v1775_v35 = vor.u32 %v1774_v30, %v1773_v4  ;;  %v1778_v50 = vor.u32 %v1777_v63, %v1776_v43  ;;  %v1764_v31 = vor.u32 8388608, %v1763_v60 }
 0x14c   :  { %v2189_v21 = vsel %vm2068_vm15, %v2188_v34, %v2187_v8  ;;  %v1781_v12 = vor.u32 %v1780_v42, %v1779_v6  ;;  %vm1790_vm3 = vcmp.lt.s32.totalorder %v3501_v45, 3  ;;  %vm1788_vm12 = vcmp.lt.s32.totalorder %v3501_v45, 1 }
 0x14d   :  { %v2192_v62 = vsel %vm4033_vm11, %v3387_v54, %v2189_v21  ;;  %v2317_v18 = vadd.s32 1, %v2313_v39  ;;  %v1802_v55 = vsel %vm1790_vm3, %v5968_v3, %v3975_v33  ;;  %v2314_v5 = vmul.u32 %v3964_v22, %v2260_v32 }
 0x14e   :  { %v2194_v7 = vmul.f32 %v2192_v62, %v2192_v62  ;;  %vm1789_vm5 = vcmp.lt.s32.totalorder %v3501_v45, 2  ;;  %v1800_v41 = vsel %vm1788_vm12, %v1778_v50, %v1781_v12  ;;  %v2193_v57 = vsel %vm4033_vm11, 0, %v2191_v59 }
 0x14f   :  { %v2318_v14 = vsel %vm2316_vm2, %v2317_v18, %v2313_v39  ;;  %v1796_v9 = vsel %vm1788_vm12, %v1775_v35, %v1778_v50  ;;  %v1803_v33 = vsel %vm1789_vm5, %v1800_v41, %v1802_v55  ;;  %v1793_v32 = vsel %vm1791_vm0, %v1781_v12, 2102212464 }
 0x150   :  { %v2195_v2 = vmul.f32 -0.001358992, %v2194_v7  ;;  %v2202_v22 = vmul.f32 -0.00019511016, %v2194_v7  ;;  %v2319_v61 = vadd.s32 %v2318_v14, %v2314_v5  ;;  %v1798_v23 = vsel %vm1790_vm3, %v1781_v12, %v5969_v47 }
 0x151   :  { %v4097_v48 = vshll.u32 %v1764_v31, 8  ;;  %v1807_v10 = vand.u32 65535, %v1803_v33  ;;  %v1808_v15 = vshrl.u32 %v1803_v33, 16  ;;  %v4101_v44 = vshrl.u32 %v5914_v24, %v5970_v0 }
 0x152   :  { %v2196_v27 = vadd.f32 0.041655596, %v2195_v2  ;;  %v2203_v20 = vadd.f32 0.008332121, %v2202_v22  ;;  %v2320_v46 = vadd.s32 536870912, %v2319_v61  ;;  %v2210_v38 = vadd.s32 3, %v2193_v57 }
 0x153   :  { %v1772_v8 = vshrl.u32 %v5948_v37, %v5966_v40  ;;  %v1805_v60 = vand.u32 65535, %v4097_v48  ;;  %v1806_v30 = vshrl.u32 %v4097_v48, 16  ;;  %v1799_v43 = vsel %vm1789_vm5, %v1796_v9, %v1798_v23 }
 0x154   :  { %v2197_v36 = vmul.f32 %v2196_v27, %v2194_v7  ;;  %v2204_v28 = vmul.f32 %v2203_v20, %v2194_v7  ;;  %v4107_v4 = vshrl.u32 %v2320_v46, 30  ;;  %v1794_v34 = vsel %vm1790_vm3, %v1778_v50, %v1793_v32 }
 0x155   :  { %v1792_v63 = vsel %vm1788_vm12, %v1772_v8, %v1775_v35  ;;  %v1810_v59 = vmul.u32 %v1808_v15, %v1805_v60  ;;  %v4115_v6 = vmul.u32 %v1807_v10, %v1806_v30  ;;  %v4119_v40 = vshrl.u32 %v5921_v19, %v5970_v0 }
 0x156   :  { %v2198_v42 = vadd.f32 -0.4999988, %v2197_v36  ;;  %v2205_v39 = vadd.f32 -0.16666654, %v2204_v28  ;;  %v2322_v21 = vshll.u32 %v4107_v4, 30  ;;  %v2211_v31 = vand.u32 3, %v2210_v38 }
 0x157   :  { %v1809_v12 = vmul.u32 %v1807_v10, %v1805_v60  ;;  %v1813_v18 = vshll.u32 %v1810_v59, 16  ;;  %v1830_v3 = vshrl.u32 %v1799_v43, 16  ;;  %v4126_v50 = vsel %vm1789_vm5, %v1792_v63, %v1794_v34  ;;  %v5971_v36 = vld [vmem:[#allocation28_spill] sm:$0xff] }
 0x158   :  { %v2199_v55 = vmul.f32 %v2198_v42, %v2194_v7  ;;  %v2206_v35 = vmul.f32 %v2205_v39, %v2194_v7  ;;  %v4122_v5 = vsub.s32 %v2319_v61, %v2322_v21  ;;  %vm2209_vm0 = vweird.f32 %v3387_v54 }
 0x159   :  { %v1812_v41 = vmul.u32 %v1808_v15, %v1806_v30  ;;  %v1815_v57 = vshll.u32 %v4115_v6, 16  ;;  %vm1817_vm4 = vc.u32 %v1809_v12, %v1813_v18  ;;  %v1819_v14 = vadd.s32 %v1813_v18, %v1809_v12 }
 0x15a   :  { %v2200_v9 = vadd.f32 1.0, %v2199_v55  ;;  %v2207_v33 = vadd.f32 1.0, %v2206_v35  ;;  %vm2324_vm6 = vcmp.lt.s32.totalorder %v4122_v5, 0  ;;  %v2325_v2 = vsub.s32 0, %v4122_v5 }
 0x15b   :  { %v1818_v7 = vsel %vm1817_vm4, 1, %v5950_v53  ;;  %vm1821_vm7 = vc.u32 %v1819_v14, %v1815_v57  ;;  %v1829_v22 = vand.u32 65535, %v1799_v43  ;;  %v1832_v45 = vmul.u32 %v1830_v3, %v1805_v60 }
 0x15c   :  { %v2208_v61 = vmul.f32 %v2207_v33, %v2192_v62  ;;  %v2217_v32 = vxor.u32 2147483648, %v2200_v9  ;;  %v2326_v47 = vsel %vm2324_vm6, %v2325_v2, %v4122_v5  ;;  %v1820_v23 = vadd.s32 %v1818_v7, %v1812_v41  ;;  %v5974_v7 = vld [vmem:[#allocation74_spill] sm:$0xff] }
 0x15d   :  { %vm2212_vm14 = vcmp.lt.s32.totalorder %v2211_v31, 2  ;;  %vm2213_vm8 = vcmp.eq.s32.totalorder %v2211_v31, 0  ;;  %vm2223_vm9 = vcmp.lt.s32.totalorder %v3390_v29, 0  ;;  %v2327_v10 = vclz %v2326_v47  ;;  %v5975_v47 = vld [vmem:[#allocation63_spill] sm:$0xff] }
 0x15e   :  { %v1822_v15 = vsel %vm1821_vm7, 1, %v5950_v53  ;;  %v2214_v27 = vxor.u32 2147483648, %v2208_v61  ;;  %vm2216_vm10 = vcmp.eq.s32.totalorder %v2211_v31, 2  ;;  %v2315_v20 = vadd.s32 %v4047_v16, %v4045_v51 }
 0x15f   :  { %v1849_v46 = vmul.u32 %v4097_v48, %v4126_v50  ;;  %v3026_v62 = vadd.s32 4294967294, %v2327_v10  ;;  %v1831_v38 = vmul.u32 %v1829_v22, %v1805_v60  ;;  %v1833_v8 = vmul.u32 %v1829_v22, %v1806_v30 }
 0x160   :  { %v1911_v28 = vand.u32 2147483647, %v5971_v36  ;;  %v2215_v43 = vsel %vm2213_vm8, %v2200_v9, %v2214_v27  ;;  %v2218_v63 = vsel %vm2216_vm10, %v2217_v32, %v2208_v61  ;;  %v1824_v34 = vadd.s32 %v1822_v15, %v1820_v23 }
 0x161   :  { %v1835_v42 = vshll.u32 %v1832_v45, 16  ;;  %v2219_v39 = vsel %vm2212_vm14, %v2215_v43, %v2218_v63  ;;  %vm3027_vm11 = vcmp.lt.s32.totalorder %v3026_v62, 0  ;;  %v2345_v21 = vsub.s32 4, %v4107_v4 }
 0x162   :  { %v1814_v12 = vshrl.u32 %v1810_v59, 16  ;;  %v2220_v51 = vsel %vm2209_vm0, nan, %v2219_v39  ;;  %v2330_v16 = vsel %vm3027_vm11, 0, %v3026_v62  ;;  %v1834_v18 = vmul.u32 %v1830_v3, %v1806_v30 }
 0x163   :  { %vm1839_vm15 = vc.u32 %v1831_v38, %v1835_v42  ;;  %2736 = vmatpush.msra.mxu2 %v2220_v51  ;;  %v2331_v60 = vsub.s32 32, %v2330_v16  ;;  %v2335_v55 = vsub.s32 4294967266, %v2330_v16  ;;  %v1816_v35 = vshrl.u32 %v4115_v6, 16 }
 0x164   :  { %v1840_v41 = vsel %vm1839_vm15, 1, %v5950_v53  ;;  %v1825_v57 = vadd.s32 %v1824_v34, %v1814_v12  ;;  %v1837_v31 = vshll.u32 %v1833_v8, 16  ;;  %v1841_v14 = vadd.s32 %v1835_v42, %v1831_v38 }
 0x165   :  { %v1842_v9 = vadd.s32 %v1840_v41, %v1834_v18  ;;  %v2332_v33 = vshll.u32 %v4122_v5, %v2330_v16  ;;  %v2333_v59 = vshrl.u32 %v2315_v20, %v2331_v60  ;;  %v2336_v2 = vadd.s32 127, %v2335_v55 }
 0x166   :  { %v1918_v54 = vand.u32 8388607, %v1911_v28  ;;  %vm4152_vm1 = vcmp.le.f32.partialorder %v2221_v26, 0.7853982  ;;  %v2346_v6 = vsel %vm2223_vm9, %v2345_v21, %v4107_v4  ;;  %v1836_v3 = vshrl.u32 %v1832_v45, 16 }
 0x167   :  { %vm1843_vm2 = vc.u32 %v1841_v14, %v1837_v31  ;;  %v1929_v5 = vshrl.u32 %v5949_v52, %v5974_v7  ;;  %v2334_v22 = vor.u32 %v2333_v59, %v2332_v33  ;;  %v2337_v61 = vshll.u32 %v2336_v2, 23  ;;  %v5978_v59 = vld [vmem:[#allocation76_spill] sm:$0xff] }
 0x168   :  { %v1844_v32 = vsel %vm1843_vm2, 1, %v5950_v53  ;;  %v1928_v23 = vshll.u32 %v5948_v37, %v5975_v47  ;;  %v4164_v26 = vadd.s32 %v1825_v57, %v1816_v35  ;;  %v1838_v10 = vshrl.u32 %v1833_v8, 16  ;;  %v5976_v8 = vld [vmem:[#allocation71_spill] sm:$0xff] }
 0x169   :  { %v1846_v15 = vadd.s32 %v1844_v32, %v1842_v9  ;;  %v1919_v27 = vor.u32 8388608, %v1918_v54  ;;  %v2338_v20 = vor.u32 4788187, %v2337_v61  ;;  %v1931_v4 = vshll.u32 %v5949_v52, %v5975_v47  ;;  %v5977_v9 = vld [vmem:[#allocation75_spill] sm:$0xff] }
 0x16a   :  { %v1930_v62 = vor.u32 %v1929_v5, %v1928_v23  ;;  %v1932_v45 = vshrl.u32 %v5951_v58, %v5974_v7  ;;  %v4170_v38 = vadd.s32 %v1841_v14, %v1837_v31  ;;  %v1934_v63 = vshll.u32 %v5951_v58, %v5975_v47  ;;  %v5979_v47 = vld [vmem:[#allocation77_spill] sm:$0xff] }
 0x16b   :  { %v1847_v43 = vadd.s32 %v1846_v15, %v1836_v3  ;;  %v1935_v34 = vshrl.u32 %v5912_v25, %v5974_v7  ;;  %vm1481_vm3 = vcmp.lt.s32.totalorder %v5976_v8, 4  ;;  %v2339_v42 = vand.u32 2147483647, %v2338_v20 }
 0x16c   :  { %v2341_v39 = vcvt.s32.f32 %v2334_v22  ;;  %v1933_v21 = vor.u32 %v1932_v45, %v1931_v4  ;;  %vm1945_vm12 = vcmp.lt.s32.totalorder %v3512_v13, 3  ;;  %vm1943_vm5 = vcmp.lt.s32.totalorder %v3512_v13, 1 }
 0x16d   :  { %v1848_v12 = vadd.s32 %v1847_v43, %v1838_v10  ;;  %v1936_v51 = vor.u32 %v1935_v34, %v1934_v63  ;;  %v1957_v16 = vsel %vm1945_vm12, %v3546_v49, %v3987_v1  ;;  %vm1851_vm0 = vc.u32 %v4164_v26, %v4170_v38 }
 0x16e   :  { %v2342_v18 = vmul.f32 %v2341_v39, %v2339_v42  ;;  %v1951_v60 = vsel %vm1943_vm5, %v1930_v62, %v1933_v21  ;;  %v4187_v55 = vshll.u32 %v1919_v27, 8  ;;  %vm1944_vm4 = vcmp.lt.s32.totalorder %v3512_v13, 2 }
 0x16f   :  { %v1852_v35 = vadd.s32 1, %v1848_v12  ;;  %v1953_v41 = vsel %vm1945_vm12, %v1936_v51, %v3980_v17  ;;  %v1955_v57 = vsel %vm1943_vm5, %v1933_v21, %v1936_v51  ;;  %v2348_v1 = vsel %vm4152_vm1, 0, %v2346_v6 }
 0x170   :  { %v2343_v49 = vxor.u32 2147483648, %v2342_v18  ;;  %v4199_v31 = vsel %vm1944_vm4, %v1951_v60, %v1953_v41  ;;  %v1958_v14 = vsel %vm1944_vm4, %v1955_v57, %v1957_v16  ;;  %v4205_v33 = vor.u32 %v4101_v44, %v5977_v9 }
 0x171   :  { %v1477_v17 = vor.u32 %v4119_v40, %v5978_v59  ;;  %v1853_v2 = vsel %vm1851_vm0, %v1852_v35, %v1848_v12  ;;  %v1960_v54 = vand.u32 65535, %v4187_v55  ;;  %v1962_v5 = vand.u32 65535, %v1958_v14 }
 0x172   :  { %v2344_v6 = vsel %vm2223_vm9, %v2343_v49, %v2342_v18  ;;  %v1854_v3 = vadd.s32 %v1853_v2, %v1849_v46  ;;  %v1963_v22 = vshrl.u32 %v1958_v14, 16  ;;  %v2365_v61 = vadd.s32 3, %v2348_v1 }
 0x173   :  { %v4218_v44 = vsel %vm4152_vm1, %v3390_v29, %v2344_v6  ;;  %v1961_v40 = vshrl.u32 %v4187_v55, 16  ;;  %v1985_v32 = vshrl.u32 %v4199_v31, 16  ;;  %v4224_v23 = vshrl.u32 %v5921_v19, %v5979_v47 }
 0x174   :  { %v2349_v48 = vmul.f32 %v4218_v44, %v4218_v44  ;;  %v1855_v50 = vadd.s32 536870912, %v1854_v3  ;;  %v1965_v46 = vmul.u32 %v1963_v22, %v1960_v54  ;;  %v4231_v30 = vsel %vm1481_vm3, %v4205_v33, 920167782 }
 0x175   :  { %v4235_v10 = vsel %vm1481_vm3, %v1477_v17, 1326507024  ;;  %v1927_v15 = vshrl.u32 %v5948_v37, %v5974_v7  ;;  %v4239_v27 = vmul.u32 %v1962_v5, %v1961_v40  ;;  %v4243_v63 = vand.u32 3, %v2365_v61 }
 0x176   :  { %v2350_v20 = vmul.f32 -0.001358992, %v2349_v48  ;;  %v2357_v4 = vmul.f32 -0.00019511016, %v2349_v48  ;;  %v4241_v45 = vshrl.u32 %v1855_v50, 30  ;;  %v1968_v43 = vshll.u32 %v1965_v46, 16 }
 0x177   :  { %v1948_v34 = vsel %vm1946_vm13, %v1936_v51, 2102212464  ;;  %v1964_v42 = vmul.u32 %v1962_v5, %v1960_v54  ;;  %v4247_v39 = vmul.u32 %v1985_v32, %v1960_v54  ;;  %v1947_v7 = vsel %vm1943_vm5, %v1927_v15, %v1930_v62 }
 0x178   :  { %v2351_v12 = vadd.f32 0.041655596, %v2350_v20  ;;  %v2358_v16 = vadd.f32 0.008332121, %v2357_v4  ;;  %v1857_v18 = vshll.u32 %v4241_v45, 30  ;;  %v1970_v60 = vshll.u32 %v4239_v27, 16 }
 0x179   :  { %vm1972_vm6 = vc.u32 %v1964_v42, %v1968_v43  ;;  %v1974_v35 = vadd.s32 %v1968_v43, %v1964_v42  ;;  %v1984_v41 = vand.u32 65535, %v4199_v31  ;;  %v1949_v51 = vsel %vm1945_vm12, %v1933_v21, %v1948_v34 }
 0x17a   :  { %v2352_v57 = vmul.f32 %v2351_v12, %v2349_v48  ;;  %v2359_v49 = vmul.f32 %v2358_v16, %v2349_v48  ;;  %v4254_v1 = vsub.s32 %v1854_v3, %v1857_v18  ;;  %v1967_v14 = vmul.u32 %v1963_v22, %v1961_v40 }
 0x17b   :  { %v1973_v9 = vsel %vm1972_vm6, 1, %v5950_v53  ;;  %vm1976_vm13 = vc.u32 %v1974_v35, %v1970_v60  ;;  %v1990_v59 = vshll.u32 %v4247_v39, 16  ;;  %vm2368_vm14 = vcmp.eq.s32.totalorder %v4243_v63, 0 }
 0x17c   :  { %v2353_v62 = vadd.f32 -0.4999988, %v2352_v57  ;;  %v2360_v17 = vadd.f32 -0.16666654, %v2359_v49  ;;  %vm1859_vm7 = vcmp.lt.s32.totalorder %v4254_v1, 0  ;;  %v1860_v2 = vsub.s32 0, %v4254_v1 }
 0x17d   :  { %vm2371_vm8 = vcmp.eq.s32.totalorder %v4243_v63, 2  ;;  %v1975_v31 = vadd.s32 %v1973_v9, %v1967_v14  ;;  %v1977_v6 = vsel %vm1976_vm13, 1, %v5950_v53  ;;  %v1986_v21 = vmul.u32 %v1984_v41, %v1960_v54 }
 0x17e   :  { %v1988_v3 = vmul.u32 %v1984_v41, %v1961_v40  ;;  %v2354_v5 = vmul.f32 %v2353_v62, %v2349_v48  ;;  %v2361_v22 = vmul.f32 %v2360_v17, %v2349_v48  ;;  %vm2367_vm9 = vcmp.lt.s32.totalorder %v4243_v63, 2 }
 0x17f   :  { %v1861_v61 = vsel %vm1859_vm7, %v1860_v2, %v4254_v1  ;;  %v1969_v50 = vshrl.u32 %v1965_v46, 16  ;;  %vm2364_vm10 = vweird.f32 %v3390_v29  ;;  %v1979_v20 = vadd.s32 %v1977_v6, %v1975_v31 }
 0x180   :  { %v1862_v15 = vclz %v1861_v61  ;;  %v1989_v4 = vmul.u32 %v1985_v32, %v1961_v40  ;;  %vm1994_vm11 = vc.u32 %v1986_v21, %v1990_v59  ;;  %v2355_v43 = vadd.f32 1.0, %v2354_v5 }
 0x181   :  { %v2362_v34 = vadd.f32 1.0, %v2361_v22  ;;  %v1995_v42 = vsel %vm1994_vm11, 1, %v5950_v53  ;;  %v1996_v12 = vadd.s32 %v1990_v59, %v1986_v21  ;;  %vm1758_vm15 = vcmp.lt.s32.totalorder %v5965_v11, 0 }
 0x182   :  { %v1850_v54 = vadd.s32 %v4170_v38, %v4164_v26  ;;  %v3017_v48 = vadd.s32 4294967294, %v1862_v15  ;;  %v1950_v46 = vsel %vm1944_vm4, %v1947_v7, %v1949_v51  ;;  %v1992_v16 = vshll.u32 %v1988_v3, 16  ;;  %v5980_v38 = vld [vmem:[#allocation17_spill] sm:$0xff] }
 0x183   :  { %v2363_v18 = vmul.f32 %v2362_v34, %v4218_v44  ;;  %v2372_v60 = vxor.u32 2147483648, %v2355_v43  ;;  %v1980_v40 = vadd.s32 %v1979_v20, %v1969_v50  ;;  %v1997_v32 = vadd.s32 %v1995_v42, %v1989_v4 }
 0x184   :  { %vm3018_vm1 = vcmp.lt.s32.totalorder %v3017_v48, 0  ;;  %v1880_v35 = vsub.s32 4, %v4241_v45  ;;  %v1971_v41 = vshrl.u32 %v4239_v27, 16  ;;  %vm1998_vm2 = vc.u32 %v1996_v12, %v1992_v16 }
 0x185   :  { %v2369_v57 = vxor.u32 2147483648, %v2363_v18  ;;  %v1865_v49 = vsel %vm3018_vm1, 0, %v3017_v48  ;;  %v1991_v26 = vshrl.u32 %v4247_v39, 16  ;;  %v1446_v14 = vand.u32 2147483647, %v5980_v38 }
 0x186   :  { %v1866_v13 = vsub.s32 32, %v1865_v49  ;;  %v1870_v7 = vsub.s32 4294967266, %v1865_v49  ;;  %v1993_v51 = vshrl.u32 %v1988_v3, 16  ;;  %v1999_v44 = vsel %vm1998_vm2, 1, %v5950_v53 }
 0x187   :  { %v2370_v9 = vsel %vm2368_vm14, %v2355_v43, %v2369_v57  ;;  %v2373_v59 = vsel %vm2371_vm8, %v2372_v60, %v2363_v18  ;;  %v4284_v62 = vadd.s32 %v1980_v40, %v1971_v41  ;;  %v2001_v27 = vadd.s32 %v1999_v44, %v1997_v32  ;;  %v5984_v57 = vld [vmem:[#allocation69_spill] sm:$0xff] }
 0x188   :  { %v2374_v17 = vsel %vm2367_vm9, %v2370_v9, %v2373_v59  ;;  %v1867_v39 = vshll.u32 %v4254_v1, %v1865_v49  ;;  %v1868_v2 = vshrl.u32 %v1850_v54, %v1866_v13  ;;  %v1871_v31 = vadd.s32 127, %v1870_v7 }
 0x189   :  { %v2375_v6 = vsel %vm2364_vm10, nan, %v2374_v17  ;;  %v4291_v21 = vadd.s32 %v1996_v12, %v1992_v16  ;;  %v2002_v3 = vadd.s32 %v2001_v27, %v1991_v26  ;;  %v1453_v5 = vand.u32 8388607, %v1446_v14 }
 0x18a   :  { %2765 = vmatpush.msra.mxu3 %v2375_v6  ;;  %vm4297_vm12 = vcmp.le.f32.partialorder %v1756_v56, 0.7853982  ;;  %v1869_v63 = vor.u32 %v1868_v2, %v1867_v39  ;;  %v1872_v1 = vshll.u32 %v1871_v31, 23  ;;  %v2004_v61 = vmul.u32 %v4187_v55, %v1950_v46  ;;  %v5983_v56 = vld [vmem:[#allocation62_spill] sm:$0xff]  ;;  %v5986_v6 = vld [vmem:[#allocation73_spill] sm:$0xff] }
 0x18b   :  { %v1881_v29 = vsel %vm1758_vm15, %v1880_v35, %v4241_v45  ;;  %v2003_v50 = vadd.s32 %v2002_v3, %v1993_v51  ;;  %vm2006_vm5 = vc.u32 %v4284_v62, %v4291_v21  ;;  %v1464_v15 = vshrl.u32 %v5949_v52, %v5970_v0  ;;  %v5985_v51 = vld [vmem:[#allocation78_spill] sm:$0xff] }
 0x18c   :  { %v1873_v20 = vor.u32 4788187, %v1872_v1  ;;  %v1463_v4 = vshll.u32 %v5948_v37, %v5983_v56  ;;  %v1466_v43 = vshll.u32 %v5949_v52, %v5983_v56  ;;  %v1467_v55 = vshrl.u32 %v5951_v58, %v5970_v0 }
 0x18d   :  { %v2007_v34 = vadd.s32 1, %v2003_v50  ;;  %v1454_v42 = vor.u32 8388608, %v1453_v5  ;;  %v1469_v45 = vshll.u32 %v5951_v58, %v5983_v56  ;;  %v1470_v12 = vshrl.u32 %v5912_v25, %v5970_v0 }
 0x18e   :  { %v1874_v54 = vand.u32 2147483647, %v1873_v20  ;;  %v1876_v48 = vcvt.s32.f32 %v1869_v63  ;;  %v1883_v46 = vsel %vm4297_vm12, 0, %v1881_v29  ;;  %v4321_v16 = vor.u32 %v1467_v55, %v1466_v43 }
 0x18f   :  { %v2008_v18 = vsel %vm2006_vm5, %v2007_v34, %v2003_v50  ;;  %v4323_v60 = vor.u32 %v1464_v15, %v1463_v4  ;;  %v1471_v40 = vor.u32 %v1470_v12, %v1469_v45  ;;  %vm1480_vm0 = vcmp.lt.s32.totalorder %v5976_v8, 3 }
 0x190   :  { %v1877_v32 = vmul.f32 %v1876_v48, %v1874_v54  ;;  %v2009_v35 = vadd.s32 %v2008_v18, %v2004_v61  ;;  %vm1478_vm4 = vcmp.lt.s32.totalorder %v5976_v8, 1  ;;  %v1492_v41 = vsel %vm1480_vm0, %v4205_v33, %v4235_v10 }
 0x191   :  { %v1627_v49 = vshll.u32 %v5912_v25, %v5984_v57  ;;  %v1628_v26 = vshrl.u32 %v5914_v24, %v5979_v47  ;;  %v1490_v13 = vsel %vm1478_vm4, %v4321_v16, %v1471_v40  ;;  %v4338_v7 = vshll.u32 %v1454_v42, 8 }
 0x192   :  { %v1632_v44 = vor.u32 %v4224_v23, %v5985_v51  ;;  %v1878_v9 = vxor.u32 2147483648, %v1877_v32  ;;  %v2010_v59 = vadd.s32 536870912, %v2009_v35  ;;  %vm1479_vm6 = vcmp.lt.s32.totalorder %v5976_v8, 2 }
 0x193   :  { %v1900_v33 = vadd.s32 3, %v1883_v46  ;;  %v1486_v10 = vsel %vm1478_vm4, %v4323_v60, %v4321_v16  ;;  %v1488_v27 = vsel %vm1480_vm0, %v1471_v40, %v4231_v30  ;;  %v1493_v17 = vsel %vm1479_vm6, %v1490_v13, %v1492_v41 }
 0x194   :  { %v1879_v23 = vsel %vm1758_vm15, %v1878_v9, %v1877_v32  ;;  %v4354_v39 = vshrl.u32 %v2010_v59, 30  ;;  %v1497_v2 = vand.u32 65535, %v1493_v17  ;;  %v1498_v31 = vshrl.u32 %v1493_v17, 16 }
 0x195   :  { %vm1636_vm13 = vcmp.lt.s32.totalorder %v5986_v6, 4  ;;  %v4360_v3 = vsel %vm4297_vm12, %v5965_v11, %v1879_v23  ;;  %v1495_v5 = vand.u32 65535, %v4338_v7  ;;  %v1496_v30 = vshrl.u32 %v4338_v7, 16 }
 0x196   :  { %v4364_v63 = vor.u32 %v1628_v26, %v1627_v49  ;;  %v1884_v1 = vmul.f32 %v4360_v3, %v4360_v3  ;;  %v2012_v61 = vshll.u32 %v4354_v39, 30  ;;  %v1489_v29 = vsel %vm1479_vm6, %v1486_v10, %v1488_v27 }
 0x197   :  { %v4373_v50 = vsel %vm1636_vm13, %v1632_v44, 1326507024  ;;  %v4375_v22 = vand.u32 3, %v1900_v33  ;;  %v1500_v15 = vmul.u32 %v1498_v31, %v1495_v5  ;;  %v4377_v20 = vmul.u32 %v1497_v2, %v1496_v30 }
 0x198   :  { %v1885_v56 = vmul.f32 -0.001358992, %v1884_v1  ;;  %v1892_v4 = vmul.f32 -0.00019511016, %v1884_v1  ;;  %v4379_v43 = vsub.s32 %v2009_v35, %v2012_v61  ;;  %v1483_v55 = vsel %vm1481_vm3, %v1471_v40, 2102212464 }
 0x199   :  { %v1499_v34 = vmul.u32 %v1497_v2, %v1495_v5  ;;  %v1503_v42 = vshll.u32 %v1500_v15, 16  ;;  %v1519_v45 = vand.u32 65535, %v1489_v29  ;;  %v1520_v12 = vshrl.u32 %v1489_v29, 16 }
 0x19a   :  { %v1886_v54 = vadd.f32 0.041655596, %v1885_v56  ;;  %v1893_v48 = vadd.f32 0.008332121, %v1892_v4  ;;  %vm2014_vm7 = vcmp.lt.s32.totalorder %v4379_v43, 0  ;;  %v2015_v46 = vsub.s32 0, %v4379_v43 }
 0x19b   :  { %v1502_v18 = vmul.u32 %v1498_v31, %v1496_v30  ;;  %v1505_v32 = vshll.u32 %v4377_v20, 16  ;;  %vm1507_vm14 = vc.u32 %v1499_v34, %v1503_v42  ;;  %v1509_v41 = vadd.s32 %v1503_v42, %v1499_v34 }
 0x19c   :  { %v1887_v35 = vmul.f32 %v1886_v54, %v1884_v1  ;;  %v1894_v49 = vmul.f32 %v1893_v48, %v1884_v1  ;;  %v2016_v26 = vsel %vm2014_vm7, %v2015_v46, %v4379_v43  ;;  %v1508_v40 = vsel %vm1507_vm14, 1, %v5950_v53 }
 0x19d   :  { %v2017_v13 = vclz %v2016_v26  ;;  %v1462_v51 = vshrl.u32 %v5948_v37, %v5970_v0  ;;  %v1510_v44 = vadd.s32 %v1508_v40, %v1502_v18  ;;  %vm1511_vm3 = vc.u32 %v1509_v41, %v1505_v32 }
 0x19e   :  { %v1888_v9 = vadd.f32 -0.4999988, %v1887_v35  ;;  %v1895_v59 = vadd.f32 -0.16666654, %v1894_v49  ;;  %v1512_v33 = vsel %vm1511_vm3, 1, %v5950_v53  ;;  %v1522_v10 = vmul.u32 %v1520_v12, %v1495_v5 }
 0x19f   :  { %vm1903_vm8 = vcmp.eq.s32.totalorder %v4375_v22, 0  ;;  %vm1906_vm9 = vcmp.eq.s32.totalorder %v4375_v22, 2  ;;  %v2005_v27 = vadd.s32 %v4291_v21, %v4284_v62  ;;  %v3020_v17 = vadd.s32 4294967294, %v2017_v13 }
 0x1a0   :  { %v1482_v23 = vsel %vm1478_vm4, %v1462_v51, %v4323_v60  ;;  %v1484_v0 = vsel %vm1480_vm0, %v4321_v16, %v1483_v55  ;;  %v1889_v2 = vmul.f32 %v1888_v9, %v1884_v1  ;;  %v1896_v31 = vmul.f32 %v1895_v59, %v1884_v1 }
 0x1a1   :  { %vm1902_vm10 = vcmp.lt.s32.totalorder %v4375_v22, 2  ;;  %v1514_v61 = vadd.s32 %v1512_v33, %v1510_v44  ;;  %v1523_v29 = vmul.u32 %v1519_v45, %v1496_v30  ;;  %vm1899_vm11 = vweird.f32 %v5965_v11 }
 0x1a2   :  { %vm3021_vm15 = vcmp.lt.s32.totalorder %v3020_v17, 0  ;;  %v2035_v62 = vsub.s32 4, %v4354_v39  ;;  %v1504_v21 = vshrl.u32 %v1500_v15, 16  ;;  %v1525_v56 = vshll.u32 %v1522_v10, 16 }
 0x1a3   :  { %v1890_v4 = vadd.f32 1.0, %v1889_v2  ;;  %v1897_v34 = vadd.f32 1.0, %v1896_v31  ;;  %v2020_v60 = vsel %vm3021_vm15, 0, %v3020_v17  ;;  %v1521_v42 = vmul.u32 %v1519_v45, %v1495_v5  ;;  %v5987_v5 = vld [vmem:[#allocation18_spill] sm:$0xff] }
 0x1a4   :  { %v2021_v54 = vsub.s32 32, %v2020_v60  ;;  %v2025_v48 = vsub.s32 4294967266, %v2020_v60  ;;  %v1515_v16 = vadd.s32 %v1514_v61, %v1504_v21  ;;  %v1524_v55 = vmul.u32 %v1520_v12, %v1496_v30 }
 0x1a5   :  { %v1898_v1 = vmul.f32 %v1897_v34, %v4360_v3  ;;  %v1907_v46 = vxor.u32 2147483648, %v1890_v4  ;;  %v2022_v18 = vshll.u32 %v4379_v43, %v2020_v60  ;;  %v1527_v32 = vshll.u32 %v1523_v29, 16 }
 0x1a6   :  { %v2023_v41 = vshrl.u32 %v2005_v27, %v2021_v54  ;;  %v2026_v35 = vadd.s32 127, %v2025_v48  ;;  %vm1529_vm1 = vc.u32 %v1521_v42, %v1525_v56  ;;  %v1531_v49 = vadd.s32 %v1525_v56, %v1521_v42 }
 0x1a7   :  { %v1904_v15 = vxor.u32 2147483648, %v1898_v1  ;;  %v1506_v26 = vshrl.u32 %v4377_v20, 16  ;;  %v1530_v40 = vsel %vm1529_vm1, 1, %v5950_v53  ;;  %v1601_v45 = vand.u32 2147483647, %v5987_v5 }
 0x1a8   :  { %vm4411_vm2 = vcmp.le.f32.partialorder %v1911_v28, 0.7853982  ;;  %v2024_v3 = vor.u32 %v2023_v41, %v2022_v18  ;;  %v2027_v43 = vshll.u32 %v2026_v35, 23  ;;  %v1532_v12 = vadd.s32 %v1530_v40, %v1524_v55 }
 0x1a9   :  { %vm1533_vm12 = vc.u32 %v1531_v49, %v1527_v32  ;;  %v1905_v13 = vsel %vm1903_vm8, %v1890_v4, %v1904_v15  ;;  %v1908_v20 = vsel %vm1906_vm9, %v1907_v46, %v1898_v1  ;;  %v1526_v51 = vshrl.u32 %v1522_v10, 16 }
 0x1aa   :  { %v1534_v44 = vsel %vm1533_vm12, 1, %v5950_v53  ;;  %v1909_v9 = vsel %vm1902_vm10, %v1905_v13, %v1908_v20  ;;  %v2028_v28 = vor.u32 4788187, %v2027_v43  ;;  %v4422_v59 = vadd.s32 %v1515_v16, %v1506_v26  ;;  %v5991_v43 = vld [vmem:[#allocation66_spill] sm:$0xff] }
 0x1ab   :  { %v1536_v33 = vadd.s32 %v1534_v44, %v1532_v12  ;;  %v1910_v27 = vsel %vm1899_vm11, nan, %v1909_v9  ;;  %vm1913_vm5 = vcmp.lt.s32.totalorder %v5971_v36, 0  ;;  %v1528_v17 = vshrl.u32 %v1523_v29, 16  ;;  %v5992_v12 = vld [vmem:[#allocation67_spill] sm:$0xff] }
 0x1ac   :  { %v4427_v2 = vadd.s32 %v1531_v49, %v1527_v32  ;;  %2737 = vmatpush.msra.mxu2 %v1910_v27  ;;  %v2029_v31 = vand.u32 2147483647, %v2028_v28  ;;  %v2031_v10 = vcvt.s32.f32 %v2024_v3  ;;  %v1608_v22 = vand.u32 8388607, %v1601_v45 }
 0x1ad   :  { %v1537_v61 = vadd.s32 %v1536_v33, %v1526_v51  ;;  %v2036_v21 = vsel %vm1913_vm5, %v2035_v62, %v4354_v39  ;;  %v1485_v11 = vsel %vm1479_vm6, %v1482_v23, %v1484_v0  ;;  %v1619_v56 = vshrl.u32 %v5949_v52, %v5979_v47  ;;  %v5990_v0 = vld [vmem:[#allocation58_spill] sm:$0xff] }
 0x1ae   :  { %v1622_v29 = vshrl.u32 %v5951_v58, %v5979_v47  ;;  %v2032_v4 = vmul.f32 %v2031_v10, %v2029_v31  ;;  %vm1541_vm0 = vc.u32 %v4422_v59, %v4427_v2  ;;  %v1621_v60 = vshll.u32 %v5949_v52, %v5984_v57 }
 0x1af   :  { %v1538_v34 = vadd.s32 %v1537_v61, %v1528_v17  ;;  %v1609_v42 = vor.u32 8388608, %v1608_v22  ;;  %v1618_v39 = vshll.u32 %v5948_v37, %v5984_v57  ;;  %v1624_v8 = vshll.u32 %v5951_v58, %v5984_v57  ;;  %v5993_v22 = vld [vmem:[#allocation64_spill] sm:$0xff] }
 0x1b0   :  { %v1625_v23 = vshrl.u32 %v5912_v25, %v5979_v47  ;;  %vm1171_vm4 = vcmp.lt.s32.totalorder %v5990_v0, 4  ;;  %v2033_v62 = vxor.u32 2147483648, %v2032_v4  ;;  %v1539_v54 = vmul.u32 %v4338_v7, %v1485_v11 }
 0x1b1   :  { %v1542_v48 = vadd.s32 1, %v1538_v34  ;;  %v4452_v16 = vor.u32 %v1622_v29, %v1621_v60  ;;  %v2038_v55 = vsel %vm4411_vm2, 0, %v2036_v21  ;;  %v4456_v1 = vor.u32 %v1619_v56, %v1618_v39 }
 0x1b2   :  { %v1626_v46 = vor.u32 %v1625_v23, %v1624_v8  ;;  %vm1635_vm6 = vcmp.lt.s32.totalorder %v5986_v6, 3  ;;  %v1642_v57 = vsel %vm1636_vm13, %v4364_v63, 920167782  ;;  %v2034_v18 = vsel %vm1913_vm5, %v2033_v62, %v2032_v4  ;;  %v5994_v4 = vld [vmem:[#allocation59_spill] sm:$0xff] }
 0x1b3   :  { %v1543_v7 = vsel %vm1541_vm0, %v1542_v48, %v1538_v34  ;;  %v1647_v32 = vsel %vm1635_vm6, %v4364_v63, %v4373_v50  ;;  %v4474_v41 = vsel %vm4411_vm2, %v5971_v36, %v2034_v18  ;;  %vm1633_vm7 = vcmp.lt.s32.totalorder %v5986_v6, 1  ;;  %v5995_v34 = vld [vmem:[#allocation61_spill] sm:$0xff] }
 0x1b4   :  { %v1544_v35 = vadd.s32 %v1543_v7, %v1539_v54  ;;  %v4477_v49 = vshll.u32 %v1609_v42, 8  ;;  %v2039_v15 = vmul.f32 %v4474_v41, %v4474_v41  ;;  %v2055_v26 = vadd.s32 3, %v2038_v55 }
 0x1b5   :  { %vm1634_vm14 = vcmp.lt.s32.totalorder %v5986_v6, 2  ;;  %v1645_v63 = vsel %vm1633_vm7, %v4452_v16, %v1626_v46  ;;  %v1641_v40 = vsel %vm1633_vm7, %v4456_v1, %v4452_v16  ;;  %v1643_v30 = vsel %vm1635_vm6, %v1626_v46, %v1642_v57 }
 0x1b6   :  { %v1545_v50 = vadd.s32 536870912, %v1544_v35  ;;  %v1648_v3 = vsel %vm1634_vm14, %v1645_v63, %v1647_v32  ;;  %v1322_v13 = vor.u32 %v5992_v12, %v5991_v43  ;;  %v2040_v20 = vmul.f32 -0.001358992, %v2039_v15 }
 0x1b7   :  { %v2047_v51 = vmul.f32 -0.00019511016, %v2039_v15  ;;  %v1652_v44 = vand.u32 65535, %v1648_v3  ;;  %v1650_v28 = vand.u32 65535, %v4477_v49  ;;  %v1651_v33 = vshrl.u32 %v4477_v49, 16 }
 0x1b8   :  { %v4495_v9 = vshrl.u32 %v1545_v50, 30  ;;  %v1653_v27 = vshrl.u32 %v1648_v3, 16  ;;  %v2041_v17 = vadd.f32 0.041655596, %v2040_v20  ;;  %v4499_v10 = vand.u32 3, %v2055_v26 }
 0x1b9   :  { %v2048_v31 = vadd.f32 0.008332121, %v2047_v51  ;;  %v1644_v61 = vsel %vm1634_vm14, %v1641_v40, %v1643_v30  ;;  %v4506_v21 = vsel %vm1171_vm4, %v5993_v22, 920167782  ;;  %v4509_v29 = vmul.u32 %v1652_v44, %v1651_v33 }
 0x1ba   :  { %v1547_v11 = vshll.u32 %v4495_v9, 30  ;;  %v1655_v56 = vmul.u32 %v1653_v27, %v1650_v28  ;;  %v5996_v60 = vor.u32 %v5994_v4, %v5995_v34  ;;  %v2042_v39 = vmul.f32 %v2041_v17, %v2039_v15 }
 0x1bb   :  { %v2049_v8 = vmul.f32 %v2048_v31, %v2039_v15  ;;  %v1617_v23 = vshrl.u32 %v5948_v37, %v5979_v47  ;;  %v1654_v54 = vmul.u32 %v1652_v44, %v1650_v28  ;;  %v1675_v55 = vshrl.u32 %v1644_v61, 16 }
 0x1bc   :  { %v4516_v42 = vsel %vm1171_vm4, %v5996_v60, 1326507024  ;;  %v4520_v62 = vsub.s32 %v1544_v35, %v1547_v11  ;;  %v1658_v48 = vshll.u32 %v1655_v56, 16  ;;  %v2043_v57 = vadd.f32 -0.4999988, %v2042_v39 }
 0x1bd   :  { %v2050_v18 = vadd.f32 -0.16666654, %v2049_v8  ;;  %vm2061_vm3 = vcmp.eq.s32.totalorder %v4499_v10, 2  ;;  %v1638_v7 = vsel %vm1636_vm13, %v1626_v46, 2102212464  ;;  %v1657_v32 = vmul.u32 %v1653_v27, %v1651_v33 }
 0x1be   :  { %vm2058_vm8 = vcmp.eq.s32.totalorder %v4499_v10, 0  ;;  %vm1549_vm9 = vcmp.lt.s32.totalorder %v4520_v62, 0  ;;  %v1550_v26 = vsub.s32 0, %v4520_v62  ;;  %v1660_v47 = vshll.u32 %v4509_v29, 16 }
 0x1bf   :  { %vm1662_vm10 = vc.u32 %v1654_v54, %v1658_v48  ;;  %v2044_v35 = vmul.f32 %v2043_v57, %v2039_v15  ;;  %v2051_v63 = vmul.f32 %v2050_v18, %v2039_v15  ;;  %vm2057_vm11 = vcmp.lt.s32.totalorder %v4499_v10, 2  ;;  %v5999_v10 = vld [vmem:[#allocation11_spill] sm:$0xff] }
 0x1c0   :  { %v1663_v50 = vsel %vm1662_vm10, 1, %v5950_v53  ;;  %v1664_v40 = vadd.s32 %v1658_v48, %v1654_v54  ;;  %vm2054_vm15 = vweird.f32 %v5971_v36  ;;  %v1551_v46 = vsel %vm1549_vm9, %v1550_v26, %v4520_v62 }
 0x1c1   :  { %v1665_v30 = vadd.s32 %v1663_v50, %v1657_v32  ;;  %v1674_v3 = vand.u32 65535, %v1644_v61  ;;  %v1677_v20 = vmul.u32 %v1675_v55, %v1650_v28  ;;  %v2045_v51 = vadd.f32 1.0, %v2044_v35 }
 0x1c2   :  { %v2052_v44 = vadd.f32 1.0, %v2051_v63  ;;  %v1552_v27 = vclz %v1551_v46  ;;  %vm1666_vm13 = vc.u32 %v1664_v40, %v1660_v47  ;;  %v1540_v17 = vadd.s32 %v4427_v2, %v4422_v59 }
 0x1c3   :  { %v1637_v15 = vsel %vm1633_vm7, %v1617_v23, %v4456_v1  ;;  %v1639_v31 = vsel %vm1635_vm6, %v4452_v16, %v1638_v7  ;;  %v1667_v11 = vsel %vm1666_vm13, 1, %v5950_v53  ;;  %v2062_v4 = vxor.u32 2147483648, %v2045_v51 }
 0x1c4   :  { %v2053_v61 = vmul.f32 %v2052_v44, %v4474_v41  ;;  %v3011_v34 = vadd.s32 4294967294, %v1552_v27  ;;  %v1669_v60 = vadd.s32 %v1667_v11, %v1665_v30  ;;  %v1659_v39 = vshrl.u32 %v1655_v56, 16 }
 0x1c5   :  { %v1676_v8 = vmul.u32 %v1674_v3, %v1650_v28  ;;  %v1678_v54 = vmul.u32 %v1674_v3, %v1651_v33  ;;  %v1680_v48 = vshll.u32 %v1677_v20, 16  ;;  %v1570_v2 = vsub.s32 4, %v4495_v9 }
 0x1c6   :  { %v2059_v59 = vxor.u32 2147483648, %v2053_v61  ;;  %vm3012_vm1 = vcmp.lt.s32.totalorder %v3011_v34, 0  ;;  %v1679_v1 = vmul.u32 %v1675_v55, %v1651_v33  ;;  %v2063_v23 = vsel %vm2061_vm3, %v2062_v4, %v2053_v61  ;;  %v6000_v4 = vld [vmem:[#allocation46_spill] sm:$0xff] }
 0x1c7   :  { %v1555_v16 = vsel %vm3012_vm1, 0, %v3011_v34  ;;  %v1670_v57 = vadd.s32 %v1669_v60, %v1659_v39  ;;  %vm1684_vm2 = vc.u32 %v1676_v8, %v1680_v48  ;;  %v1682_v56 = vshll.u32 %v1678_v54, 16  ;;  %v6001_v34 = vld [vmem:[#allocation53_spill] sm:$0xff] }
 0x1c8   :  { %v2060_v41 = vsel %vm2058_vm8, %v2045_v51, %v2059_v59  ;;  %v1556_v18 = vsub.s32 32, %v1555_v16  ;;  %v1560_v7 = vsub.s32 4294967266, %v1555_v16  ;;  %vm4552_vm12 = vcmp.le.f32.partialorder %v1446_v14, 0.7853982 }
 0x1c9   :  { %v2064_v28 = vsel %vm2057_vm11, %v2060_v41, %v2063_v23  ;;  %v1557_v33 = vshll.u32 %v4520_v62, %v1555_v16  ;;  %v1685_v55 = vsel %vm1684_vm2, 1, %v5950_v53  ;;  %v1686_v26 = vadd.s32 %v1680_v48, %v1676_v8 }
 0x1ca   :  { %v2065_v47 = vsel %vm2054_vm15, nan, %v2064_v28  ;;  %v1558_v35 = vshrl.u32 %v1540_v17, %v1556_v18  ;;  %v1561_v63 = vadd.s32 127, %v1560_v7  ;;  %v1687_v50 = vadd.s32 %v1685_v55, %v1679_v1 }
 0x1cb   :  { %2766 = vmatpush.msra.mxu3 %v2065_v47  ;;  %vm1448_vm5 = vcmp.lt.s32.totalorder %v5980_v38, 0  ;;  %v1640_v14 = vsel %vm1634_vm14, %v1637_v15, %v1639_v31  ;;  %vm1688_vm0 = vc.u32 %v1686_v26, %v1682_v56  ;;  %v1136_v40 = vand.u32 2147483647, %v5999_v10  ;;  %v6002_v47 = vld [vmem:[#allocation65_spill] sm:$0xff] }
 0x1cc   :  { %v1559_v46 = vor.u32 %v1558_v35, %v1557_v33  ;;  %v1562_v62 = vshll.u32 %v1561_v63, 23  ;;  %v1661_v30 = vshrl.u32 %v4509_v29, 16  ;;  %v1689_v3 = vsel %vm1688_vm0, 1, %v5950_v53 }
 0x1cd   :  { %v1571_v36 = vsel %vm1448_vm5, %v1570_v2, %v4495_v9  ;;  %v1681_v51 = vshrl.u32 %v1677_v20, 16  ;;  %v1683_v44 = vshrl.u32 %v1678_v54, 16  ;;  %v1691_v27 = vadd.s32 %v1689_v3, %v1687_v50 }
 0x1ce   :  { %v1563_v17 = vor.u32 4788187, %v1562_v62  ;;  %v1671_v11 = vadd.s32 %v1670_v57, %v1661_v30  ;;  %v1690_v6 = vadd.s32 %v1686_v26, %v1682_v56  ;;  %v1143_v15 = vand.u32 8388607, %v1136_v40 }
 0x1cf   :  { %v1566_v31 = vcvt.s32.f32 %v1559_v46  ;;  %v1692_v61 = vadd.s32 %v1691_v27, %v1681_v51  ;;  %v1153_v29 = vshll.u32 %v5948_v37, %v6000_v4  ;;  %v1154_v60 = vshrl.u32 %v5949_v52, %v6001_v34  ;;  %v6004_v27 = vld [vmem:[#allocation50_spill] sm:$0xff] }
 0x1d0   :  { %v1564_v39 = vand.u32 2147483647, %v1563_v17  ;;  %v1144_v8 = vor.u32 8388608, %v1143_v15  ;;  %v1156_v9 = vshll.u32 %v5949_v52, %v6000_v4  ;;  %v1157_v20 = vshrl.u32 %v5951_v58, %v6001_v34  ;;  %v6005_v17 = vld [vmem:[#allocation56_spill] sm:$0xff] }
 0x1d1   :  { %v1693_v54 = vadd.s32 %v1692_v61, %v1683_v44  ;;  %v4579_v48 = vor.u32 %v1154_v60, %v1153_v29  ;;  %v1159_v59 = vshll.u32 %v5951_v58, %v6000_v4  ;;  %v1160_v2 = vshrl.u32 %v5912_v25, %v6001_v34 }
 0x1d2   :  { %v1567_v1 = vmul.f32 %v1566_v31, %v1564_v39  ;;  %v1573_v23 = vsel %vm4552_vm12, 0, %v1571_v36  ;;  %vm1696_vm6 = vc.u32 %v1671_v11, %v1690_v6  ;;  %v4587_v16 = vor.u32 %v1157_v20, %v1156_v9 }
 0x1d3   :  { %v1697_v57 = vadd.s32 1, %v1693_v54  ;;  %v1161_v41 = vor.u32 %v1160_v2, %v1159_v59  ;;  %vm1168_vm7 = vcmp.lt.s32.totalorder %v5990_v0, 1  ;;  %vm1170_vm14 = vcmp.lt.s32.totalorder %v5990_v0, 3 }
 0x1d4   :  { %v1568_v18 = vxor.u32 2147483648, %v1567_v1  ;;  %v1694_v7 = vmul.u32 %v4477_v49, %v1640_v14  ;;  %v1176_v56 = vsel %vm1168_vm7, %v4579_v48, %v4587_v16  ;;  %v1182_v28 = vsel %vm1170_vm14, %v5993_v22, %v4516_v42  ;;  %v6003_v22 = vld [vmem:[#allocation68_spill] sm:$0xff] }
 0x1d5   :  { %v1698_v33 = vsel %vm1696_vm6, %v1697_v57, %v1693_v54  ;;  %v1178_v55 = vsel %vm1170_vm14, %v1161_v41, %v4506_v21  ;;  %v1180_v26 = vsel %vm1168_vm7, %v4587_v16, %v1161_v41  ;;  %v4606_v49 = vshll.u32 %v1144_v8, 8 }
 0x1d6   :  { %vm1326_vm3 = vcmp.lt.s32.totalorder %v6002_v47, 4  ;;  %v1569_v35 = vsel %vm1448_vm5, %v1568_v18, %v1567_v1  ;;  %v1699_v63 = vadd.s32 %v1698_v33, %v1694_v7  ;;  %vm1169_vm8 = vcmp.lt.s32.totalorder %v5990_v0, 2 }
 0x1d7   :  { %v4615_v42 = vsel %vm1326_vm3, %v6003_v22, 920167782  ;;  %v4620_v21 = vsel %vm4552_vm12, %v5980_v38, %v1569_v35  ;;  %v1590_v50 = vadd.s32 3, %v1573_v23  ;;  %v1183_v14 = vsel %vm1169_vm8, %v1180_v26, %v1182_v28 }
 0x1d8   :  { %v1574_v46 = vmul.f32 %v4620_v21, %v4620_v21  ;;  %v1700_v62 = vadd.s32 536870912, %v1699_v63  ;;  %v4628_v30 = vsel %vm1169_vm8, %v1176_v56, %v1178_v55  ;;  %v1187_v3 = vand.u32 65535, %v1183_v14 }
 0x1d9   :  { %v4635_v32 = vsel %vm1326_vm3, %v1322_v13, 1326507024  ;;  %v1185_v36 = vand.u32 65535, %v4606_v49  ;;  %v4639_v51 = vshrl.u32 %v4606_v49, 16  ;;  %v1188_v44 = vshrl.u32 %v1183_v14, 16 }
 0x1da   :  { %v4643_v15 = vor.u32 %v6005_v17, %v6004_v27  ;;  %v1575_v31 = vmul.f32 -0.001358992, %v1574_v46  ;;  %v1582_v61 = vmul.f32 -0.00019511016, %v1574_v46  ;;  %v1701_v4 = vshrl.u32 %v1700_v62, 30 }
 0x1db   :  { %v4645_v29 = vand.u32 3, %v1590_v50  ;;  %v1190_v43 = vmul.u32 %v1188_v44, %v1185_v36  ;;  %v4648_v12 = vmul.u32 %v1187_v3, %v4639_v51  ;;  %v1210_v13 = vshrl.u32 %v4628_v30, 16 }
 0x1dc   :  { %v1576_v60 = vadd.f32 0.041655596, %v1575_v31  ;;  %v1583_v39 = vadd.f32 0.008332121, %v1582_v61  ;;  %v4651_v8 = vadd.s32 %v1690_v6, %v1671_v11  ;;  %v1702_v9 = vshll.u32 %v1701_v4, 30 }
 0x1dd   :  { %v1152_v20 = vshrl.u32 %v5948_v37, %v6001_v34  ;;  %v1189_v54 = vmul.u32 %v1187_v3, %v1185_v36  ;;  %v1193_v59 = vshll.u32 %v1190_v43, 16  ;;  %v1209_v2 = vand.u32 65535, %v4628_v30 }
 0x1de   :  { %v1577_v1 = vmul.f32 %v1576_v60, %v1574_v46  ;;  %v1584_v23 = vmul.f32 %v1583_v39, %v1574_v46  ;;  %vm1603_vm9 = vcmp.lt.s32.totalorder %v5987_v5, 0  ;;  %v4657_v57 = vsub.s32 %v1699_v63, %v1702_v9 }
 0x1df   :  { %v1192_v18 = vmul.u32 %v1188_v44, %v4639_v51  ;;  %vm1596_vm10 = vcmp.eq.s32.totalorder %v4645_v29, 2  ;;  %v1195_v11 = vshll.u32 %v4648_v12, 16  ;;  %vm1197_vm11 = vc.u32 %v1189_v54, %v1193_v59 }
 0x1e0   :  { %v1199_v6 = vadd.s32 %v1193_v59, %v1189_v54  ;;  %v4662_v7 = vmul.u32 %v1210_v13, %v1185_v36  ;;  %v1578_v34 = vadd.f32 -0.4999988, %v1577_v1  ;;  %v1585_v56 = vadd.f32 -0.16666654, %v1584_v23 }
 0x1e1   :  { %vm1704_vm15 = vcmp.lt.s32.totalorder %v4657_v57, 0  ;;  %v1705_v28 = vsub.s32 0, %v4657_v57  ;;  %vm1593_vm13 = vcmp.eq.s32.totalorder %v4645_v29, 0  ;;  %v1725_v33 = vsub.s32 4, %v1701_v4 }
 0x1e2   :  { %v1173_v55 = vsel %vm1171_vm4, %v1161_v41, 2102212464  ;;  %v1198_v26 = vsel %vm1197_vm11, 1, %v5950_v53  ;;  %vm1201_vm1 = vc.u32 %v1199_v6, %v1195_v11  ;;  %v1579_v35 = vmul.f32 %v1578_v34, %v1574_v46  ;;  %v6008_v34 = vld [vmem:[#allocation12_spill] sm:$0xff] }
 0x1e3   :  { %v1586_v63 = vmul.f32 %v1585_v56, %v1574_v46  ;;  %vm1592_vm2 = vcmp.lt.s32.totalorder %v4645_v29, 2  ;;  %v1706_v50 = vsel %vm1704_vm15, %v1705_v28, %v4657_v57  ;;  %v1200_v14 = vadd.s32 %v1198_v26, %v1192_v18 }
 0x1e4   :  { %vm1589_vm12 = vweird.f32 %v5980_v38  ;;  %v1707_v62 = vclz %v1706_v50  ;;  %v1194_v30 = vshrl.u32 %v1190_v43, 16  ;;  %v1202_v3 = vsel %vm1201_vm1, 1, %v5950_v53 }
 0x1e5   :  { %v1213_v44 = vmul.u32 %v1209_v2, %v4639_v51  ;;  %v1580_v27 = vadd.f32 1.0, %v1579_v35  ;;  %v1587_v41 = vadd.f32 1.0, %v1586_v63  ;;  %v1204_v17 = vadd.s32 %v1202_v3, %v1200_v14  ;;  %v6009_v3 = vld [vmem:[#allocation47_spill] sm:$0xff] }
 0x1e6   :  { %v1215_v31 = vshll.u32 %v4662_v7, 16  ;;  %vm4678_vm4 = vcmp.le.f32.partialorder %v1601_v45, 0.7853982  ;;  %v3014_v61 = vadd.s32 4294967294, %v1707_v62  ;;  %v1172_v43 = vsel %vm1168_vm7, %v1152_v20, %v4579_v48 }
 0x1e7   :  { %v1174_v60 = vsel %vm1170_vm14, %v4587_v16, %v1173_v55  ;;  %v1211_v39 = vmul.u32 %v1209_v2, %v1185_v36  ;;  %v1588_v9 = vmul.f32 %v1587_v41, %v4620_v21  ;;  %v1597_v54 = vxor.u32 2147483648, %v1580_v27 }
 0x1e8   :  { %v1196_v59 = vshrl.u32 %v4648_v12, 16  ;;  %v1205_v1 = vadd.s32 %v1204_v17, %v1194_v30  ;;  %vm3015_vm5 = vcmp.lt.s32.totalorder %v3014_v61, 0  ;;  %v1726_v45 = vsel %vm1603_vm9, %v1725_v33, %v1701_v4  ;;  %v6010_v17 = vld [vmem:[#allocation54_spill] sm:$0xff] }
 0x1e9   :  { %v1214_v23 = vmul.u32 %v1210_v13, %v4639_v51  ;;  %vm1219_vm0 = vc.u32 %v1211_v39, %v1215_v31  ;;  %v1594_v18 = vxor.u32 2147483648, %v1588_v9  ;;  %v1598_v48 = vsel %vm1596_vm10, %v1597_v54, %v1588_v9 }
 0x1ea   :  { %v1710_v20 = vsel %vm3015_vm5, 0, %v3014_v61  ;;  %v1217_v16 = vshll.u32 %v1213_v44, 16  ;;  %v4695_v21 = vadd.s32 %v1205_v1, %v1196_v59  ;;  %v1220_v12 = vsel %vm1219_vm0, 1, %v5950_v53 }
 0x1eb   :  { %v1711_v36 = vsub.s32 32, %v1710_v20  ;;  %v1715_v2 = vsub.s32 4294967266, %v1710_v20  ;;  %v1595_v11 = vsel %vm1593_vm13, %v1580_v27, %v1594_v18  ;;  %v1221_v6 = vadd.s32 %v1215_v31, %v1211_v39 }
 0x1ec   :  { %v1222_v4 = vadd.s32 %v1220_v12, %v1214_v23  ;;  %v1291_v51 = vand.u32 2147483647, %v6008_v34  ;;  %v1599_v13 = vsel %vm1592_vm2, %v1595_v11, %v1598_v48  ;;  %v1712_v56 = vshll.u32 %v4657_v57, %v1710_v20  ;;  %v6012_v11 = vld [vmem:[#allocation51_spill] sm:$0xff] }
 0x1ed   :  { %v1713_v28 = vshrl.u32 %v4651_v8, %v1711_v36  ;;  %v1716_v33 = vadd.s32 127, %v1715_v2  ;;  %v1600_v55 = vsel %vm1589_vm12, nan, %v1599_v13  ;;  %v1175_v26 = vsel %vm1169_vm8, %v1172_v43, %v1174_v60 }
 0x1ee   :  { %vm1223_vm6 = vc.u32 %v1221_v6, %v1217_v16  ;;  %v4709_v35 = vadd.s32 %v1221_v6, %v1217_v16  ;;  %2738 = vmatpush.msra.mxu2 %v1600_v55  ;;  %v1298_v57 = vand.u32 8388607, %v1291_v51  ;;  %v1728_v8 = vsel %vm4678_vm4, 0, %v1726_v45  ;;  %v6013_v6 = vld [vmem:[#allocation57_spill] sm:$0xff] }
 0x1ef   :  { %v1714_v63 = vor.u32 %v1713_v28, %v1712_v56  ;;  %v1717_v50 = vshll.u32 %v1716_v33, 23  ;;  %v1224_v29 = vsel %vm1223_vm6, 1, %v5950_v53  ;;  %v1216_v38 = vshrl.u32 %v4662_v7, 16 }
 0x1f0   :  { %v1218_v14 = vshrl.u32 %v1213_v44, 16  ;;  %v1226_v62 = vadd.s32 %v1224_v29, %v1222_v4  ;;  %vm1231_vm7 = vc.u32 %v4695_v21, %v4709_v35  ;;  %v1299_v30 = vor.u32 8388608, %v1298_v57  ;;  %v6011_v44 = vld [vmem:[#allocation43_spill] sm:$0xff]  ;;  %v6014_v29 = vld [vmem:[#allocation52_spill] sm:$0xff] }
 0x1f1   :  { %v1718_v0 = vor.u32 4788187, %v1717_v50  ;;  %v1308_v27 = vshll.u32 %v5948_v37, %v6009_v3  ;;  %v1309_v31 = vshrl.u32 %v5949_v52, %v6010_v17  ;;  %v1311_v61 = vshll.u32 %v5949_v52, %v6009_v3 }
 0x1f2   :  { %v1227_v41 = vadd.s32 %v1226_v62, %v1216_v38  ;;  %v1312_v7 = vshrl.u32 %v5951_v58, %v6010_v17  ;;  %vm861_vm14 = vcmp.lt.s32.totalorder %v6011_v44, 4  ;;  %v1721_v60 = vcvt.s32.f32 %v1714_v63 }
 0x1f3   :  { %v1719_v43 = vand.u32 2147483647, %v1718_v0  ;;  %v1314_v39 = vshll.u32 %v5951_v58, %v6009_v3  ;;  %v1315_v9 = vshrl.u32 %v5912_v25, %v6010_v17  ;;  %v4732_v59 = vor.u32 %v1309_v31, %v1308_v27 }
 0x1f4   :  { %v1228_v54 = vadd.s32 %v1227_v41, %v1218_v14  ;;  %v4734_v1 = vor.u32 %v1312_v7, %v1311_v61  ;;  %vm1323_vm8 = vcmp.lt.s32.totalorder %v6002_v47, 1  ;;  %vm1325_vm10 = vcmp.lt.s32.totalorder %v6002_v47, 3 }
 0x1f5   :  { %v1722_v45 = vmul.f32 %v1721_v60, %v1719_v43  ;;  %v1316_v23 = vor.u32 %v1315_v9, %v1314_v39  ;;  %v4738_v18 = vshll.u32 %v1299_v30, 8  ;;  %v1229_v48 = vmul.u32 %v4606_v49, %v1175_v26 }
 0x1f6   :  { %v1232_v20 = vadd.s32 1, %v1228_v54  ;;  %v1331_v16 = vsel %vm1323_vm8, %v4732_v59, %v4734_v1  ;;  %v1337_v36 = vsel %vm1325_vm10, %v6003_v22, %v4635_v32  ;;  %vm1324_vm11 = vcmp.lt.s32.totalorder %v6002_v47, 2 }
 0x1f7   :  { %v1723_v2 = vxor.u32 2147483648, %v1722_v45  ;;  %v1333_v12 = vsel %vm1325_vm10, %v1316_v23, %v4615_v42  ;;  %v1335_v49 = vsel %vm1323_vm8, %v4734_v1, %v1316_v23  ;;  %v857_v4 = vor.u32 %v6013_v6, %v6012_v11 }
 0x1f8   :  { %v1745_v13 = vadd.s32 3, %v1728_v8  ;;  %v1233_v56 = vsel %vm1231_vm7, %v1232_v20, %v1228_v54  ;;  %v1338_v22 = vsel %vm1324_vm11, %v1335_v49, %v1337_v36  ;;  %v4767_v42 = vsel %vm1324_vm11, %v1331_v16, %v1333_v12  ;;  %v6015_v8 = vld [vmem:[#allocation45_spill] sm:$0xff] }
 0x1f9   :  { %v1724_v32 = vsel %vm1603_vm9, %v1723_v2, %v1722_v45  ;;  %v1234_v28 = vadd.s32 %v1233_v56, %v1229_v48  ;;  %v1340_v33 = vand.u32 65535, %v4738_v18  ;;  %v4776_v26 = vshrl.u32 %v4738_v18, 16 }
 0x1fa   :  { %v4773_v55 = vsel %vm4678_vm4, %v5987_v5, %v1724_v32  ;;  %v1342_v63 = vand.u32 65535, %v1338_v22  ;;  %v1343_v50 = vshrl.u32 %v1338_v22, 16  ;;  %v4780_v57 = vshrl.u32 %v5914_v24, %v6014_v29 }
 0x1fb   :  { %v4784_v38 = vshll.u32 %v5914_v24, %v6015_v8  ;;  %v1729_v14 = vmul.f32 %v4773_v55, %v4773_v55  ;;  %v1235_v62 = vadd.s32 536870912, %v1234_v28  ;;  %v4791_v46 = vsel %vm861_vm14, %v4643_v15, 920167782 }
 0x1fc   :  { %v1345_v0 = vmul.u32 %v1343_v50, %v1340_v33  ;;  %v4794_v30 = vmul.u32 %v1342_v63, %v4776_v26  ;;  %v1365_v3 = vshrl.u32 %v4767_v42, 16  ;;  %v4799_v27 = vshrl.u32 %v5921_v19, %v6014_v29 }
 0x1fd   :  { %v1730_v24 = vmul.f32 -0.001358992, %v1729_v14  ;;  %v1737_v41 = vmul.f32 -0.00019511016, %v1729_v14  ;;  %v4801_v31 = vshrl.u32 %v1235_v62, 30  ;;  %v4807_v7 = vand.u32 3, %v1745_v13 }
 0x1fe   :  { %v4805_v61 = vsel %vm861_vm14, %v857_v4, 1326507024  ;;  %v1344_v43 = vmul.u32 %v1342_v63, %v1340_v33  ;;  %v1348_v60 = vshll.u32 %v1345_v0, 16  ;;  %v4811_v54 = vadd.s32 %v4709_v35, %v4695_v21 }
 0x1ff   :  { %v1731_v39 = vadd.f32 0.041655596, %v1730_v24  ;;  %v1738_v9 = vadd.f32 0.008332121, %v1737_v41  ;;  %v1237_v45 = vshll.u32 %v4801_v31, 30  ;;  %v1350_v48 = vshll.u32 %v4794_v30, 16 }
 0x200   :  { %vm1352_vm9 = vc.u32 %v1344_v43, %v1348_v60  ;;  %v1354_v20 = vadd.s32 %v1348_v60, %v1344_v43  ;;  %v4815_v16 = vmul.u32 %v1365_v3, %v1340_v33  ;;  %v1364_v49 = vand.u32 65535, %v4767_v42 }
 0x201   :  { %v1732_v36 = vmul.f32 %v1731_v39, %v1729_v14  ;;  %v1739_v2 = vmul.f32 %v1738_v9, %v1729_v14  ;;  %v4817_v12 = vsub.s32 %v1234_v28, %v1237_v45  ;;  %v1307_v11 = vshrl.u32 %v5948_v37, %v6010_v17 }
 0x202   :  { %v1347_v21 = vmul.u32 %v1343_v50, %v4776_v26  ;;  %v1353_v35 = vsel %vm1352_vm9, 1, %v5950_v53  ;;  %vm1356_vm15 = vc.u32 %v1354_v20, %v1350_v48  ;;  %vm1751_vm13 = vcmp.eq.s32.totalorder %v4807_v7, 2 }
 0x203   :  { %v1733_v6 = vadd.f32 -0.4999988, %v1732_v36  ;;  %v1740_v4 = vadd.f32 -0.16666654, %v1739_v2  ;;  %vm1239_vm1 = vcmp.lt.s32.totalorder %v4817_v12, 0  ;;  %v1240_v13 = vsub.s32 0, %v4817_v12 }
 0x204   :  { %vm1748_vm2 = vcmp.eq.s32.totalorder %v4807_v7, 0  ;;  %v1328_v56 = vsel %vm1326_vm3, %v1316_v23, 2102212464  ;;  %v1355_v22 = vadd.s32 %v1353_v35, %v1347_v21  ;;  %v1357_v17 = vsel %vm1356_vm15, 1, %v5950_v53 }
 0x205   :  { %v1370_v32 = vshll.u32 %v4815_v16, 16  ;;  %v1734_v28 = vmul.f32 %v1733_v6, %v1729_v14  ;;  %v1741_v42 = vmul.f32 %v1740_v4, %v1729_v14  ;;  %vm1747_vm12 = vcmp.lt.s32.totalorder %v4807_v7, 2 }
 0x206   :  { %v1241_v63 = vsel %vm1239_vm1, %v1240_v13, %v4817_v12  ;;  %v1366_v50 = vmul.u32 %v1364_v49, %v1340_v33  ;;  %vm1744_vm4 = vweird.f32 %v5987_v5  ;;  %v1327_v24 = vsel %vm1323_vm8, %v1307_v11, %v4732_v59 }
 0x207   :  { %v1242_v62 = vclz %v1241_v63  ;;  %v1359_v23 = vadd.s32 %v1357_v17, %v1355_v22  ;;  %v1368_v41 = vmul.u32 %v1364_v49, %v4776_v26  ;;  %v1735_v43 = vadd.f32 1.0, %v1734_v28 }
 0x208   :  { %v1742_v60 = vadd.f32 1.0, %v1741_v42  ;;  %v1349_v39 = vshrl.u32 %v1345_v0, 16  ;;  %vm1374_vm3 = vc.u32 %v1366_v50, %v1370_v32  ;;  %vm1138_vm5 = vcmp.lt.s32.totalorder %v5999_v10, 0  ;;  %v6018_v42 = vld [vmem:[#allocation9_spill] sm:$0xff] }
 0x209   :  { %v3005_v14 = vadd.s32 4294967294, %v1242_v62  ;;  %v1329_v33 = vsel %vm1325_vm10, %v4734_v1, %v1328_v56  ;;  %v1351_v9 = vshrl.u32 %v4794_v30, 16  ;;  %v1369_v45 = vmul.u32 %v1365_v3, %v4776_v26 }
 0x20a   :  { %v1743_v59 = vmul.f32 %v1742_v60, %v4773_v55  ;;  %v1752_v48 = vxor.u32 2147483648, %v1735_v43  ;;  %v1360_v20 = vadd.s32 %v1359_v23, %v1349_v39  ;;  %v1375_v36 = vsel %vm1374_vm3, 1, %v5950_v53  ;;  %v6019_v39 = vld [vmem:[#allocation44_spill] sm:$0xff] }
 0x20b   :  { %vm3006_vm0 = vcmp.lt.s32.totalorder %v3005_v14, 0  ;;  %v1372_v0 = vshll.u32 %v1368_v41, 16  ;;  %v1376_v2 = vadd.s32 %v1370_v32, %v1366_v50  ;;  %v1377_v49 = vadd.s32 %v1375_v36, %v1369_v45 }
 0x20c   :  { %v1749_v11 = vxor.u32 2147483648, %v1743_v59  ;;  %v1245_v21 = vsel %vm3006_vm0, 0, %v3005_v14  ;;  %v1260_v35 = vsub.s32 4, %v4801_v31  ;;  %v1371_v1 = vshrl.u32 %v4815_v16, 16 }
 0x20d   :  { %v1753_v30 = vsel %vm1751_vm13, %v1752_v48, %v1743_v59  ;;  %v1246_v26 = vsub.s32 32, %v1245_v21  ;;  %v1250_v3 = vsub.s32 4294967266, %v1245_v21  ;;  %vm1378_vm6 = vc.u32 %v1376_v2, %v1372_v0 }
 0x20e   :  { %v1750_v55 = vsel %vm1748_vm2, %v1735_v43, %v1749_v11  ;;  %v1247_v6 = vshll.u32 %v4817_v12, %v1245_v21  ;;  %v4854_v4 = vadd.s32 %v1360_v20, %v1351_v9  ;;  %v1379_v13 = vsel %vm1378_vm6, 1, %v5950_v53 }
 0x20f   :  { %v1754_v56 = vsel %vm1747_vm12, %v1750_v55, %v1753_v30  ;;  %v1248_v16 = vshrl.u32 %v4811_v54, %v1246_v26  ;;  %v1251_v22 = vadd.s32 127, %v1250_v3  ;;  %v1381_v17 = vadd.s32 %v1379_v13, %v1377_v49  ;;  %v6022_v13 = vld [vmem:[#allocation48_spill] sm:$0xff] }
 0x210   :  { %v1755_v32 = vsel %vm1744_vm4, nan, %v1754_v56  ;;  %vm4864_vm7 = vcmp.le.f32.partialorder %v1136_v40, 0.7853982  ;;  %v4868_v12 = vadd.s32 %v1376_v2, %v1372_v0  ;;  %v826_v63 = vand.u32 2147483647, %v6018_v42 }
 0x211   :  { %2767 = vmatpush.msra.mxu3 %v1755_v32  ;;  %v1249_v7 = vor.u32 %v1248_v16, %v1247_v6  ;;  %v1252_v50 = vshll.u32 %v1251_v22, 23  ;;  %v1373_v62 = vshrl.u32 %v1368_v41, 16  ;;  %v1382_v54 = vadd.s32 %v1381_v17, %v1371_v1  ;;  %v6020_v41 = vld [vmem:[#allocation49_spill] sm:$0xff] }
 0x212   :  { %v1261_v5 = vsel %vm1138_vm5, %v1260_v35, %v4801_v31  ;;  %v1330_v23 = vsel %vm1324_vm11, %v1327_v24, %v1329_v33  ;;  %vm1386_vm8 = vc.u32 %v4854_v4, %v4868_v12  ;;  %v833_v40 = vand.u32 8388607, %v826_v63 }
 0x213   :  { %v1253_v43 = vor.u32 4788187, %v1252_v50  ;;  %v1383_v60 = vadd.s32 %v1382_v54, %v1373_v62  ;;  %v843_v14 = vshll.u32 %v5948_v37, %v6019_v39  ;;  %v844_v9 = vshrl.u32 %v5949_v52, %v6020_v41 }
 0x214   :  { %v1256_v45 = vcvt.s32.f32 %v1249_v7  ;;  %v834_v59 = vor.u32 8388608, %v833_v40  ;;  %v846_v47 = vshll.u32 %v5949_v52, %v6019_v39  ;;  %v847_v31 = vshrl.u32 %v5951_v58, %v6020_v41 }
 0x215   :  { %v1254_v24 = vand.u32 2147483647, %v1253_v43  ;;  %v1387_v33 = vadd.s32 1, %v1383_v60  ;;  %v849_v48 = vshll.u32 %v5951_v58, %v6019_v39  ;;  %v850_v20 = vshrl.u32 %v5912_v25, %v6020_v41 }
 0x216   :  { %v1263_v36 = vsel %vm4864_vm7, 0, %v1261_v5  ;;  %v1384_v0 = vmul.u32 %v4738_v18, %v1330_v23  ;;  %v845_v2 = vor.u32 %v844_v9, %v843_v14  ;;  %v848_v49 = vor.u32 %v847_v31, %v846_v47  ;;  %v6021_v18 = vld [vmem:[#allocation55_spill] sm:$0xff] }
 0x217   :  { %v1257_v11 = vmul.f32 %v1256_v45, %v1254_v24  ;;  %v1388_v21 = vsel %vm1386_vm8, %v1387_v33, %v1383_v60  ;;  %v851_v35 = vor.u32 %v850_v20, %v849_v48  ;;  %vm860_vm10 = vcmp.lt.s32.totalorder %v6011_v44, 3 }
 0x218   :  { %v1389_v1 = vadd.s32 %v1388_v21, %v1384_v0  ;;  %vm858_vm11 = vcmp.lt.s32.totalorder %v6011_v44, 1  ;;  %v872_v30 = vsel %vm860_vm10, %v4643_v15, %v4805_v61  ;;  %v4904_v26 = vshll.u32 %v834_v59, 8 }
 0x219   :  { %v4908_v3 = vor.u32 %v4780_v57, %v6021_v18  ;;  %v1258_v55 = vxor.u32 2147483648, %v1257_v11  ;;  %vm859_vm9 = vcmp.lt.s32.totalorder %v6011_v44, 2  ;;  %v870_v6 = vsel %vm858_vm11, %v848_v49, %v851_v35 }
 0x21a   :  { %vm1016_vm15 = vcmp.lt.s32.totalorder %v6022_v13, 4  ;;  %v1280_v56 = vadd.s32 3, %v1263_v36  ;;  %v1390_v16 = vadd.s32 536870912, %v1389_v1  ;;  %v873_v22 = vsel %vm859_vm9, %v870_v6, %v872_v30 }
 0x21b   :  { %v1259_v15 = vsel %vm1138_vm5, %v1258_v55, %v1257_v11  ;;  %v866_v57 = vsel %vm858_vm11, %v845_v2, %v848_v49  ;;  %v868_v61 = vsel %vm860_vm10, %v851_v35, %v4791_v46  ;;  %v4924_v17 = vand.u32 65535, %v4904_v26 }
 0x21c   :  { %v1262_v32 = vsel %vm4864_vm7, %v5999_v10, %v1259_v15  ;;  %v4929_v7 = vshrl.u32 %v1390_v16, 30  ;;  %v877_v50 = vand.u32 65535, %v873_v22  ;;  %v878_v62 = vshrl.u32 %v873_v22, 16 }
 0x21d   :  { %v1012_v54 = vor.u32 %v4799_v27, %v4784_v38  ;;  %v4936_v5 = vsel %vm1016_vm15, %v4908_v3, 920167782  ;;  %v1264_v46 = vmul.f32 %v1262_v32, %v1262_v32  ;;  %v842_v23 = vshrl.u32 %v5948_v37, %v6020_v41 }
 0x21e   :  { %v1392_v40 = vshll.u32 %v4929_v7, 30  ;;  %v863_v28 = vsel %vm861_vm14, %v851_v35, 2102212464  ;;  %v876_v43 = vshrl.u32 %v4904_v26, 16  ;;  %v880_v60 = vmul.u32 %v878_v62, %v4924_v17 }
 0x21f   :  { %v1265_v39 = vmul.f32 -0.001358992, %v1264_v46  ;;  %v1272_v38 = vmul.f32 -0.00019511016, %v1264_v46  ;;  %v4945_v27 = vand.u32 3, %v1280_v56  ;;  %v869_v14 = vsel %vm859_vm9, %v866_v57, %v868_v61 }
 0x220   :  { %v4949_v9 = vsub.s32 %v1389_v1, %v1392_v40  ;;  %v862_v41 = vsel %vm858_vm11, %v842_v23, %v845_v2  ;;  %v4953_v45 = vmul.u32 %v877_v50, %v876_v43  ;;  %v883_v59 = vshll.u32 %v880_v60, 16 }
 0x221   :  { %v1266_v47 = vadd.f32 0.041655596, %v1265_v39  ;;  %v1273_v31 = vadd.f32 0.008332121, %v1272_v38  ;;  %v864_v24 = vsel %vm860_vm10, %v848_v49, %v863_v28  ;;  %v879_v33 = vmul.u32 %v877_v50, %v4924_v17 }
 0x222   :  { %vm1394_vm14 = vcmp.lt.s32.totalorder %v4949_v9, 0  ;;  %v1395_v48 = vsub.s32 0, %v4949_v9  ;;  %v882_v20 = vmul.u32 %v878_v62, %v876_v43  ;;  %v899_v36 = vand.u32 65535, %v869_v14 }
 0x223   :  { %v1267_v0 = vmul.f32 %v1266_v47, %v1264_v46  ;;  %v1274_v11 = vmul.f32 %v1273_v31, %v1264_v46  ;;  %vm887_vm13 = vc.u32 %v879_v33, %v883_v59  ;;  %v889_v2 = vadd.s32 %v883_v59, %v879_v33 }
 0x224   :  { %v1396_v21 = vsel %vm1394_vm14, %v1395_v48, %v4949_v9  ;;  %v885_v35 = vshll.u32 %v4953_v45, 16  ;;  %v888_v1 = vsel %vm887_vm13, 1, %v5950_v53  ;;  %v900_v30 = vshrl.u32 %v869_v14, 16 }
 0x225   :  { %v1268_v49 = vadd.f32 -0.4999988, %v1267_v0  ;;  %v1275_v18 = vadd.f32 -0.16666654, %v1274_v11  ;;  %v1397_v55 = vclz %v1396_v21  ;;  %v890_v6 = vadd.s32 %v888_v1, %v882_v20  ;;  %v6023_v11 = vld [vmem:[#allocation10_spill] sm:$0xff] }
 0x226   :  { %v4965_v56 = vsel %vm1016_vm15, %v1012_v54, 1326507024  ;;  %vm1283_vm1 = vcmp.eq.s32.totalorder %v4945_v27, 0  ;;  %vm1286_vm2 = vcmp.eq.s32.totalorder %v4945_v27, 2  ;;  %vm891_vm12 = vc.u32 %v889_v2, %v885_v35 }
 0x227   :  { %v1269_v16 = vmul.f32 %v1268_v49, %v1264_v46  ;;  %v1276_v22 = vmul.f32 %v1275_v18, %v1264_v46  ;;  %vm1282_vm4 = vcmp.lt.s32.totalorder %v4945_v27, 2  ;;  %v3008_v15 = vadd.s32 4294967294, %v1397_v55 }
 0x228   :  { %v892_v57 = vsel %vm891_vm12, 1, %v5950_v53  ;;  %vm1279_vm3 = vweird.f32 %v5999_v10  ;;  %v1385_v61 = vadd.s32 %v4868_v12, %v4854_v4  ;;  %v4976_v50 = vsel %vm859_vm9, %v862_v41, %v864_v24 }
 0x229   :  { %v894_v62 = vadd.s32 %v892_v57, %v890_v6  ;;  %v902_v54 = vmul.u32 %v900_v30, %v4924_v17  ;;  %v1270_v23 = vadd.f32 1.0, %v1269_v16  ;;  %v1277_v40 = vadd.f32 1.0, %v1276_v22 }
 0x22a   :  { %vm3009_vm5 = vcmp.lt.s32.totalorder %v3008_v15, 0  ;;  %v903_v46 = vmul.u32 %v899_v36, %v876_v43  ;;  %v884_v39 = vshrl.u32 %v880_v60, 16  ;;  %v886_v38 = vshrl.u32 %v4953_v45, 16 }
 0x22b   :  { %v1400_v28 = vsel %vm3009_vm5, 0, %v3008_v15  ;;  %v905_v14 = vshll.u32 %v902_v54, 16  ;;  %v1278_v59 = vmul.f32 %v1277_v40, %v1262_v32  ;;  %v1287_v47 = vxor.u32 2147483648, %v1270_v23 }
 0x22c   :  { %v1401_v31 = vsub.s32 32, %v1400_v28  ;;  %v901_v4 = vmul.u32 %v899_v36, %v4924_v17  ;;  %v1402_v44 = vshll.u32 %v4949_v9, %v1400_v28  ;;  %v1405_v12 = vsub.s32 4294967266, %v1400_v28 }
 0x22d   :  { %v895_v41 = vadd.s32 %v894_v62, %v884_v39  ;;  %v904_v24 = vmul.u32 %v900_v30, %v876_v43  ;;  %v1284_v33 = vxor.u32 2147483648, %v1278_v59  ;;  %v907_v20 = vshll.u32 %v903_v46, 16 }
 0x22e   :  { %v1403_v48 = vshrl.u32 %v1385_v61, %v1401_v31  ;;  %vm909_vm0 = vc.u32 %v901_v4, %v905_v14  ;;  %v1288_v60 = vsel %vm1286_vm2, %v1287_v47, %v1278_v59  ;;  %vm1293_vm6 = vcmp.lt.s32.totalorder %v6008_v34, 0 }
 0x22f   :  { %v1406_v45 = vadd.s32 127, %v1405_v12  ;;  %v910_v32 = vsel %vm909_vm0, 1, %v5950_v53  ;;  %v911_v0 = vadd.s32 %v905_v14, %v901_v4  ;;  %v1285_v17 = vsel %vm1283_vm1, %v1270_v23, %v1284_v33 }
 0x230   :  { %v1404_v9 = vor.u32 %v1403_v48, %v1402_v44  ;;  %v912_v36 = vadd.s32 %v910_v32, %v904_v24  ;;  %v981_v43 = vand.u32 2147483647, %v6023_v11  ;;  %v1289_v2 = vsel %vm1282_vm4, %v1285_v17, %v1288_v60  ;;  %v6027_v48 = vld [vmem:[#allocation36_spill] sm:$0xff]  ;;  %v6030_v17 = vld [vmem:[#allocation41_spill] sm:$0xff] }
 0x231   :  { %v1407_v21 = vshll.u32 %v1406_v45, 23  ;;  %v1415_v35 = vsub.s32 4, %v4929_v7  ;;  %vm913_vm7 = vc.u32 %v911_v0, %v907_v20  ;;  %v1290_v1 = vsel %vm1279_vm3, nan, %v1289_v2 }
 0x232   :  { %vm4996_vm8 = vcmp.le.f32.partialorder %v1291_v51, 0.7853982  ;;  %v5000_v49 = vadd.s32 %v895_v41, %v886_v38  ;;  %v906_v18 = vshrl.u32 %v902_v54, 16  ;;  %v914_v55 = vsel %vm913_vm7, 1, %v5950_v53  ;;  %2739 = vmatpush.msra.mxu2 %v1290_v1  ;;  %v6026_v38 = vld [vmem:[#allocation32_spill] sm:$0xff] }
 0x233   :  { %v1408_v27 = vor.u32 4788187, %v1407_v21  ;;  %v908_v6 = vshrl.u32 %v903_v46, 16  ;;  %v5003_v16 = vadd.s32 %v911_v0, %v907_v20  ;;  %v916_v22 = vadd.s32 %v914_v55, %v912_v36  ;;  %v6028_v20 = vld [vmem:[#allocation40_spill] sm:$0xff]  ;;  %v6029_v0 = vld [vmem:[#allocation37_spill] sm:$0xff]  ;;  %v6031_v55 = vld [vmem:[#allocation35_spill] sm:$0xff] }
 0x234   :  { %v1411_v15 = vcvt.s32.f32 %v1404_v9  ;;  %v988_v10 = vand.u32 8388607, %v981_v43  ;;  %v998_v51 = vshll.u32 %v5948_v37, %v6015_v8  ;;  %v999_v57 = vshrl.u32 %v5949_v52, %v6014_v29 }
 0x235   :  { %v1409_v61 = vand.u32 2147483647, %v1408_v27  ;;  %v917_v62 = vadd.s32 %v916_v22, %v906_v18  ;;  %v1001_v54 = vshll.u32 %v5949_v52, %v6015_v8  ;;  %v1002_v23 = vshrl.u32 %v5951_v58, %v6014_v29 }
 0x236   :  { %v989_v40 = vor.u32 8388608, %v988_v10  ;;  %v5015_v46 = vor.u32 %v999_v57, %v998_v51  ;;  %v1004_v28 = vshll.u32 %v5951_v58, %v6015_v8  ;;  %v1005_v39 = vshrl.u32 %v5912_v25, %v6014_v29 }
 0x237   :  { %vm551_vm10 = vcmp.lt.s32.totalorder %v6026_v38, 4  ;;  %v1412_v14 = vmul.f32 %v1411_v15, %v1409_v61  ;;  %v918_v59 = vadd.s32 %v917_v62, %v908_v6  ;;  %v919_v47 = vmul.u32 %v4904_v26, %v4976_v50 }
 0x238   :  { %v5024_v31 = vor.u32 %v1002_v23, %v1001_v54  ;;  %v1416_v4 = vsel %vm1293_vm6, %v1415_v35, %v4929_v7  ;;  %vm921_vm11 = vc.u32 %v5000_v49, %v5003_v16  ;;  %v5031_v8 = vor.u32 %v1005_v39, %v1004_v28 }
 0x239   :  { %vm1015_vm9 = vcmp.lt.s32.totalorder %v6022_v13, 3  ;;  %v1413_v44 = vxor.u32 2147483648, %v1412_v14  ;;  %v922_v12 = vadd.s32 1, %v918_v59  ;;  %vm1013_vm14 = vcmp.lt.s32.totalorder %v6022_v13, 1 }
 0x23a   :  { %v1027_v26 = vsel %vm1015_vm9, %v4908_v3, %v4965_v56  ;;  %v1021_v7 = vsel %vm1013_vm14, %v5015_v46, %v5024_v31  ;;  %v1023_v50 = vsel %vm1015_vm9, %v5031_v8, %v4936_v5  ;;  %v1025_v41 = vsel %vm1013_vm14, %v5024_v31, %v5031_v8 }
 0x23b   :  { %v5051_v24 = vshll.u32 %v989_v40, 8  ;;  %v1414_v3 = vsel %vm1293_vm6, %v1413_v44, %v1412_v14  ;;  %v1418_v56 = vsel %vm4996_vm8, 0, %v1416_v4  ;;  %v923_v33 = vsel %vm921_vm11, %v922_v12, %v918_v59 }
 0x23c   :  { %vm1014_vm13 = vcmp.lt.s32.totalorder %v6022_v13, 2  ;;  %v5060_v60 = vor.u32 %v6028_v20, %v6027_v48  ;;  %v5065_v5 = vsel %vm4996_vm8, %v6008_v34, %v1414_v3  ;;  %v924_v45 = vadd.s32 %v923_v33, %v919_v47  ;;  %v6036_v13 = vld [vmem:[#allocation33_spill] sm:$0xff] }
 0x23d   :  { %v1028_v32 = vsel %vm1014_vm13, %v1025_v41, %v1027_v26  ;;  %v547_v9 = vor.u32 %v6030_v17, %v6029_v0  ;;  %v1419_v36 = vmul.f32 %v5065_v5, %v5065_v5  ;;  %v5075_v2 = vsel %vm1014_vm13, %v1021_v7, %v1023_v50 }
 0x23e   :  { %v1032_v21 = vand.u32 65535, %v1028_v32  ;;  %v1435_v35 = vadd.s32 3, %v1418_v56  ;;  %v925_v1 = vadd.s32 536870912, %v924_v45  ;;  %v1030_v30 = vand.u32 65535, %v5051_v24 }
 0x23f   :  { %v1033_v18 = vshrl.u32 %v1028_v32, 16  ;;  %v5080_v27 = vshrl.u32 %v5921_v19, %v6031_v55  ;;  %v1420_v6 = vmul.f32 -0.001358992, %v1419_v36  ;;  %v1427_v22 = vmul.f32 -0.00019511016, %v1419_v36 }
 0x240   :  { %v5083_v15 = vshrl.u32 %v5051_v24, 16  ;;  %v5088_v10 = vsel %vm551_vm10, %v5060_v60, 920167782  ;;  %v5090_v51 = vshrl.u32 %v925_v1, 30  ;;  %v1055_v61 = vshrl.u32 %v5075_v2, 16 }
 0x241   :  { %v1035_v57 = vmul.u32 %v1033_v18, %v1030_v30  ;;  %v5095_v62 = vsel %vm551_vm10, %v547_v9, 1326507024  ;;  %v1421_v19 = vadd.f32 0.041655596, %v1420_v6  ;;  %v1428_v54 = vadd.f32 0.008332121, %v1427_v22 }
 0x242   :  { %v5098_v23 = vmul.u32 %v1032_v21, %v5083_v15  ;;  %v5100_v40 = vand.u32 3, %v1435_v35  ;;  %v927_v28 = vshll.u32 %v5090_v51, 30  ;;  %v1034_v39 = vmul.u32 %v1032_v21, %v1030_v30 }
 0x243   :  { %v1038_v14 = vshll.u32 %v1035_v57, 16  ;;  %v1422_v59 = vmul.f32 %v1421_v19, %v1419_v36  ;;  %v1429_v47 = vmul.f32 %v1428_v54, %v1419_v36  ;;  %v1037_v4 = vmul.u32 %v1033_v18, %v5083_v15 }
 0x244   :  { %v1054_v44 = vand.u32 65535, %v5075_v2  ;;  %v5105_v12 = vsub.s32 %v924_v45, %v927_v28  ;;  %v5107_v7 = vmul.u32 %v1055_v61, %v1030_v30  ;;  %v1040_v3 = vshll.u32 %v5098_v23, 16 }
 0x245   :  { %vm1042_vm1 = vc.u32 %v1034_v39, %v1038_v14  ;;  %v1044_v26 = vadd.s32 %v1038_v14, %v1034_v39  ;;  %v1423_v50 = vadd.f32 -0.4999988, %v1422_v59  ;;  %v1430_v41 = vadd.f32 -0.16666654, %v1429_v47 }
 0x246   :  { %v1043_v56 = vsel %vm1042_vm1, 1, %v5950_v53  ;;  %vm1438_vm2 = vcmp.eq.s32.totalorder %v5100_v40, 0  ;;  %vm1441_vm12 = vcmp.eq.s32.totalorder %v5100_v40, 2  ;;  %vm929_vm4 = vcmp.lt.s32.totalorder %v5105_v12, 0 }
 0x247   :  { %v930_v33 = vsub.s32 0, %v5105_v12  ;;  %v997_v48 = vshrl.u32 %v5948_v37, %v6014_v29  ;;  %v1045_v20 = vadd.s32 %v1043_v56, %v1037_v4  ;;  %v1424_v45 = vmul.f32 %v1423_v50, %v1419_v36 }
 0x248   :  { %v1431_v32 = vmul.f32 %v1430_v41, %v1419_v36  ;;  %vm1437_vm3 = vcmp.lt.s32.totalorder %v5100_v40, 2  ;;  %v1018_v0 = vsel %vm1016_vm15, %v5031_v8, 2102212464  ;;  %vm1046_vm5 = vc.u32 %v1044_v26, %v1040_v3 }
 0x249   :  { %vm1434_vm0 = vweird.f32 %v6008_v34  ;;  %v931_v17 = vsel %vm929_vm4, %v930_v33, %v5105_v12  ;;  %v1047_v9 = vsel %vm1046_vm5, 1, %v5950_v53  ;;  %v1058_v2 = vmul.u32 %v1054_v44, %v5083_v15 }
 0x24a   :  { %v1060_v29 = vshll.u32 %v5107_v7, 16  ;;  %v1425_v21 = vadd.f32 1.0, %v1424_v45  ;;  %v1432_v35 = vadd.f32 1.0, %v1431_v32  ;;  %v932_v36 = vclz %v931_v17  ;;  %v6034_v45 = vld [vmem:[#allocation7_spill] sm:$0xff] }
 0x24b   :  { %v1049_v1 = vadd.s32 %v1047_v9, %v1045_v20  ;;  %v920_v18 = vadd.s32 %v5003_v16, %v5000_v49  ;;  %v1017_v8 = vsel %vm1013_vm14, %v997_v48, %v5015_v46  ;;  %v1039_v6 = vshrl.u32 %v1035_v57, 16 }
 0x24c   :  { %v1056_v22 = vmul.u32 %v1054_v44, %v1030_v30  ;;  %v1433_v19 = vmul.f32 %v1432_v35, %v5065_v5  ;;  %v1442_v54 = vxor.u32 2147483648, %v1425_v21  ;;  %vm828_vm15 = vcmp.lt.s32.totalorder %v6018_v42, 0  ;;  %v6035_v35 = vld [vmem:[#allocation24_spill] sm:$0xff] }
 0x24d   :  { %v2999_v28 = vadd.s32 4294967294, %v932_v36  ;;  %v1019_v39 = vsel %vm1015_vm9, %v5024_v31, %v1018_v0  ;;  %v1050_v14 = vadd.s32 %v1049_v1, %v1039_v6  ;;  %v1062_v59 = vshll.u32 %v1058_v2, 16 }
 0x24e   :  { %vm1064_vm6 = vc.u32 %v1056_v22, %v1060_v29  ;;  %v1066_v49 = vadd.s32 %v1060_v29, %v1056_v22  ;;  %v1439_v16 = vxor.u32 2147483648, %v1433_v19  ;;  %v950_v46 = vsub.s32 4, %v5090_v51 }
 0x24f   :  { %vm3000_vm7 = vcmp.lt.s32.totalorder %v2999_v28, 0  ;;  %v1041_v30 = vshrl.u32 %v5098_v23, 16  ;;  %v1059_v5 = vmul.u32 %v1055_v61, %v5083_v15  ;;  %v1065_v47 = vsel %vm1064_vm6, 1, %v5950_v53 }
 0x250   :  { %v935_v57 = vsel %vm3000_vm7, 0, %v2999_v28  ;;  %vm1068_vm8 = vc.u32 %v1066_v49, %v1062_v59  ;;  %v1440_v4 = vsel %vm1438_vm2, %v1425_v21, %v1439_v16  ;;  %v1443_v31 = vsel %vm1441_vm12, %v1442_v54, %v1433_v19 }
 0x251   :  { %v936_v44 = vsub.s32 32, %v935_v57  ;;  %v940_v26 = vsub.s32 4294967266, %v935_v57  ;;  %v1444_v50 = vsel %vm1437_vm3, %v1440_v4, %v1443_v31  ;;  %v5146_v41 = vadd.s32 %v1050_v14, %v1041_v30  ;;  %v6037_v30 = vld [vmem:[#allocation38_spill] sm:$0xff] }
 0x252   :  { %v1067_v23 = vadd.s32 %v1065_v47, %v1059_v5  ;;  %v1069_v3 = vsel %vm1068_vm8, 1, %v5950_v53  ;;  %v1445_v15 = vsel %vm1434_vm0, nan, %v1444_v50  ;;  %v937_v61 = vshll.u32 %v5105_v12, %v935_v57  ;;  %v6038_v57 = vld [vmem:[#allocation42_spill] sm:$0xff] }
 0x253   :  { %v938_v56 = vshrl.u32 %v920_v18, %v936_v44  ;;  %v941_v33 = vadd.s32 127, %v940_v26  ;;  %2768 = vmatpush.msra.mxu3 %v1445_v15  ;;  %vm5154_vm11 = vcmp.le.f32.partialorder %v826_v63, 0.7853982  ;;  %v1061_v40 = vshrl.u32 %v5107_v7, 16 }
 0x254   :  { %v1071_v20 = vadd.s32 %v1069_v3, %v1067_v23  ;;  %v516_v32 = vand.u32 2147483647, %v6034_v45  ;;  %v1020_v34 = vsel %vm1014_vm13, %v1017_v8, %v1019_v39  ;;  %v5162_v12 = vadd.s32 %v1066_v49, %v1062_v59 }
 0x255   :  { %v939_v0 = vor.u32 %v938_v56, %v937_v61  ;;  %v942_v17 = vshll.u32 %v941_v33, 23  ;;  %v951_v9 = vsel %vm828_vm15, %v950_v46, %v5090_v51  ;;  %v1063_v63 = vshrl.u32 %v1058_v2, 16 }
 0x256   :  { %v1072_v29 = vadd.s32 %v1071_v20, %v1061_v40  ;;  %v523_v21 = vand.u32 8388607, %v516_v32  ;;  %vm1076_vm9 = vc.u32 %v5146_v41, %v5162_v12  ;;  %v533_v36 = vshll.u32 %v5948_v37, %v6035_v35  ;;  %v6039_v20 = vld [vmem:[#allocation39_spill] sm:$0xff] }
 0x257   :  { %v943_v7 = vor.u32 4788187, %v942_v17  ;;  %v534_v1 = vshrl.u32 %v5949_v52, %v6036_v13  ;;  %v536_v51 = vshll.u32 %v5949_v52, %v6035_v35  ;;  %v537_v2 = vshrl.u32 %v5951_v58, %v6036_v13  ;;  %v6040_v17 = vld [vmem:[#allocation34_spill] sm:$0xff] }
 0x258   :  { %v1073_v18 = vadd.s32 %v1072_v29, %v1063_v63  ;;  %v524_v8 = vor.u32 8388608, %v523_v21  ;;  %v946_v22 = vcvt.s32.f32 %v939_v0  ;;  %v539_v19 = vshll.u32 %v5951_v58, %v6035_v35 }
 0x259   :  { %v944_v6 = vand.u32 2147483647, %v943_v7  ;;  %v540_v54 = vshrl.u32 %v5912_v25, %v6036_v13  ;;  %v953_v28 = vsel %vm5154_vm11, 0, %v951_v9  ;;  %v535_v14 = vor.u32 %v534_v1, %v533_v36 }
 0x25a   :  { %v1077_v39 = vadd.s32 1, %v1073_v18  ;;  %v538_v59 = vor.u32 %v537_v2, %v536_v51  ;;  %v1074_v16 = vmul.u32 %v5051_v24, %v1020_v34  ;;  %vm550_vm14 = vcmp.lt.s32.totalorder %v6026_v38, 3 }
 0x25b   :  { %v947_v49 = vmul.f32 %v946_v22, %v944_v6  ;;  %v541_v46 = vor.u32 %v540_v54, %v539_v19  ;;  %v5189_v5 = vor.u32 %v6038_v57, %v6037_v30  ;;  %v562_v4 = vsel %vm550_vm14, %v5060_v60, %v5095_v62 }
 0x25c   :  { %v1078_v47 = vsel %vm1076_vm9, %v1077_v39, %v1073_v18  ;;  %v5198_v31 = vshll.u32 %v524_v8, 8  ;;  %v970_v24 = vadd.s32 3, %v953_v28  ;;  %vm548_vm13 = vcmp.lt.s32.totalorder %v6026_v38, 1 }
 0x25d   :  { %v948_v44 = vxor.u32 2147483648, %v947_v49  ;;  %v1079_v26 = vadd.s32 %v1078_v47, %v1074_v16  ;;  %vm549_vm1 = vcmp.lt.s32.totalorder %v6026_v38, 2  ;;  %v556_v50 = vsel %vm548_vm13, %v535_v14, %v538_v59 }
 0x25e   :  { %v558_v23 = vsel %vm550_vm14, %v541_v46, %v5088_v10  ;;  %v560_v3 = vsel %vm548_vm13, %v538_v59, %v541_v46  ;;  %v5214_v61 = vand.u32 65535, %v5198_v31  ;;  %v5222_v10 = vshrl.u32 %v5198_v31, 16 }
 0x25f   :  { %v949_v60 = vsel %vm828_vm15, %v948_v44, %v947_v49  ;;  %v1080_v62 = vadd.s32 536870912, %v1079_v26  ;;  %v563_v15 = vsel %vm549_vm1, %v560_v3, %v562_v4  ;;  %v702_v0 = vor.u32 %v5080_v27, %v6039_v20 }
 0x260   :  { %v5219_v56 = vsel %vm5154_vm11, %v6018_v42, %v949_v60  ;;  %v567_v33 = vand.u32 65535, %v563_v15  ;;  %v568_v40 = vshrl.u32 %v563_v15, 16  ;;  %vm706_vm2 = vcmp.lt.s32.totalorder %v6040_v17, 4 }
 0x261   :  { %v954_v34 = vmul.f32 %v5219_v56, %v5219_v56  ;;  %v5229_v9 = vshrl.u32 %v1080_v62, 30  ;;  %v559_v48 = vsel %vm549_vm1, %v556_v50, %v558_v23  ;;  %v532_v63 = vshrl.u32 %v5948_v37, %v6036_v13 }
 0x262   :  { %v553_v29 = vsel %vm551_vm10, %v541_v46, 2102212464  ;;  %v570_v21 = vmul.u32 %v568_v40, %v5214_v61  ;;  %v5239_v27 = vmul.u32 %v567_v33, %v5222_v10  ;;  %v5241_v36 = vand.u32 3, %v970_v24 }
 0x263   :  { %v955_v7 = vmul.f32 -0.001358992, %v954_v34  ;;  %v962_v35 = vmul.f32 -0.00019511016, %v954_v34  ;;  %v1082_v1 = vshll.u32 %v5229_v9, 30  ;;  %v552_v18 = vsel %vm548_vm13, %v532_v63, %v535_v14 }
 0x264   :  { %v569_v8 = vmul.u32 %v567_v33, %v5214_v61  ;;  %v573_v13 = vshll.u32 %v570_v21, 16  ;;  %v590_v51 = vshrl.u32 %v559_v48, 16  ;;  %v554_v19 = vsel %vm550_vm14, %v538_v59, %v553_v29 }
 0x265   :  { %v956_v2 = vadd.f32 0.041655596, %v955_v7  ;;  %v963_v6 = vadd.f32 0.008332121, %v962_v35  ;;  %v5247_v22 = vsub.s32 %v1079_v26, %v1082_v1  ;;  %v572_v54 = vmul.u32 %v568_v40, %v5222_v10 }
 0x266   :  { %v575_v28 = vshll.u32 %v5239_v27, 16  ;;  %vm577_vm10 = vc.u32 %v569_v8, %v573_v13  ;;  %v579_v39 = vadd.s32 %v573_v13, %v569_v8  ;;  %v589_v30 = vand.u32 65535, %v559_v48 }
 0x267   :  { %v957_v49 = vmul.f32 %v956_v2, %v954_v34  ;;  %v964_v16 = vmul.f32 %v963_v6, %v954_v34  ;;  %vm1084_vm12 = vcmp.lt.s32.totalorder %v5247_v22, 0  ;;  %v1085_v14 = vsub.s32 0, %v5247_v22 }
 0x268   :  { %v578_v46 = vsel %vm577_vm10, 1, %v5950_v53  ;;  %vm581_vm4 = vc.u32 %v579_v39, %v575_v28  ;;  %v5257_v57 = vmul.u32 %v590_v51, %v5214_v61  ;;  %v5263_v24 = vsel %vm706_vm2, %v5189_v5, 920167782 }
 0x269   :  { %v958_v59 = vadd.f32 -0.4999988, %v957_v49  ;;  %v965_v47 = vadd.f32 -0.16666654, %v964_v16  ;;  %v1086_v4 = vsel %vm1084_vm12, %v1085_v14, %v5247_v22  ;;  %v580_v44 = vadd.s32 %v578_v46, %v572_v54 }
 0x26a   :  { %v5267_v26 = vsel %vm706_vm2, %v702_v0, 1326507024  ;;  %v1087_v50 = vclz %v1086_v4  ;;  %v582_v23 = vsel %vm581_vm4, 1, %v5950_v53  ;;  %vm972_vm3 = vcmp.lt.s32.totalorder %v5241_v36, 2 }
 0x26b   :  { %v959_v3 = vmul.f32 %v958_v59, %v954_v34  ;;  %v966_v60 = vmul.f32 %v965_v47, %v954_v34  ;;  %vm973_vm5 = vcmp.eq.s32.totalorder %v5241_v36, 0  ;;  %vm976_vm0 = vcmp.eq.s32.totalorder %v5241_v36, 2 }
 0x26c   :  { %vm969_vm15 = vweird.f32 %v6018_v42  ;;  %v1075_v62 = vadd.s32 %v5162_v12, %v5146_v41  ;;  %v3002_v15 = vadd.s32 4294967294, %v1087_v50  ;;  %v5278_v33 = vsel %vm549_vm1, %v552_v18, %v554_v19 }
 0x26d   :  { %v584_v40 = vadd.s32 %v582_v23, %v580_v44  ;;  %v960_v20 = vadd.f32 1.0, %v959_v3  ;;  %v967_v0 = vadd.f32 1.0, %v966_v60  ;;  %v593_v34 = vmul.u32 %v589_v30, %v5222_v10  ;;  %v6044_v60 = vld [vmem:[#allocation25_spill] sm:$0xff] }
 0x26e   :  { %v595_v48 = vshll.u32 %v5257_v57, 16  ;;  %vm3003_vm6 = vcmp.lt.s32.totalorder %v3002_v15, 0  ;;  %v574_v63 = vshrl.u32 %v570_v21, 16  ;;  %v576_v29 = vshrl.u32 %v5239_v27, 16 }
 0x26f   :  { %v591_v7 = vmul.u32 %v589_v30, %v5214_v61  ;;  %v968_v41 = vmul.f32 %v967_v0, %v5219_v56  ;;  %v977_v12 = vxor.u32 2147483648, %v960_v20  ;;  %v1090_v35 = vsel %vm3003_vm6, 0, %v3002_v15 }
 0x270   :  { %v594_v38 = vmul.u32 %v590_v51, %v5222_v10  ;;  %vm983_vm7 = vcmp.lt.s32.totalorder %v6023_v11, 0  ;;  %v1091_v1 = vsub.s32 32, %v1090_v35  ;;  %v1095_v18 = vsub.s32 4294967266, %v1090_v35  ;;  %v6041_v51 = vld [vmem:[#allocation8_spill] sm:$0xff] }
 0x271   :  { %v585_v8 = vadd.s32 %v584_v40, %v574_v63  ;;  %vm599_vm8 = vc.u32 %v591_v7, %v595_v48  ;;  %v974_v13 = vxor.u32 2147483648, %v968_v41  ;;  %v597_v2 = vshll.u32 %v593_v34, 16  ;;  %v6045_v63 = vld [vmem:[#allocation16_spill] sm:$0xff] }
 0x272   :  { %v600_v21 = vsel %vm599_vm8, 1, %v5950_v53  ;;  %v601_v6 = vadd.s32 %v595_v48, %v591_v7  ;;  %v1092_v27 = vshll.u32 %v5247_v22, %v1090_v35  ;;  %v1093_v61 = vshrl.u32 %v1075_v62, %v1091_v1 }
 0x273   :  { %v1096_v19 = vadd.s32 127, %v1095_v18  ;;  %v602_v56 = vadd.s32 %v600_v21, %v594_v38  ;;  %v975_v54 = vsel %vm973_vm5, %v960_v20, %v974_v13  ;;  %v978_v10 = vsel %vm976_vm0, %v977_v12, %v968_v41  ;;  %v6047_v13 = vld [vmem:[#allocation26_spill] sm:$0xff] }
 0x274   :  { %vm603_vm11 = vc.u32 %v601_v6, %v597_v2  ;;  %v671_v28 = vand.u32 2147483647, %v6041_v51  ;;  %v979_v39 = vsel %vm972_vm3, %v975_v54, %v978_v10  ;;  %vm5298_vm9 = vcmp.le.f32.partialorder %v981_v43, 0.7853982 }
 0x275   :  { %v1094_v22 = vor.u32 %v1093_v61, %v1092_v27  ;;  %v1097_v16 = vshll.u32 %v1096_v19, 23  ;;  %v604_v14 = vsel %vm603_vm11, 1, %v5950_v53  ;;  %v980_v46 = vsel %vm969_vm15, nan, %v979_v39 }
 0x276   :  { %v1105_v30 = vsub.s32 4, %v5229_v9  ;;  %v596_v59 = vshrl.u32 %v5257_v57, 16  ;;  %v606_v47 = vadd.s32 %v604_v14, %v602_v56  ;;  %2740 = vmatpush.msra.mxu2 %v980_v46  ;;  %v5307_v4 = vadd.s32 %v585_v8, %v576_v29  ;;  %v6046_v8 = vld [vmem:[#allocation20_spill] sm:$0xff]  ;;  %v6049_v14 = vld [vmem:[#allocation30_spill] sm:$0xff] }
 0x277   :  { %v1098_v36 = vor.u32 4788187, %v1097_v16  ;;  %v598_v43 = vshrl.u32 %v593_v34, 16  ;;  %v5309_v44 = vadd.s32 %v601_v6, %v597_v2  ;;  %v1101_v50 = vcvt.s32.f32 %v1094_v22  ;;  %v6048_v16 = vld [vmem:[#allocation22_spill] sm:$0xff] }
 0x278   :  { %v607_v23 = vadd.s32 %v606_v47, %v596_v59  ;;  %v678_v3 = vand.u32 8388607, %v671_v28  ;;  %v688_v42 = vshll.u32 %v5948_v37, %v6044_v60  ;;  %v689_v57 = vshrl.u32 %v5949_v52, %v6031_v55 }
 0x279   :  { %v1099_v62 = vand.u32 2147483647, %v1098_v36  ;;  %v691_v15 = vshll.u32 %v5949_v52, %v6044_v60  ;;  %v692_v40 = vshrl.u32 %v5951_v58, %v6031_v55  ;;  %v1106_v20 = vsel %vm983_vm7, %v1105_v30, %v5229_v9 }
 0x27a   :  { %v608_v0 = vadd.s32 %v607_v23, %v598_v43  ;;  %v694_v34 = vshll.u32 %v5951_v58, %v6044_v60  ;;  %v695_v48 = vshrl.u32 %v5912_v25, %v6031_v55  ;;  %vm241_vm14 = vcmp.lt.s32.totalorder %v6045_v63, 4 }
 0x27b   :  { %v1102_v29 = vmul.f32 %v1101_v50, %v1099_v62  ;;  %vm611_vm13 = vc.u32 %v5307_v4, %v5309_v44  ;;  %v5331_v7 = vor.u32 %v689_v57, %v688_v42  ;;  %v5333_v41 = vor.u32 %v692_v40, %v691_v15  ;;  %v6050_v50 = vld [vmem:[#allocation29_spill] sm:$0xff]  ;;  %v6051_v62 = vld [vmem:[#allocation23_spill] sm:$0xff] }
 0x27c   :  { %v612_v12 = vadd.s32 1, %v608_v0  ;;  %v679_v35 = vor.u32 8388608, %v678_v3  ;;  %v696_v9 = vor.u32 %v695_v48, %v694_v34  ;;  %vm705_vm1 = vcmp.lt.s32.totalorder %v6040_v17, 3  ;;  %v6052_v57 = vld [vmem:[#allocation31_spill] sm:$0xff] }
 0x27d   :  { %v1103_v38 = vxor.u32 2147483648, %v1102_v29  ;;  %v609_v1 = vmul.u32 %v5198_v31, %v5278_v33  ;;  %vm703_vm10 = vcmp.lt.s32.totalorder %v6040_v17, 1  ;;  %v717_v18 = vsel %vm705_vm1, %v5189_v5, %v5267_v26 }
 0x27e   :  { %v237_v2 = vor.u32 %v6047_v13, %v6046_v8  ;;  %v1108_v21 = vsel %vm5298_vm9, 0, %v1106_v20  ;;  %v613_v6 = vsel %vm611_vm13, %v612_v12, %v608_v0  ;;  %v715_v27 = vsel %vm703_vm10, %v5333_v41, %v696_v9 }
 0x27f   :  { %v1104_v31 = vsel %vm983_vm7, %v1103_v38, %v1102_v29  ;;  %v614_v33 = vadd.s32 %v613_v6, %v609_v1  ;;  %vm704_vm12 = vcmp.lt.s32.totalorder %v6040_v17, 2  ;;  %v711_v5 = vsel %vm703_vm10, %v5331_v7, %v5333_v41 }
 0x280   :  { %v5360_v26 = vsel %vm5298_vm9, %v6023_v11, %v1104_v31  ;;  %v713_v61 = vsel %vm705_vm1, %v696_v9, %v5263_v24  ;;  %v718_v19 = vsel %vm704_vm12, %v715_v27, %v717_v18  ;;  %v5367_v56 = vshll.u32 %v679_v35, 8 }
 0x281   :  { %v1109_v54 = vmul.f32 %v5360_v26, %v5360_v26  ;;  %v615_v10 = vadd.s32 536870912, %v614_v33  ;;  %v722_v39 = vand.u32 65535, %v718_v19  ;;  %v723_v22 = vshrl.u32 %v718_v19, 16 }
 0x282   :  { %v5373_v49 = vor.u32 %v6049_v14, %v6048_v16  ;;  %v1125_v46 = vadd.s32 3, %v1108_v21  ;;  %v720_v30 = vand.u32 65535, %v5367_v56  ;;  %v721_v24 = vshrl.u32 %v5367_v56, 16 }
 0x283   :  { %v1110_v59 = vmul.f32 -0.001358992, %v1109_v54  ;;  %v1117_v47 = vmul.f32 -0.00019511016, %v1109_v54  ;;  %v5377_v36 = vshrl.u32 %v615_v10, 30  ;;  %v714_v43 = vsel %vm704_vm12, %v711_v5, %v713_v61 }
 0x284   :  { %v5384_v23 = vsel %vm241_vm14, %v6050_v50, 920167782  ;;  %v5388_v3 = vsel %vm241_vm14, %v237_v2, 1326507024  ;;  %v725_v60 = vmul.u32 %v723_v22, %v720_v30  ;;  %v5390_v42 = vmul.u32 %v722_v39, %v721_v24 }
 0x285   :  { %v392_v15 = vor.u32 %v6052_v57, %v6051_v62  ;;  %v1111_v40 = vadd.f32 0.041655596, %v1110_v59  ;;  %v1118_v20 = vadd.f32 0.008332121, %v1117_v47  ;;  %v617_v0 = vshll.u32 %v5377_v36, 30 }
 0x286   :  { %v1126_v34 = vand.u32 3, %v1125_v46  ;;  %v724_v48 = vmul.u32 %v722_v39, %v720_v30  ;;  %v728_v29 = vshll.u32 %v725_v60, 16  ;;  %v745_v12 = vshrl.u32 %v714_v43, 16 }
 0x287   :  { %v1112_v35 = vmul.f32 %v1111_v40, %v1109_v54  ;;  %v1119_v38 = vmul.f32 %v1118_v20, %v1109_v54  ;;  %v5395_v1 = vsub.s32 %v614_v33, %v617_v0  ;;  %v744_v18 = vand.u32 65535, %v714_v43 }
 0x288   :  { %v727_v8 = vmul.u32 %v723_v22, %v721_v24  ;;  %v730_v13 = vshll.u32 %v5390_v42, 16  ;;  %vm732_vm4 = vc.u32 %v724_v48, %v728_v29  ;;  %v734_v2 = vadd.s32 %v728_v29, %v724_v48 }
 0x289   :  { %v1113_v21 = vadd.f32 -0.4999988, %v1112_v35  ;;  %v1120_v6 = vadd.f32 -0.16666654, %v1119_v38  ;;  %vm619_vm3 = vcmp.lt.s32.totalorder %v5395_v1, 0  ;;  %v620_v27 = vsub.s32 0, %v5395_v1 }
 0x28a   :  { %vm1128_vm5 = vcmp.eq.s32.totalorder %v1126_v34, 0  ;;  %v708_v31 = vsel %vm706_vm2, %v696_v9, 2102212464  ;;  %v733_v5 = vsel %vm732_vm4, 1, %v5950_v53  ;;  %vm736_vm0 = vc.u32 %v734_v2, %v730_v13 }
 0x28b   :  { %v5403_v33 = vmul.u32 %v745_v12, %v720_v30  ;;  %v1114_v61 = vmul.f32 %v1113_v21, %v1109_v54  ;;  %v1121_v19 = vmul.f32 %v1120_v6, %v1109_v54  ;;  %vm1127_vm15 = vcmp.lt.s32.totalorder %v1126_v34, 2 }
 0x28c   :  { %v621_v10 = vsel %vm619_vm3, %v620_v27, %v5395_v1  ;;  %v735_v39 = vadd.s32 %v733_v5, %v727_v8  ;;  %vm1124_vm6 = vweird.f32 %v6023_v11  ;;  %vm1131_vm7 = vcmp.eq.s32.totalorder %v1126_v34, 2 }
 0x28d   :  { %v622_v22 = vclz %v621_v10  ;;  %v687_v16 = vshrl.u32 %v5948_v37, %v6031_v55  ;;  %v737_v9 = vsel %vm736_vm0, 1, %v5950_v53  ;;  %v1115_v14 = vadd.f32 1.0, %v1114_v61  ;;  %v6055_v61 = vld [vmem:[#allocation5_spill] sm:$0xff] }
 0x28e   :  { %v1122_v46 = vadd.f32 1.0, %v1121_v19  ;;  %v739_v59 = vadd.s32 %v737_v9, %v735_v39  ;;  %v748_v47 = vmul.u32 %v744_v18, %v721_v24  ;;  %vm518_vm2 = vcmp.lt.s32.totalorder %v6034_v45, 0 }
 0x28f   :  { %v610_v54 = vadd.s32 %v5309_v44, %v5307_v4  ;;  %v2993_v43 = vadd.s32 4294967294, %v622_v22  ;;  %v707_v40 = vsel %vm703_vm10, %v687_v16, %v5331_v7  ;;  %v709_v55 = vsel %vm705_vm1, %v5333_v41, %v708_v31 }
 0x290   :  { %v1123_v20 = vmul.f32 %v1122_v46, %v5360_v26  ;;  %v1132_v0 = vxor.u32 2147483648, %v1115_v14  ;;  %v729_v48 = vshrl.u32 %v725_v60, 16  ;;  %v750_v29 = vshll.u32 %v5403_v33, 16 }
 0x291   :  { %vm2994_vm8 = vcmp.lt.s32.totalorder %v2993_v43, 0  ;;  %v640_v35 = vsub.s32 4, %v5377_v36  ;;  %v746_v38 = vmul.u32 %v744_v18, %v720_v30  ;;  %v749_v4 = vmul.u32 %v745_v12, %v721_v24 }
 0x292   :  { %v1129_v44 = vxor.u32 2147483648, %v1123_v20  ;;  %v625_v8 = vsel %vm2994_vm8, 0, %v2993_v43  ;;  %v740_v13 = vadd.s32 %v739_v59, %v729_v48  ;;  %v752_v2 = vshll.u32 %v748_v47, 16 }
 0x293   :  { %v1133_v7 = vsel %vm1131_vm7, %v1132_v0, %v1123_v20  ;;  %v626_v21 = vsub.s32 32, %v625_v8  ;;  %v630_v6 = vsub.s32 4294967266, %v625_v8  ;;  %vm754_vm11 = vc.u32 %v746_v38, %v750_v29 }
 0x294   :  { %v1130_v41 = vsel %vm1128_vm5, %v1115_v14, %v1129_v44  ;;  %v627_v26 = vshll.u32 %v5395_v1, %v625_v8  ;;  %v755_v60 = vsel %vm754_vm11, 1, %v5950_v53  ;;  %v756_v27 = vadd.s32 %v750_v29, %v746_v38 }
 0x295   :  { %v1134_v31 = vsel %vm1127_vm15, %v1130_v41, %v1133_v7  ;;  %v628_v30 = vshrl.u32 %v610_v54, %v626_v21  ;;  %v631_v24 = vadd.s32 127, %v630_v6  ;;  %v757_v12 = vadd.s32 %v755_v60, %v749_v4 }
 0x296   :  { %v1135_v18 = vsel %vm1124_vm6, nan, %v1134_v31  ;;  %vm5431_vm9 = vcmp.le.f32.partialorder %v516_v32, 0.7853982  ;;  %v710_v1 = vsel %vm704_vm12, %v707_v40, %v709_v55  ;;  %vm758_vm13 = vc.u32 %v756_v27, %v752_v2  ;;  %v6056_v40 = vld [vmem:[#allocation13_spill] sm:$0xff]  ;;  %v6057_v55 = vld [vmem:[#allocation14_spill] sm:$0xff]  ;;  %v6058_v31 = vld [vmem:[#allocation19_spill] sm:$0xff] }
 0x297   :  { %v206_v19 = vand.u32 2147483647, %v6055_v61  ;;  %2769 = vmatpush.msra.mxu3 %v1135_v18  ;;  %v629_v34 = vor.u32 %v628_v30, %v627_v26  ;;  %v632_v10 = vshll.u32 %v631_v24, 23  ;;  %v731_v39 = vshrl.u32 %v5390_v42, 16 }
 0x298   :  { %v759_v11 = vsel %vm758_vm13, 1, %v5950_v53  ;;  %v641_v32 = vsel %vm518_vm2, %v640_v35, %v5377_v36  ;;  %v751_v22 = vshrl.u32 %v5403_v33, 16  ;;  %v753_v16 = vshrl.u32 %v748_v47, 16 }
 0x299   :  { %v761_v9 = vadd.s32 %v759_v11, %v757_v12  ;;  %v633_v17 = vor.u32 4788187, %v632_v10  ;;  %v741_v14 = vadd.s32 %v740_v13, %v731_v39  ;;  %v760_v46 = vadd.s32 %v756_v27, %v752_v2 }
 0x29a   :  { %v213_v59 = vand.u32 8388607, %v206_v19  ;;  %v636_v54 = vcvt.s32.f32 %v629_v34  ;;  %v223_v42 = vshll.u32 %v5948_v37, %v6056_v40  ;;  %v224_v20 = vshrl.u32 %v5949_v52, %v6057_v55 }
 0x29b   :  { %v762_v43 = vadd.s32 %v761_v9, %v751_v22  ;;  %v634_v0 = vand.u32 2147483647, %v633_v17  ;;  %v226_v33 = vshll.u32 %v5949_v52, %v6056_v40  ;;  %v227_v47 = vshrl.u32 %v5951_v58, %v6057_v55 }
 0x29c   :  { %v214_v36 = vor.u32 8388608, %v213_v59  ;;  %v5454_v29 = vor.u32 %v224_v20, %v223_v42  ;;  %v229_v35 = vshll.u32 %v5951_v58, %v6056_v40  ;;  %v230_v38 = vshrl.u32 %v5912_v25, %v6057_v55 }
 0x29d   :  { %v763_v48 = vadd.s32 %v762_v43, %v753_v16  ;;  %v637_v4 = vmul.f32 %v636_v54, %v634_v0  ;;  %v764_v44 = vmul.u32 %v5367_v56, %v710_v1  ;;  %vm766_vm1 = vc.u32 %v741_v14, %v760_v46 }
 0x29e   :  { %v5461_v8 = vor.u32 %v227_v47, %v226_v33  ;;  %v231_v2 = vor.u32 %v230_v38, %v229_v35  ;;  %vm238_vm10 = vcmp.lt.s32.totalorder %v6045_v63, 1  ;;  %vm240_vm12 = vcmp.lt.s32.totalorder %v6045_v63, 3 }
 0x29f   :  { %v767_v13 = vadd.s32 1, %v763_v48  ;;  %v638_v7 = vxor.u32 2147483648, %v637_v4  ;;  %v643_v21 = vsel %vm5431_vm9, 0, %v641_v32  ;;  %v252_v56 = vsel %vm240_vm12, %v6050_v50, %v5388_v3 }
 0x2a0   :  { %v246_v6 = vsel %vm238_vm10, %v5454_v29, %v5461_v8  ;;  %v248_v26 = vsel %vm240_vm12, %v231_v2, %v5384_v23  ;;  %v250_v60 = vsel %vm238_vm10, %v5461_v8, %v231_v2  ;;  %v5481_v27 = vshll.u32 %v214_v36, 8 }
 0x2a1   :  { %v768_v41 = vsel %vm766_vm1, %v767_v13, %v763_v48  ;;  %vm396_vm4 = vcmp.lt.s32.totalorder %v6058_v31, 4  ;;  %v639_v30 = vsel %vm518_vm2, %v638_v7, %v637_v4  ;;  %vm239_vm3 = vcmp.lt.s32.totalorder %v6045_v63, 2 }
 0x2a2   :  { %v769_v24 = vadd.s32 %v768_v41, %v764_v44  ;;  %v5490_v50 = vsel %vm396_vm4, %v5373_v49, 920167782  ;;  %v642_v23 = vsel %vm5431_vm9, %v6034_v45, %v639_v30  ;;  %v660_v3 = vadd.s32 3, %v643_v21 }
 0x2a3   :  { %v253_v12 = vsel %vm239_vm3, %v250_v60, %v252_v56  ;;  %v644_v18 = vmul.f32 %v642_v23, %v642_v23  ;;  %v5499_v34 = vsel %vm239_vm3, %v246_v6, %v248_v26  ;;  %v5506_v39 = vsel %vm396_vm4, %v392_v15, 1326507024 }
 0x2a4   :  { %v770_v1 = vadd.s32 536870912, %v769_v24  ;;  %v257_v10 = vand.u32 65535, %v253_v12  ;;  %v255_v5 = vand.u32 65535, %v5481_v27  ;;  %v256_v11 = vshrl.u32 %v5481_v27, 16 }
 0x2a5   :  { %v258_v32 = vshrl.u32 %v253_v12, 16  ;;  %v645_v22 = vmul.f32 -0.001358992, %v644_v18  ;;  %v652_v16 = vmul.f32 -0.00019511016, %v644_v18  ;;  %v5512_v17 = vand.u32 3, %v660_v3 }
 0x2a6   :  { %v5510_v9 = vshrl.u32 %v770_v1, 30  ;;  %v261_v54 = vmul.u32 %v257_v10, %v256_v11  ;;  %v280_v43 = vshrl.u32 %v5499_v34, 16  ;;  %v5516_v40 = vadd.s32 %v760_v46, %v741_v14 }
 0x2a7   :  { %v260_v59 = vmul.u32 %v258_v32, %v255_v5  ;;  %v646_v62 = vadd.f32 0.041655596, %v645_v22  ;;  %v653_v57 = vadd.f32 0.008332121, %v652_v16  ;;  %v259_v42 = vmul.u32 %v257_v10, %v255_v5 }
 0x2a8   :  { %v772_v15 = vshll.u32 %v5510_v9, 30  ;;  %v279_v0 = vand.u32 65535, %v5499_v34  ;;  %v262_v48 = vmul.u32 %v258_v32, %v256_v11  ;;  %vm666_vm5 = vcmp.eq.s32.totalorder %v5512_v17, 2 }
 0x2a9   :  { %v263_v20 = vshll.u32 %v260_v59, 16  ;;  %v647_v36 = vmul.f32 %v646_v62, %v644_v18  ;;  %v654_v33 = vmul.f32 %v653_v57, %v644_v18  ;;  %v265_v35 = vshll.u32 %v261_v54, 16 }
 0x2aa   :  { %v5519_v47 = vsub.s32 %v769_v24, %v772_v15  ;;  %v5522_v4 = vmul.u32 %v280_v43, %v255_v5  ;;  %vm663_vm6 = vcmp.eq.s32.totalorder %v5512_v17, 0  ;;  %v222_v46 = vshrl.u32 %v5948_v37, %v6057_v55 }
 0x2ab   :  { %vm267_vm0 = vc.u32 %v259_v42, %v263_v20  ;;  %v269_v38 = vadd.s32 %v263_v20, %v259_v42  ;;  %v648_v44 = vadd.f32 -0.4999988, %v647_v36  ;;  %v655_v13 = vadd.f32 -0.16666654, %v654_v33 }
 0x2ac   :  { %vm774_vm15 = vcmp.lt.s32.totalorder %v5519_v47, 0  ;;  %v775_v14 = vsub.s32 0, %v5519_v47  ;;  %v243_v7 = vsel %vm241_vm14, %v231_v2, 2102212464  ;;  %v268_v21 = vsel %vm267_vm0, 1, %v5950_v53 }
 0x2ad   :  { %vm271_vm7 = vc.u32 %v269_v38, %v265_v35  ;;  %v649_v6 = vmul.f32 %v648_v44, %v644_v18  ;;  %v656_v56 = vmul.f32 %v655_v13, %v644_v18  ;;  %vm662_vm2 = vcmp.lt.s32.totalorder %v5512_v17, 2 }
 0x2ae   :  { %v776_v41 = vsel %vm774_vm15, %v775_v14, %v5519_v47  ;;  %v270_v26 = vadd.s32 %v268_v21, %v262_v48  ;;  %vm659_vm8 = vweird.f32 %v6034_v45  ;;  %v264_v30 = vshrl.u32 %v260_v59, 16 }
 0x2af   :  { %v777_v60 = vclz %v776_v41  ;;  %v272_v24 = vsel %vm271_vm7, 1, %v5950_v53  ;;  %v283_v55 = vmul.u32 %v279_v0, %v256_v11  ;;  %v650_v3 = vadd.f32 1.0, %v649_v6 }
 0x2b0   :  { %v657_v12 = vadd.f32 1.0, %v656_v56  ;;  %v274_v2 = vadd.s32 %v272_v24, %v270_v26  ;;  %v285_v1 = vshll.u32 %v5522_v4, 16  ;;  %vm673_vm14 = vcmp.lt.s32.totalorder %v6041_v51, 0 }
 0x2b1   :  { %v2996_v18 = vadd.s32 4294967294, %v777_v60  ;;  %v242_v34 = vsel %vm238_vm10, %v222_v46, %v5454_v29  ;;  %v244_v10 = vsel %vm240_vm12, %v5461_v8, %v243_v7  ;;  %v281_v32 = vmul.u32 %v279_v0, %v255_v5  ;;  %v6062_v60 = vld [vmem:[#allocation15_spill] sm:$0xff] }
 0x2b2   :  { %v658_v22 = vmul.f32 %v657_v12, %v642_v23  ;;  %v667_v16 = vxor.u32 2147483648, %v650_v3  ;;  %v795_v59 = vsub.s32 4, %v5510_v9  ;;  %v275_v62 = vadd.s32 %v274_v2, %v264_v30 }
 0x2b3   :  { %vm2997_vm11 = vcmp.lt.s32.totalorder %v2996_v18, 0  ;;  %v266_v57 = vshrl.u32 %v261_v54, 16  ;;  %v284_v15 = vmul.u32 %v280_v43, %v256_v11  ;;  %vm289_vm9 = vc.u32 %v281_v32, %v285_v1  ;;  %v6059_v54 = vld [vmem:[#allocation6_spill] sm:$0xff] }
 0x2b4   :  { %v664_v42 = vxor.u32 2147483648, %v658_v22  ;;  %v668_v20 = vsel %vm666_vm5, %v667_v16, %v658_v22  ;;  %v780_v36 = vsel %vm2997_vm11, 0, %v2996_v18  ;;  %v287_v29 = vshll.u32 %v283_v55, 16 }
 0x2b5   :  { %v781_v33 = vsub.s32 32, %v780_v36  ;;  %v785_v48 = vsub.s32 4294967266, %v780_v36  ;;  %v5547_v35 = vadd.s32 %v275_v62, %v266_v57  ;;  %v290_v8 = vsel %vm289_vm9, 1, %v5950_v53 }
 0x2b6   :  { %v665_v23 = vsel %vm663_vm6, %v650_v3, %v664_v42  ;;  %v291_v5 = vadd.s32 %v285_v1, %v281_v32  ;;  %v292_v0 = vadd.s32 %v290_v8, %v284_v15  ;;  %v361_v11 = vand.u32 2147483647, %v6059_v54  ;;  %v6063_v3 = vld [vmem:[#allocation21_spill] sm:$0xff] }
 0x2b7   :  { %v669_v43 = vsel %vm662_vm2, %v665_v23, %v668_v20  ;;  %v782_v38 = vshll.u32 %v5519_v47, %v780_v36  ;;  %v783_v44 = vshrl.u32 %v5516_v40, %v781_v33  ;;  %v786_v13 = vadd.s32 127, %v785_v48 }
 0x2b8   :  { %v670_v14 = vsel %vm659_vm8, nan, %v669_v43  ;;  %v245_v46 = vsel %vm239_vm3, %v242_v34, %v244_v10  ;;  %vm293_vm13 = vc.u32 %v291_v5, %v287_v29  ;;  %v5561_v7 = vadd.s32 %v291_v5, %v287_v29 }
 0x2b9   :  { %2741 = vmatpush.msra.mxu2 %v670_v14  ;;  %vm5565_vm1 = vcmp.le.f32.partialorder %v671_v28, 0.7853982  ;;  %v784_v47 = vor.u32 %v783_v44, %v782_v38  ;;  %v787_v21 = vshll.u32 %v786_v13, 23  ;;  %v294_v40 = vsel %vm293_vm13, 1, %v5950_v53 }
 0x2ba   :  { %v368_v45 = vand.u32 8388607, %v361_v11  ;;  %v796_v63 = vsel %vm673_vm14, %v795_v59, %v5510_v9  ;;  %v286_v6 = vshrl.u32 %v5522_v4, 16  ;;  %v288_v56 = vshrl.u32 %v283_v55, 16 }
 0x2bb   :  { %v296_v41 = vadd.s32 %v294_v40, %v292_v0  ;;  %v788_v26 = vor.u32 4788187, %v787_v21  ;;  %vm301_vm10 = vc.u32 %v5547_v35, %v5561_v7  ;;  %v378_v30 = vshll.u32 %v5948_v37, %v6062_v60 }
 0x2bc   :  { %v369_v28 = vor.u32 8388608, %v368_v45  ;;  %v379_v12 = vshrl.u32 %v5949_v52, %v6063_v3  ;;  %v381_v2 = vshll.u32 %v5949_v52, %v6062_v60  ;;  %v382_v9 = vshrl.u32 %v5951_v58, %v6063_v3 }
 0x2bd   :  { %v297_v24 = vadd.s32 %v296_v41, %v286_v6  ;;  %v789_v4 = vand.u32 2147483647, %v788_v26  ;;  %v791_v55 = vcvt.s32.f32 %v784_v47  ;;  %v384_v1 = vshll.u32 %v5951_v58, %v6062_v60 }
 0x2be   :  { %v385_v18 = vshrl.u32 %v5912_v25, %v6063_v3  ;;  %v5590_v10 = vor.u32 %v379_v12, %v378_v30  ;;  %v5592_v32 = vor.u32 %v382_v9, %v381_v2  ;;  %vm393_vm12 = vcmp.lt.s32.totalorder %v6058_v31, 1 }
 0x2bf   :  { %v298_v34 = vadd.s32 %v297_v24, %v288_v56  ;;  %v792_v22 = vmul.f32 %v791_v55, %v789_v4  ;;  %vm395_vm3 = vcmp.lt.s32.totalorder %v6058_v31, 3  ;;  %v5598_v16 = vshll.u32 %v369_v28, 8 }
 0x2c0   :  { %v5595_v52 = vor.u32 %v385_v18, %v384_v1  ;;  %v299_v59 = vmul.u32 %v5481_v27, %v245_v46  ;;  %v401_v25 = vsel %vm393_vm12, %v5590_v10, %v5592_v32  ;;  %v407_v62 = vsel %vm395_vm3, %v5373_v49, %v5506_v39 }
 0x2c1   :  { %v302_v58 = vadd.s32 1, %v298_v34  ;;  %v793_v57 = vxor.u32 2147483648, %v792_v22  ;;  %vm394_vm5 = vcmp.lt.s32.totalorder %v6058_v31, 2  ;;  %v798_v42 = vsel %vm5565_vm1, 0, %v796_v63 }
 0x2c2   :  { %v403_v15 = vsel %vm395_vm3, %v5595_v52, %v5490_v50  ;;  %v405_v27 = vsel %vm393_vm12, %v5592_v32, %v5595_v52  ;;  %v410_v29 = vand.u32 65535, %v5598_v16  ;;  %v411_v48 = vshrl.u32 %v5598_v16, 16 }
 0x2c3   :  { %v303_v49 = vsel %vm301_vm10, %v302_v58, %v298_v34  ;;  %v408_v39 = vsel %vm394_vm5, %v405_v27, %v407_v62  ;;  %v794_v20 = vsel %vm673_vm14, %v793_v57, %v792_v22  ;;  %v404_v50 = vsel %vm394_vm5, %v401_v25, %v403_v15 }
 0x2c4   :  { %v304_v36 = vadd.s32 %v303_v49, %v299_v59  ;;  %v797_v33 = vsel %vm5565_vm1, %v6041_v51, %v794_v20  ;;  %v412_v8 = vand.u32 65535, %v408_v39  ;;  %v413_v23 = vshrl.u32 %v408_v39, 16 }
 0x2c5   :  { %v799_v5 = vmul.f32 %v797_v33, %v797_v33  ;;  %v815_v0 = vadd.s32 3, %v798_v42  ;;  %v435_v13 = vshrl.u32 %v404_v50, 16  ;;  %v434_v24 = vand.u32 65535, %v404_v50 }
 0x2c6   :  { %v305_v43 = vadd.s32 536870912, %v304_v36  ;;  %v415_v38 = vmul.u32 %v413_v23, %v410_v29  ;;  %v5634_v44 = vmul.u32 %v412_v8, %v411_v48  ;;  %v414_v21 = vmul.u32 %v412_v8, %v410_v29 }
 0x2c7   :  { %v800_v14 = vmul.f32 -0.001358992, %v799_v5  ;;  %v807_v46 = vmul.f32 -0.00019511016, %v799_v5  ;;  %v816_v63 = vand.u32 3, %v815_v0  ;;  %v5640_v26 = vmul.u32 %v435_v13, %v410_v29 }
 0x2c8   :  { %v5636_v47 = vshrl.u32 %v305_v43, 30  ;;  %v418_v40 = vshll.u32 %v415_v38, 16  ;;  %v420_v56 = vshll.u32 %v5634_v44, 16  ;;  %v417_v12 = vmul.u32 %v413_v23, %v411_v48 }
 0x2c9   :  { %v801_v45 = vadd.f32 0.041655596, %v800_v14  ;;  %v808_v17 = vadd.f32 0.008332121, %v807_v46  ;;  %vm818_vm7 = vcmp.eq.s32.totalorder %v816_v63, 0  ;;  %v440_v34 = vshll.u32 %v5640_v26, 16 }
 0x2ca   :  { %v307_v6 = vshll.u32 %v5636_v47, 30  ;;  %vm422_vm0 = vc.u32 %v414_v21, %v418_v40  ;;  %v424_v41 = vadd.s32 %v418_v40, %v414_v21  ;;  %vm817_vm2 = vcmp.lt.s32.totalorder %v816_v63, 2 }
 0x2cb   :  { %v802_v28 = vmul.f32 %v801_v45, %v799_v5  ;;  %v809_v60 = vmul.f32 %v808_v17, %v799_v5  ;;  %v423_v2 = vsel %vm422_vm0, 1, %v5950_v53  ;;  %v436_v25 = vmul.u32 %v434_v24, %v410_v29 }
 0x2cc   :  { %v308_v30 = vsub.s32 %v304_v36, %v307_v6  ;;  %vm426_vm15 = vc.u32 %v424_v41, %v420_v56  ;;  %v425_v1 = vadd.s32 %v423_v2, %v417_v12  ;;  %vm814_vm8 = vweird.f32 %v6041_v51 }
 0x2cd   :  { %v803_v9 = vadd.f32 -0.4999988, %v802_v28  ;;  %v810_v4 = vadd.f32 -0.16666654, %v809_v60  ;;  %v427_v18 = vsel %vm426_vm15, 1, %v5950_v53  ;;  %vm821_vm14 = vcmp.eq.s32.totalorder %v816_v63, 2 }
 0x2ce   :  { %vm309_vm6 = vcmp.lt.s32.totalorder %v308_v30, 0  ;;  %v310_v55 = vsub.s32 0, %v308_v30  ;;  %v300_v62 = vadd.s32 %v5561_v7, %v5547_v35  ;;  %v438_v15 = vmul.u32 %v434_v24, %v411_v48 }
 0x2cf   :  { %v804_v22 = vmul.f32 %v803_v9, %v799_v5  ;;  %v811_v59 = vmul.f32 %v810_v4, %v799_v5  ;;  %v429_v49 = vadd.s32 %v427_v18, %v425_v1  ;;  %vm444_vm11 = vc.u32 %v436_v25, %v440_v34 }
 0x2d0   :  { %v311_v58 = vsel %vm309_vm6, %v310_v55, %v308_v30  ;;  %v377_v20 = vshrl.u32 %v5948_v37, %v6063_v3  ;;  %v398_v36 = vsel %vm396_vm4, %v5595_v52, 2102212464  ;;  %v439_v50 = vmul.u32 %v435_v13, %v411_v48 }
 0x2d1   :  { %v312_v57 = vclz %v311_v58  ;;  %v805_v27 = vadd.f32 1.0, %v804_v22  ;;  %v812_v42 = vadd.f32 1.0, %v811_v59  ;;  %v419_v23 = vshrl.u32 %v415_v38, 16 }
 0x2d2   :  { %v445_v35 = vsel %vm444_vm11, 1, %v5950_v53  ;;  %v442_v7 = vshll.u32 %v438_v15, 16  ;;  %v446_v5 = vadd.s32 %v440_v34, %v436_v25  ;;  %v421_v46 = vshrl.u32 %v5634_v44, 16 }
 0x2d3   :  { %v2987_v39 = vadd.s32 4294967294, %v312_v57  ;;  %v813_v29 = vmul.f32 %v812_v42, %v797_v33  ;;  %v822_v8 = vxor.u32 2147483648, %v805_v27  ;;  %v447_v0 = vadd.s32 %v445_v35, %v439_v50 }
 0x2d4   :  { %v430_v21 = vadd.s32 %v429_v49, %v419_v23  ;;  %v441_v40 = vshrl.u32 %v5640_v26, 16  ;;  %vm448_vm4 = vc.u32 %v446_v5, %v442_v7  ;;  %v397_v56 = vsel %vm393_vm12, %v377_v20, %v5590_v10 }
 0x2d5   :  { %vm2988_vm9 = vcmp.lt.s32.totalorder %v2987_v39, 0  ;;  %v819_v43 = vxor.u32 2147483648, %v813_v29  ;;  %v823_v33 = vsel %vm821_vm14, %v822_v8, %v813_v29  ;;  %v449_v38 = vsel %vm448_vm4, 1, %v5950_v53 }
 0x2d6   :  { %v315_v14 = vsel %vm2988_vm9, 0, %v2987_v39  ;;  %v451_v6 = vadd.s32 %v449_v38, %v447_v0  ;;  %v399_v41 = vsel %vm395_vm3, %v5592_v32, %v398_v36  ;;  %v431_v26 = vadd.s32 %v430_v21, %v421_v46 }
 0x2d7   :  { %v316_v37 = vsub.s32 32, %v315_v14  ;;  %v320_v3 = vsub.s32 4294967266, %v315_v14  ;;  %v820_v52 = vsel %vm818_vm7, %v805_v27, %v819_v43  ;;  %v317_v48 = vshll.u32 %v308_v30, %v315_v14 }
 0x2d8   :  { %v824_v13 = vsel %vm817_vm2, %v820_v52, %v823_v33  ;;  %v443_v63 = vshrl.u32 %v438_v15, 16  ;;  %v452_v60 = vadd.s32 %v451_v6, %v441_v40  ;;  %v450_v30 = vadd.s32 %v446_v5, %v442_v7 }
 0x2d9   :  { %v318_v45 = vshrl.u32 %v300_v62, %v316_v37  ;;  %v321_v17 = vadd.s32 127, %v320_v3  ;;  %v825_v44 = vsel %vm814_vm8, nan, %v824_v13  ;;  %v400_v51 = vsel %vm394_vm5, %v397_v56, %v399_v41 }
 0x2da   :  { %2770 = vmatpush.msra.mxu3 %v825_v44  ;;  %v453_v12 = vadd.s32 %v452_v60, %v443_v63  ;;  %vm456_vm13 = vc.u32 %v431_v26, %v450_v30  ;;  %v454_v4 = vmul.u32 %v5598_v16, %v400_v51  ;;  %vm208_vm1 = vcmp.lt.s32.totalorder %v6055_v61, 0 }
 0x2db   :  { %v319_v28 = vor.u32 %v318_v45, %v317_v48  ;;  %v322_v53 = vshll.u32 %v321_v17, 23  ;;  %vm5674_vm10 = vcmp.le.f32.partialorder %v206_v19, 0.7853982  ;;  %v330_v59 = vsub.s32 4, %v5636_v47 }
 0x2dc   :  { %v457_v10 = vadd.s32 1, %v453_v12  ;;  %v455_v40 = vadd.s32 %v450_v30, %v431_v26  ;;  %vm349_vm6 = vweird.f32 %v6055_v61  ;;  %v2686_v26 = vld [vmem:[%s5755_s3] sm:$0xff]  ;;  %vm2714_vm7 = vcmask 523264  }
 0x2dd   :  { %v323_v24 = vor.u32 4788187, %v322_v53  ;;  %v326_v9 = vcvt.s32.f32 %v319_v28  ;;  %v331_v27 = vsel %vm208_vm1, %v330_v59, %v5636_v47  ;;  %vm363_vm2 = vcmp.lt.s32.totalorder %v6059_v54, 0 }
 0x2de   :  { %v458_v32 = vsel %vm456_vm13, %v457_v10, %v453_v12  ;;  %v333_v20 = vsel %vm5674_vm10, 0, %v331_v27  ;;  %vm5699_vm8 = vcmp.le.f32.partialorder %v361_v11, 0.7853982  ;;  %v2688_v11 = vld [vmem:[%s5755_s3 + $0x10] sm:$0xff]  ;;  %v2689_v27 = vld [vmem:[%s5755_s3 + $0x18] sm:$0xff]  ;;  %vm504_vm4 = vweird.f32 %v6059_v54 }
 0x2df   :  { %v324_v2 = vand.u32 2147483647, %v323_v24  ;;  %v459_v1 = vadd.s32 %v458_v32, %v454_v4  ;;  %v350_v7 = vadd.s32 3, %v333_v20  ;;  %vm2821_vm13 = vcmask 261120  }
 0x2e1   :  { %v327_v55 = vmul.f32 %v326_v9, %v324_v2  ;;  %v460_v34 = vadd.s32 536870912, %v459_v1  ;;  %v351_v46 = vand.u32 3, %v350_v7  ;;  %v2712_v7 = vpop.permute.xlu2 %2711 }
 0x2e3   :  { %v328_v18 = vxor.u32 2147483648, %v327_v55  ;;  %v5682_v58 = vshrl.u32 %v460_v34, 30  ;;  %vm353_vm5 = vcmp.eq.s32.totalorder %v351_v46, 0  ;;  %vm356_vm0 = vcmp.eq.s32.totalorder %v351_v46, 2 }
 0x2e4   :  { %vm352_vm15 = vcmp.lt.s32.totalorder %v351_v46, 2 }
 0x2e5   :  { %v329_v31 = vsel %vm208_vm1, %v328_v18, %v327_v55  ;;  %v462_v62 = vshll.u32 %v5682_v58, 30  ;;  %v485_v2 = vsub.s32 4, %v5682_v58 }
 0x2e6   :  { %v332_v16 = vsel %vm5674_vm10, %v6055_v61, %v329_v31  ;;  %v2687_v61 = vld [vmem:[%s5755_s3 + $0x8] sm:$0xff] }
 0x2e7   :  { %v334_v25 = vmul.f32 %v332_v16, %v332_v16  ;;  %v463_v19 = vsub.s32 %v459_v1, %v462_v62  ;;  %v486_v32 = vsel %vm363_vm2, %v485_v2, %v5682_v58 }
 0x2e8   :  { %v488_v34 = vsel %vm5699_vm8, 0, %v486_v32 }
 0x2e9   :  { %v335_v57 = vmul.f32 -0.001358992, %v334_v25  ;;  %v342_v15 = vmul.f32 -0.00019511016, %v334_v25  ;;  %vm464_vm12 = vcmp.lt.s32.totalorder %v463_v19, 0  ;;  %v465_v39 = vsub.s32 0, %v463_v19 }
 0x2eb   :  { %v336_v42 = vadd.f32 0.041655596, %v335_v57  ;;  %v343_v49 = vadd.f32 0.008332121, %v342_v15  ;;  %v466_v29 = vsel %vm464_vm12, %v465_v39, %v463_v19 }
 0x2ec   :  { %v467_v35 = vclz %v466_v29 }
 0x2ed   :  { %v337_v36 = vmul.f32 %v336_v42, %v334_v25  ;;  %v344_v50 = vmul.f32 %v343_v49, %v334_v25 }
 0x2ee   :  { %v2990_v43 = vadd.s32 4294967294, %v467_v35 }
 0x2ef   :  { %v338_v8 = vadd.f32 -0.4999988, %v337_v36  ;;  %v345_v23 = vadd.f32 -0.16666654, %v344_v50 }
 0x2f0   :  { %vm2991_vm3 = vcmp.lt.s32.totalorder %v2990_v43, 0 }
 0x2f1   :  { %v339_v5 = vmul.f32 %v338_v8, %v334_v25  ;;  %v346_v0 = vmul.f32 %v345_v23, %v334_v25  ;;  %v470_v21 = vsel %vm2991_vm3, 0, %v2990_v43  ;;  %v505_v25 = vadd.s32 3, %v488_v34 }
 0x2f2   :  { %v471_v52 = vsub.s32 32, %v470_v21  ;;  %v475_v33 = vsub.s32 4294967266, %v470_v21  ;;  %v472_v13 = vshll.u32 %v463_v19, %v470_v21  ;;  %v2697_v21 = vpop.permute.xlu2 %2696 }
 0x2f3   :  { %v340_v14 = vadd.f32 1.0, %v339_v5  ;;  %v347_v47 = vadd.f32 1.0, %v346_v0  ;;  %v506_v19 = vand.u32 3, %v505_v25  ;;  %v2707_v5 = vpop.permute.xlu0 %2706 }
 0x2f4   :  { %v473_v38 = vshrl.u32 %v455_v40, %v471_v52  ;;  %v476_v45 = vadd.s32 127, %v475_v33 }
 0x2f5   :  { %v348_v37 = vmul.f32 %v347_v47, %v332_v16  ;;  %v357_v3 = vxor.u32 2147483648, %v340_v14  ;;  %vm508_vm14 = vcmp.eq.s32.totalorder %v506_v19, 0  ;;  %vm511_vm11 = vcmp.eq.s32.totalorder %v506_v19, 2 }
 0x2f6   :  { %v474_v56 = vor.u32 %v473_v38, %v472_v13  ;;  %v477_v41 = vshll.u32 %v476_v45, 23  ;;  %vm507_vm9 = vcmp.lt.s32.totalorder %v506_v19, 2  ;;  %v2794_v13 = vld [vmem:[%s5757_s5 + $0x8] sm:$0xff] }
 0x2f7   :  { %v354_v48 = vxor.u32 2147483648, %v348_v37  ;;  %v358_v6 = vsel %vm356_vm0, %v357_v3, %v348_v37 }
 0x2f8   :  { %v478_v53 = vor.u32 4788187, %v477_v41  ;;  %v481_v60 = vcvt.s32.f32 %v474_v56  ;;  %v2796_v41 = vld [vmem:[%s5757_s5 + $0x18] sm:$0xff] }
 0x2f9   :  { %v355_v17 = vsel %vm353_vm5, %v340_v14, %v354_v48  ;;  %v2793_v48 = vld [vmem:[%s5757_s5] sm:$0xff] }
 0x2fa   :  { %v359_v44 = vsel %vm352_vm15, %v355_v17, %v358_v6  ;;  %v479_v63 = vand.u32 2147483647, %v478_v53  ;;  %v2795_v17 = vld [vmem:[%s5757_s5 + $0x10] sm:$0xff] }
 0x2fb   :  { %v360_v28 = vsel %vm349_vm6, nan, %v359_v44 }
 0x2fc   :  { %2742 = vmatpush.msra.mxu2 %v360_v28  ;;  %v482_v30 = vmul.f32 %v481_v60, %v479_v63 }
 0x2fd   :  { %3034 = vmatmul.msk.f32.vlgmr.msra.gmra.mxu2 %vm2714_vm7, %v2686_v26 }
 0x2fe   :  { %v483_v24 = vxor.u32 2147483648, %v482_v30 }
 0x300   :  { %v484_v12 = vsel %vm363_vm2, %v483_v24, %v482_v30 }
 0x301   :  { %v487_v9 = vsel %vm5699_vm8, %v6059_v54, %v484_v12  ;;  %v2702_v54 = vpop.permute.xlu1 %2701  ;;  %v2819_v12 = vpop.permute.xlu0 %2818 }
 0x302   :  { %v489_v10 = vmul.f32 %v487_v9, %v487_v9 }
 0x304   :  { %v490_v4 = vmul.f32 -0.001358992, %v489_v10  ;;  %v497_v55 = vmul.f32 -0.00019511016, %v489_v10 }
 0x305   :  { %3035 = vmatmul.msk.f32.gmra.mxu2 %vm2714_vm7, %v2687_v61 }
 0x306   :  { %v491_v1 = vadd.f32 0.041655596, %v490_v4  ;;  %v498_v18 = vadd.f32 0.008332121, %v497_v55  ;;  %v2809_v55 = vpop.permute.xlu2 %2808 }
 0x308   :  { %v492_v22 = vmul.f32 %v491_v1, %v489_v10  ;;  %v499_v31 = vmul.f32 %v498_v18, %v489_v10 }
 0x309   :  { %v2814_v2 = vpop.permute.xlu1 %2813  ;;  %v2804_v18 = vpop.permute.xlu0 %2803 }
 0x30a   :  { %v493_v59 = vadd.f32 -0.4999988, %v492_v22  ;;  %v500_v16 = vadd.f32 -0.16666654, %v499_v31 }
 0x30c   :  { %v494_v62 = vmul.f32 %v493_v59, %v489_v10  ;;  %v501_v57 = vmul.f32 %v500_v16, %v489_v10  ;;  %v2900_v16 = vld [vmem:[%s5759_s7] sm:$0x3f] }
 0x30d   :  { %3036 = vmatmul.msk.f32.gmra.mxu2 %vm2714_vm7, %v2688_v11 }
 0x30e   :  { %v495_v15 = vadd.f32 1.0, %v494_v62  ;;  %v502_v58 = vadd.f32 1.0, %v501_v57 }
 0x310   :  { %v503_v42 = vmul.f32 %v502_v58, %v487_v9  ;;  %v512_v49 = vxor.u32 2147483648, %v495_v15 }
 0x312   :  { %v509_v39 = vxor.u32 2147483648, %v503_v42  ;;  %v513_v36 = vsel %vm511_vm11, %v512_v49, %v503_v42 }
 0x314   :  { %v510_v20 = vsel %vm508_vm14, %v495_v15, %v509_v39 }
 0x315   :  { %3037 = vmatmul.msk.f32.gmra.mxu2 %vm2714_vm7, %v2689_v27  ;;  %v514_v50 = vsel %vm507_vm9, %v510_v20, %v513_v36  ;;  %v2905_v36 = vpop.permute.xlu1 %2904 }
 0x316   :  { %v515_v29 = vsel %vm504_vm4, nan, %v514_v50 }
 0x317   :  { %2771 = vmatpush.msra.mxu3 %v515_v29 }
 0x318   :  { %3038 = vmatmul.msk.f32.vlgmr.msra.gmra.mxu3 %vm2714_vm7, %v2686_v26 }
 0x320   :  { %3039 = vmatmul.msk.f32.gmra.mxu3 %vm2714_vm7, %v2687_v61 }
 0x328   :  { %3040 = vmatmul.msk.f32.gmra.mxu3 %vm2714_vm7, %v2688_v11 }
 0x330   :  { %3041 = vmatmul.msk.f32.gmra.mxu3 %vm2714_vm7, %v2689_v27 }
 0x380   :  { %v2744_v8 = vpop.f32.mrf.mxu2 }
 0x381   :  { %v2745_v37 = vadd.f32 %v2744_v8, %v2697_v21 }
 0x383   :  { %v2785_v33 = vmax.f32 %v2745_v37, 0.0 }
 0x388   :  { %v2747_v23 = vpop.f32.mrf.mxu2 }
 0x389   :  { %v2748_v47 = vadd.f32 %v2747_v23, %v2702_v54 }
 0x38b   :  { %v2787_v52 = vmax.f32 %v2748_v47, 0.0 }
 0x390   :  { %v2750_v35 = vpop.f32.mrf.mxu2 }
 0x391   :  { %v2751_v43 = vadd.f32 %v2750_v35, %v2707_v5 }
 0x393   :  { %v2789_v3 = vmax.f32 %v2751_v43, 0.0 }
 0x398   :  { %v2753_v0 = vpop.f32.mrf.mxu2 }
 0x399   :  { %v2754_v14 = vadd.f32 %v2753_v0, %v2712_v7 }
 0x39b   :  { %v2791_v46 = vmax.f32 %v2754_v14, 0.0  ;;  %v2773_v40 = vpop.f32.mrf.mxu3 }
 0x39c   :  { %v2774_v53 = vadd.f32 %v2773_v40, %v2697_v21 }
 0x39d   :  { %2846 = vmatpush.msrb.mxu2 %v2791_v46 }
 0x39e   :  { %v2786_v30 = vmax.f32 %v2774_v53, 0.0 }
 0x39f   :  { %2847 = vmatpush.msrb.mxu2 %v2789_v3 }
 0x3a1   :  { %2848 = vmatpush.msrb.mxu2 %v2787_v52 }
 0x3a3   :  { %2849 = vmatpush.msrb.mxu2 %v2785_v33  ;;  %v2776_v38 = vpop.f32.mrf.mxu3 }
 0x3a4   :  { %3042 = vmatmul.msk.f32.vlgmr.msrb.gmra.mxu2 %vm2821_vm13, %v2793_v48  ;;  %v2777_v28 = vadd.f32 %v2776_v38, %v2702_v54 }
 0x3a6   :  { %v2788_v60 = vmax.f32 %v2777_v28, 0.0 }
 0x3ab   :  { %v2779_v45 = vpop.f32.mrf.mxu3 }
 0x3ac   :  { %3043 = vmatmul.msk.f32.gmra.mxu2 %vm2821_vm13, %v2794_v13  ;;  %v2780_v44 = vadd.f32 %v2779_v45, %v2707_v5 }
 0x3ae   :  { %v2790_v63 = vmax.f32 %v2780_v44, 0.0 }
 0x3b3   :  { %v2782_v6 = vpop.f32.mrf.mxu3 }
 0x3b4   :  { %3044 = vmatmul.msk.f32.gmra.mxu2 %vm2821_vm13, %v2795_v17  ;;  %v2783_v56 = vadd.f32 %v2782_v6, %v2712_v7 }
 0x3b6   :  { %v2792_v26 = vmax.f32 %v2783_v56, 0.0 }
 0x3b8   :  { %2875 = vmatpush.msrb.mxu3 %v2792_v26 }
 0x3ba   :  { %2876 = vmatpush.msrb.mxu3 %v2790_v63 }
 0x3bc   :  { %3045 = vmatmul.msk.f32.gmra.mxu2 %vm2821_vm13, %v2796_v41  ;;  %2877 = vmatpush.msrb.mxu3 %v2788_v60 }
 0x3be   :  { %2878 = vmatpush.msrb.mxu3 %v2786_v30 }
 0x3bf   :  { %3046 = vmatmul.msk.f32.vlgmr.msrb.gmra.mxu3 %vm2821_vm13, %v2793_v48 }
 0x3c7   :  { %3047 = vmatmul.msk.f32.gmra.mxu3 %vm2821_vm13, %v2794_v13 }
 0x3cf   :  { %3048 = vmatmul.msk.f32.gmra.mxu3 %vm2821_vm13, %v2795_v17 }
 0x3d7   :  { %3049 = vmatmul.msk.f32.gmra.mxu3 %vm2821_vm13, %v2796_v41 }
 0x427   :  { %v2851_v24 = vpop.f32.mrf.mxu2 }
 0x428   :  { %v2852_v11 = vadd.f32 %v2851_v24, %v2804_v18 }
 0x42a   :  { %v2892_v59 = vmax.f32 %v2852_v11, 0.0 }
 0x42f   :  { %v2854_v61 = vpop.f32.mrf.mxu2 }
 0x430   :  { %v2855_v32 = vadd.f32 %v2854_v61, %v2809_v55 }
 0x432   :  { %v2894_v31 = vmax.f32 %v2855_v32, 0.0 }
 0x437   :  { %v2857_v51 = vpop.f32.mrf.mxu2 }
 0x438   :  { %v2858_v10 = vadd.f32 %v2857_v51, %v2814_v2 }
 0x43a   :  { %v2896_v34 = vmax.f32 %v2858_v10, 0.0 }
 0x43f   :  { %v2860_v9 = vpop.f32.mrf.mxu2 }
 0x440   :  { %v2861_v4 = vadd.f32 %v2860_v9, %v2819_v12 }
 0x442   :  { %v2898_v1 = vmax.f32 %v2861_v4, 0.0  ;;  %v2880_v22 = vpop.f32.mrf.mxu3 }
 0x443   :  { %v2881_v42 = vadd.f32 %v2880_v22, %v2804_v18 }
 0x444   :  { %2922 = vmatpush.msrb.mxu0 %v2898_v1 }
 0x445   :  { %v2893_v20 = vmax.f32 %v2881_v42, 0.0 }
 0x446   :  { %2923 = vmatpush.msrb.mxu0 %v2896_v34 }
 0x448   :  { %2924 = vmatpush.msrb.mxu0 %v2894_v31 }
 0x44a   :  { %2925 = vmatpush.msrb.mxu0 %v2892_v59  ;;  %v2883_v25 = vpop.f32.mrf.mxu3 }
 0x44b   :  { %3050 = vmatmul.msk.f32.vlgmr.msrb.gmra.mxu0 %vm2821_vm13, %v2900_v16  ;;  %v2884_v27 = vadd.f32 %v2883_v25, %v2809_v55 }
 0x44d   :  { %v2895_v39 = vmax.f32 %v2884_v27, 0.0 }
 0x452   :  { %v2886_v62 = vpop.f32.mrf.mxu3 }
 0x453   :  { %v2887_v15 = vadd.f32 %v2886_v62, %v2814_v2 }
 0x455   :  { %v2897_v49 = vmax.f32 %v2887_v15, 0.0 }
 0x45a   :  { %v2889_v57 = vpop.f32.mrf.mxu3 }
 0x45b   :  { %v2890_v58 = vadd.f32 %v2889_v57, %v2819_v12 }
 0x45d   :  { %v2899_v19 = vmax.f32 %v2890_v58, 0.0 }
 0x45f   :  { %2942 = vmatpush.msrb.mxu1 %v2899_v19 }
 0x461   :  { %2943 = vmatpush.msrb.mxu1 %v2897_v49 }
 0x463   :  { %2944 = vmatpush.msrb.mxu1 %v2895_v39 }
 0x465   :  { %2945 = vmatpush.msrb.mxu1 %v2893_v20 }
 0x466   :  { %3051 = vmatmul.msk.f32.vlgmr.msrb.gmra.mxu1 %vm2821_vm13, %v2900_v16 }
 0x4c8   :  { %v2927_v50 = vpop.f32.mrf.mxu0 }
 0x4c9   :  { %v2928_v29 = vadd.f32 %v2927_v50, %v2905_v36 }
 0x4cb   :  { %2950 = vst [vmem:[#allocation2] sm:$0x3f] %v2928_v29 }
 0x4e3   :  { %v2947_v8 = vpop.f32.mrf.mxu1 }
 0x4e4   :  { %v2948_v23 = vadd.f32 %v2947_v8, %v2905_v36 }
 0x4e6   :  { %2951 = vst [vmem:[#allocation2 + $0x8] sm:$0x3f] %v2948_v23 }
 0x4e7   :  { %2955 = vsyncadd [#allocation3], 128  ;;  %s2959_s27 = sshll.u32 %s5761_s9, 4  ;;  %s3096_s28 = smov [#allocation2]   ;;  %s2960_s27 = int_to_ptr.hbm [resolvable:$true] %s2959_s27 }
 0x4e8   :  { %s2957_s29 = sshll.u32 %s3096_s28, 4  ;;  %s2958_s29 = int_to_ptr.vmem [resolvable:$true] %s2957_s29 }
 0x4e9   :  { %2962 = dma.vmem_to_hbm [thread:$0]  %s2958_s29, 128, %s2960_s27, [#allocation3]  }
 0x4ea   :  { %3087 = dma.done.wait [#allocation3], 256  }
 0x4eb   :  { %3088 = vsyncadd [#allocation3], 4294967040 }
 0x4ec   :  { %2967 = vsyncpa [#allocation3], 1 }

</bundles_post_ra>
